<compile_context>
chip_gen: v6e
topology: v6e:2x2x1
jax: 0.10.0
libtpu: 0.0.40
codegen_flags: <defaults>
</compile_context>

<pallas_src>
import functools

import jax
import jax.numpy as jnp
from jax import lax
from jax.experimental import pallas as pl
from jax.experimental.pallas import tpu as pltpu


# -----------------------------------------------------------------------------
# Fused kernel
# -----------------------------------------------------------------------------
def make_ssdp_kernel(B, H, I, NH, T):
    D = H // NH
    scale = 1.0 / float(D) ** 0.5
    R_CNT = 3 * B      # rows of the flattened (seq=B, streams=3) stack, row = i*3 + n
    OUT = 3 * B        # stacked linear2_{1,2,3} outputs

    def kernel(xcat_ref, wih_ref, whh_ref, bg_ref,
               x2_ref, w1_ref, b1_ref,
               wqkv_ref, bqkv_ref, wo_ref, bo_ref,
               hmask_ref, hmaskt_ref, w2_ref, b2_ref,
               z_ref, xp_ref):
        # ---- both LSTMs' input projections, hoisted out of the recurrence ----
        # (T*B, 2I) @ (2I, 8H) + bias: one MXU call instead of 2*T in-loop dots.
        xp_ref[...] = (jnp.dot(xcat_ref[...], wih_ref[...],
                               preferred_element_type=jnp.float32)
                       + bg_ref[...])
        whh = whh_ref[...]                                  # (2H, 8H) block-diag

        # ---- interleaved recurrences, fully unrolled (T is small & static) ----
        h = jnp.zeros((B, 2 * H), jnp.float32)              # [h1 | h2]
        c = jnp.zeros((B, 2 * H), jnp.float32)              # [c1 | c2]
        for t in range(T):
            g = xp_ref[t * B:(t + 1) * B, :] + jnp.dot(
                h, whh, preferred_element_type=jnp.float32)  # (B, 8H)
            # gate columns pre-grouped as [i1|i2 | f1|f2 | o1|o2 | g1|g2]
            sg = jax.nn.sigmoid(g[:, 0:6 * H])
            i_w = sg[:, 0:2 * H]
            f_w = sg[:, 2 * H:4 * H]
            o_w = sg[:, 4 * H:6 * H]
            g_w = jnp.tanh(g[:, 6 * H:8 * H])
            c = f_w * c + i_w * g_w
            h = o_w * jnp.tanh(c)

        # ---- linear1 ----------------------------------------------------------
        y = jnp.dot(x2_ref[...], w1_ref[...],
                    preferred_element_type=jnp.float32) + b1_ref[...]   # (1, B*H)

        # ---- residual stack R, rows ordered (seq i major, stream n minor) -----
        rows = []
        for i in range(B):
            rows.append(h[i:i + 1, 0:H])             # lstm1 final hidden, seq i
            rows.append(h[i:i + 1, H:2 * H])         # lstm2 final hidden, seq i
            rows.append(y[:, i * H:(i + 1) * H])     # sys_out row i
        R = jnp.concatenate(rows, axis=0)            # (3B, H)

        # ---- fused QKV projection (one MXU call) ------------------------------
        qkv = jnp.dot(R, wqkv_ref[...],
                      preferred_element_type=jnp.float32) + bqkv_ref[...]  # (3B,3H)
        Q = qkv[:, 0:H] * scale
        K = qkv[:, H:2 * H]
        V = qkv[:, 2 * H:3 * H]

        # ---- attention: per-head scores via head-sum mask ----------------------
        # Rows are seq-major with period 3 (row = i*3 + n), so a static roll of
        # 3*k rows pairs every query (seq i, stream n) with the key/value of the
        # SAME stream at seq position (i+k) mod B.  Softmax over k is softmax over
        # key positions (permutation-invariant per row).
        hmask = hmask_ref[...]                        # (H, NH)
        hmaskt = hmaskt_ref[...]                      # (NH, H)
        S_list, V_list = [], []
        for k in range(B):
            if k == 0:
                Kk, Vk = K, V
            else:
                Kk = jnp.concatenate([K[3 * k:, :], K[:3 * k, :]], axis=0)
                Vk = jnp.concatenate([V[3 * k:, :], V[:3 * k, :]], axis=0)
            S_list.append(jnp.dot(Q * Kk, hmask,
                                  preferred_element_type=jnp.float32))    # (3B, NH)
            V_list.append(Vk)

        m = S_list[0]
        for k in range(1, B):
            m = jnp.maximum(m, S_list[k])
        e_list = [jnp.exp(S_list[k] - m) for k in range(B)]
        den = e_list[0]
        for k in range(1, B):
            den = den + e_list[k]
        rden = pl.reciprocal(den, approx=True)

        attn = None
        for k in range(B):
            p_b = jnp.dot(e_list[k] * rden, hmaskt,
                          preferred_element_type=jnp.float32)             # (3B, H)
            term = p_b * V_list[k]
            attn = term if attn is None else attn + term                   # (3B, H)

        # ---- attention output projection (one MXU call) -----------------------
        out = jnp.dot(attn, wo_ref[...],
                      preferred_element_type=jnp.float32) + bo_ref[...]   # (3B, H)

        # ---- stacked linear2_{1,2,3} as ONE contraction + sigmoid --------------
        # w2 is (H, R_CNT*OUT); the sum of the diagonal blocks of out @ w2 equals
        # [linear2_1(f_out) | linear2_2(f_out) | linear2_3(f_out)].
        Tm = jnp.dot(out, w2_ref[...],
                     preferred_element_type=jnp.float32)                  # (3B, 3B*OUT)
        z = b2_ref[...]
        for r in range(R_CNT):
            z = z + Tm[r:r + 1, r * OUT:(r + 1) * OUT]
        z_ref[...] = jax.nn.sigmoid(z)

    return kernel


# -----------------------------------------------------------------------------
# One-time parameter preparation (all weight re-layouts hoisted out of forward).
# -----------------------------------------------------------------------------
def prepare_params(p, *, B, H, I, NH):
    def bd(a, b):  # block-diagonal of two matrices
        za = jnp.zeros((a.shape[0], b.shape[1]), jnp.float32)
        zb = jnp.zeros((b.shape[0], a.shape[1]), jnp.float32)
        return jnp.concatenate(
            [jnp.concatenate([a, za], axis=1),
             jnp.concatenate([zb, b], axis=1)], axis=0)

    wih1t, wih2t = p["wih1"].T, p["wih2"].T          # (I, 4H), columns [i|f|g|o]
    whh1t, whh2t = p["whh1"].T, p["whh2"].T          # (H, 4H)
    # gate-regrouped block-diagonal weights, sigmoid gates first, tanh (g) last:
    # columns [i1|i2 | f1|f2 | o1|o2 | g1|g2]
    gate_order = (0, 1, 3, 2)                        # i, f, o, g (PyTorch order i,f,g,o)
    wih_bd = jnp.concatenate(
        [bd(wih1t[:, k * H:(k + 1) * H], wih2t[:, k * H:(k + 1) * H])
         for k in gate_order], axis=1)               # (2I, 8H)
    whh_bd = jnp.concatenate(
        [bd(whh1t[:, k * H:(k + 1) * H], whh2t[:, k * H:(k + 1) * H])
         for k in gate_order], axis=1)               # (2H, 8H)
    b1sum = p["bih1"] + p["bhh1"]
    b2sum = p["bih2"] + p["bhh2"]
    b_gates = jnp.concatenate(
        [jnp.concatenate([b1sum[k * H:(k + 1) * H], b2sum[k * H:(k + 1) * H]])
         for k in gate_order]).reshape(1, 8 * H)

    D = H // NH
    hmask = (jnp.arange(H)[:, None] // D == jnp.arange(NH)[None, :]).astype(jnp.float32)

    OUT, R_CNT = 3 * B, 3 * B
    W2s = jnp.concatenate([p["w2_1"], p["w2_2"], p["w2_3"]], axis=0)       # (3B, 3BH)
    # w2big[e, r*OUT + j] = W2s[j, r*H + e]
    w2big = jnp.transpose(W2s.reshape(OUT, R_CNT, H), (2, 1, 0)).reshape(H, R_CNT * OUT)

    return {
        "wih_bd": wih_bd, "whh_bd": whh_bd, "b_gates": b_gates,
        "w1_t": p["w1"].T, "b1": p["b1"].reshape(1, B * H),
        "wqkv": p["in_proj_w"].T, "bqkv": p["in_proj_b"].reshape(1, 3 * H),
        "wo_t": p["wo"].T, "bo": p["bo"].reshape(1, H),
        "hmask": hmask, "hmask_t": hmask.T,
        "w2big": w2big,
        "b2": jnp.concatenate([p["b2_1"], p["b2_2"], p["b2_3"]]).reshape(1, OUT),
    }


# -----------------------------------------------------------------------------
# Full SSDP forward: one pallas_call.
# -----------------------------------------------------------------------------
def ssdp_forward(x0, x1, x2, prep, *, B, H, NH):
    T = x0.shape[1]     # sequence length == hidden_layer_size (per .view(batch, hidden, -1))
    I = x0.shape[-1]

    # per-call input prep: time-major, lane-concatenate the two LSTM inputs
    x0_tb = jnp.transpose(x0.reshape(B, T, I), (1, 0, 2)).reshape(T * B, I)
    x1_tb = jnp.transpose(x1.reshape(B, T, I), (1, 0, 2)).reshape(T * B, I)
    x_cat = jnp.concatenate([x0_tb, x1_tb], axis=1)          # (T*B, 2I)
    x2_flat = x2.reshape(1, 7 * B)

    kernel = make_ssdp_kernel(B, H, I, NH, T)
    args = (x_cat, prep["wih_bd"], prep["whh_bd"], prep["b_gates"],
            x2_flat, prep["w1_t"], prep["b1"],
            prep["wqkv"], prep["bqkv"], prep["wo_t"], prep["bo"],
            prep["hmask"], prep["hmask_t"], prep["w2big"], prep["b2"])

    z = pl.pallas_call(
        kernel,
        out_shape=jax.ShapeDtypeStruct((1, 3 * B), jnp.float32),
        grid=(1,),
        in_specs=[pl.BlockSpec(a.shape, lambda i: (0, 0)) for a in args],
        out_specs=pl.BlockSpec((1, 3 * B), lambda i: (0, 0)),
        scratch_shapes=[pltpu.VMEM((T * B, 8 * H), jnp.float32)],
        compiler_params=pltpu.CompilerParams(dimension_semantics=("arbitrary",)),
    )(*args)

    # predictions[b, k] = sigmoid(linear2_{k+1}(f_out))[0, b]
    return jnp.transpose(z.reshape(3, B))


# -----------------------------------------------------------------------------
# Pure-JAX reference (mirrors the PyTorch forward exactly).
# -----------------------------------------------------------------------------
def reference_forward(x0, x1, x2, p, B, H, NH):
    D = H // NH

    def lstm_ref(x_bti, wih, whh, bih, bhh):
        def step(carry, x_t):
            h, c = carry
            g = x_t @ wih.T + bih + h @ whh.T + bhh
            i = jax.nn.sigmoid(g[:, :H]); f = jax.nn.sigmoid(g[:, H:2 * H])
            gg = jnp.tanh(g[:, 2 * H:3 * H]); o = jax.nn.sigmoid(g[:, 3 * H:])
            c = f * c + i * gg
            h = o * jnp.tanh(c)
            return (h, c), None
        init = (jnp.zeros((B, H), jnp.float32), jnp.zeros((B, H), jnp.float32))
        (h_last, _), _ = lax.scan(step, init, jnp.swapaxes(x_bti, 0, 1))
        return h_last

    h1 = lstm_ref(x0.reshape(B, H, -1), p["wih1"], p["whh1"], p["bih1"], p["bhh1"])
    h2 = lstm_ref(x1.reshape(B, H, -1), p["wih2"], p["whh2"], p["bih2"], p["bhh2"])
    sys = (x2.reshape(1, -1) @ p["w1"].T + p["b1"]).reshape(B, 1, H)
    res = jnp.concatenate([h1[:, None, :], h2[:, None, :], sys], axis=1)   # (B, 3, H)

    wq, wk, wv = jnp.split(p["in_proj_w"], 3, axis=0)
    bq, bk, bv = jnp.split(p["in_proj_b"], 3, axis=0)
    q = (res @ wq.T + bq) * (float(D) ** -0.5)
    k = res @ wk.T + bk
    v = res @ wv.T + bv
    qh = q.reshape(B, 3, NH, D); kh = k.reshape(B, 3, NH, D); vh = v.reshape(B, 3, NH, D)
    s = jnp.einsum("inhd,jnhd->nhij", qh, kh)
    a = jax.nn.softmax(s, axis=-1)
    o = jnp.einsum("nhij,jnhd->inhd", a, vh).reshape(B, 3, H)
    out = o @ p["wo"].T + p["bo"]
    f_out = out.reshape(1, -1)
    pre1 = jax.nn.sigmoid(f_out @ p["w2_1"].T + p["b2_1"]).reshape(B, 1)
    pre2 = jax.nn.sigmoid(f_out @ p["w2_2"].T + p["b2_2"]).reshape(B, 1)
    pre3 = jax.nn.sigmoid(f_out @ p["w2_3"].T + p["b2_3"]).reshape(B, 1)
    return jnp.concatenate([pre1, pre2, pre3], axis=1)


# -----------------------------------------------------------------------------
# Deterministic parameter init (PyTorch-like uniform bounds).
# -----------------------------------------------------------------------------
def init_params(key, B, H, I):
    ks = jax.random.split(key, 20)

    def u(k, shape, bound):
        return jax.random.uniform(k, shape, jnp.float32, -bound, bound)

    kH = 1.0 / (H ** 0.5)
    k1 = 1.0 / ((7 * B) ** 0.5)
    k2 = 1.0 / ((3 * B * H) ** 0.5)
    return {
        "wih1": u(ks[0], (4 * H, I), kH), "whh1": u(ks[1], (4 * H, H), kH),
        "bih1": u(ks[2], (4 * H,), kH),   "bhh1": u(ks[3], (4 * H,), kH),
        "wih2": u(ks[4], (4 * H, I), kH), "whh2": u(ks[5], (4 * H, H), kH),
        "bih2": u(ks[6], (4 * H,), kH),   "bhh2": u(ks[7], (4 * H,), kH),
        "w1":   u(ks[8], (B * H, 7 * B), k1), "b1": u(ks[9], (B * H,), k1),
        "in_proj_w": u(ks[10], (3 * H, H), kH), "in_proj_b": u(ks[11], (3 * H,), kH),
        "wo":   u(ks[12], (H, H), kH),    "bo": u(ks[13], (H,), kH),
        "w2_1": u(ks[14], (B, 3 * B * H), k2), "b2_1": u(ks[15], (B,), k2),
        "w2_2": u(ks[16], (B, 3 * B * H), k2), "b2_2": u(ks[17], (B,), k2),
        "w2_3": u(ks[18], (B, 3 * B * H), k2), "b2_3": u(ks[19], (B,), k2),
    }


if __name__ == "__main__":
    B, H, I, NH = 2, 32, 8, 4   # batch_size, hidden_layer_size, input_size, head_num
    key = jax.random.PRNGKey(0)
    k_in, k_p = jax.random.split(key)
    k0, k1, k2 = jax.random.split(k_in, 3)
    x0 = jax.random.normal(k0, (B, H, I), jnp.float32)   # input_seq[0]
    x1 = jax.random.normal(k1, (B, H, I), jnp.float32)   # input_seq[1]
    x2 = jax.random.normal(k2, (B, 7), jnp.float32)      # input_seq[2]
    params = init_params(k_p, B, H, I)

    # one-time weight re-layout (hoisted out of the forward pass)
    prep = prepare_params(params, B=B, H=H, I=I, NH=NH)

    fwd = jax.jit(functools.partial(ssdp_forward, B=B, H=H, NH=NH))
    preds = jax.block_until_ready(fwd(x0, x1, x2, prep))
    ref = jax.block_until_ready(reference_forward(x0, x1, x2, params, B, H, NH))

    assert preds.shape == (B, 3), preds.shape
    if not bool(jnp.allclose(preds, ref, atol=5e-3, rtol=5e-3)):
        raise AssertionError(f"mismatch: kernel={preds}, ref={ref}")
    print("KERNEL_OK")
</pallas_src>

<mosaic_0001>
module attributes {stable_mosaic.version = 11 : i64} {
  func.func @kernel(%arg0: i32, %arg1: memref<64x16xf32, #tpu.memory_space<vmem>>, %arg2: memref<16x256xf32, #tpu.memory_space<vmem>>, %arg3: memref<64x256xf32, #tpu.memory_space<vmem>>, %arg4: memref<1x256xf32, #tpu.memory_space<vmem>>, %arg5: memref<1x14xf32, #tpu.memory_space<vmem>>, %arg6: memref<14x64xf32, #tpu.memory_space<vmem>>, %arg7: memref<1x64xf32, #tpu.memory_space<vmem>>, %arg8: memref<32x96xf32, #tpu.memory_space<vmem>>, %arg9: memref<1x96xf32, #tpu.memory_space<vmem>>, %arg10: memref<32x32xf32, #tpu.memory_space<vmem>>, %arg11: memref<1x32xf32, #tpu.memory_space<vmem>>, %arg12: memref<32x4xf32, #tpu.memory_space<vmem>>, %arg13: memref<4x32xf32, #tpu.memory_space<vmem>>, %arg14: memref<32x36xf32, #tpu.memory_space<vmem>>, %arg15: memref<1x6xf32, #tpu.memory_space<vmem>>, %arg16: memref<1x6xf32, #tpu.memory_space<vmem>>, %arg17: memref<64x256xf32, #tpu.memory_space<vmem>>) attributes {dimension_semantics = [#tpu.dimension_semantics<arbitrary>], iteration_bounds = array<i64: 1>, scalar_prefetch = 0 : i64, scratch_operands = 1 : i64, tpu.core_type = #tpu.core_type<tc>, window_params = [{pipeline_mode = #tpu.pipeline_mode<synchronous>, transform_indices = @transform_0, window_bounds = array<i64: 64, 16>}, {pipeline_mode = #tpu.pipeline_mode<synchronous>, transform_indices = @transform_1, window_bounds = array<i64: 16, 256>}, {pipeline_mode = #tpu.pipeline_mode<synchronous>, transform_indices = @transform_2, window_bounds = array<i64: 64, 256>}, {pipeline_mode = #tpu.pipeline_mode<synchronous>, transform_indices = @transform_3, window_bounds = array<i64: 1, 256>}, {pipeline_mode = #tpu.pipeline_mode<synchronous>, transform_indices = @transform_4, window_bounds = array<i64: 1, 14>}, {pipeline_mode = #tpu.pipeline_mode<synchronous>, transform_indices = @transform_5, window_bounds = array<i64: 14, 64>}, {pipeline_mode = #tpu.pipeline_mode<synchronous>, transform_indices = @transform_6, window_bounds = array<i64: 1, 64>}, {pipeline_mode = #tpu.pipeline_mode<synchronous>, transform_indices = @transform_7, window_bounds = array<i64: 32, 96>}, {pipeline_mode = #tpu.pipeline_mode<synchronous>, transform_indices = @transform_8, window_bounds = array<i64: 1, 96>}, {pipeline_mode = #tpu.pipeline_mode<synchronous>, transform_indices = @transform_9, window_bounds = array<i64: 32, 32>}, {pipeline_mode = #tpu.pipeline_mode<synchronous>, transform_indices = @transform_10, window_bounds = array<i64: 1, 32>}, {pipeline_mode = #tpu.pipeline_mode<synchronous>, transform_indices = @transform_11, window_bounds = array<i64: 32, 4>}, {pipeline_mode = #tpu.pipeline_mode<synchronous>, transform_indices = @transform_12, window_bounds = array<i64: 4, 32>}, {pipeline_mode = #tpu.pipeline_mode<synchronous>, transform_indices = @transform_13, window_bounds = array<i64: 32, 36>}, {pipeline_mode = #tpu.pipeline_mode<synchronous>, transform_indices = @transform_14, window_bounds = array<i64: 1, 6>}, {pipeline_mode = #tpu.pipeline_mode<synchronous>, transform_indices = @transform_15, window_bounds = array<i64: 1, 6>}]} {
    %c0 = arith.constant 0 : index
    %c0_0 = arith.constant 0 : index
    %0 = vector.load %arg1[%c0, %c0_0] : memref<64x16xf32, #tpu.memory_space<vmem>>, vector<64x16xf32>
    %c0_1 = arith.constant 0 : index
    %c0_2 = arith.constant 0 : index
    %1 = vector.load %arg2[%c0_1, %c0_2] : memref<16x256xf32, #tpu.memory_space<vmem>>, vector<16x256xf32>
    %cst = arith.constant dense<0.000000e+00> : vector<64x256xf32>
    %2 = tpu.matmul %0, %1, %cst {dimension_numbers = #tpu.dot_dimension_numbers<[1], [0], [0], [1], [0, 0, 1, 1], [], []>} : vector<64x16xf32>, vector<16x256xf32>, vector<64x256xf32> -> vector<64x256xf32>
    %c0_3 = arith.constant 0 : index
    %c0_4 = arith.constant 0 : index
    %3 = vector.load %arg4[%c0_3, %c0_4] : memref<1x256xf32, #tpu.memory_space<vmem>>, vector<1x256xf32>
    %4 = vector.broadcast %3 : vector<1x256xf32> to vector<64x256xf32>
    %5 = arith.addf %2, %4 : vector<64x256xf32>
    %c0_5 = arith.constant 0 : index
    %c0_6 = arith.constant 0 : index
    %6 = vector.load %arg17[%c0_5, %c0_6] : memref<64x256xf32, #tpu.memory_space<vmem>>, vector<64x256xf32>
    tpu.vector_store %arg17[%c0_5, %c0_6], %5 {strides = array<i32>} : memref<64x256xf32, #tpu.memory_space<vmem>>, vector<64x256xf32>,
    %c0_7 = arith.constant 0 : index
    %c0_8 = arith.constant 0 : index
    %7 = vector.load %arg3[%c0_7, %c0_8] : memref<64x256xf32, #tpu.memory_space<vmem>>, vector<64x256xf32>
    %cst_9 = arith.constant 0.000000e+00 : f32
    %8 = vector.broadcast %cst_9 : f32 to vector<2x64xf32>
    %cst_10 = arith.constant 0.000000e+00 : f32
    %9 = vector.broadcast %cst_10 : f32 to vector<2x64xf32>
    %c0_11 = arith.constant 0 : index
    %c0_12 = arith.constant 0 : index
    %10 = vector.load %arg17[%c0_11, %c0_12] : memref<64x256xf32, #tpu.memory_space<vmem>>, vector<2x256xf32>
    %cst_13 = arith.constant dense<0.000000e+00> : vector<2x256xf32>
    %11 = tpu.matmul %8, %7, %cst_13 {dimension_numbers = #tpu.dot_dimension_numbers<[1], [0], [0], [1], [0, 0, 1, 1], [], []>} : vector<2x64xf32>, vector<64x256xf32>, vector<2x256xf32> -> vector<2x256xf32>
    %12 = arith.addf %10, %11 : vector<2x256xf32>
    %13 = vector.extract_strided_slice %12 {offsets = [0, 0], sizes = [2, 192], strides = [1, 1]} : vector<2x256xf32> to vector<2x192xf32>
    %14 = arith.negf %13 : vector<2x192xf32>
    %15 = math.exp %14 : vector<2x192xf32>
    %cst_14 = arith.constant 1.000000e+00 : f32
    %16 = vector.broadcast %cst_14 : f32 to vector<2x192xf32>
    %17 = arith.addf %16, %15 : vector<2x192xf32>
    %18 = arith.divf %16, %17 : vector<2x192xf32>
    %19 = vector.extract_strided_slice %18 {offsets = [0, 0], sizes = [2, 64], strides = [1, 1]} : vector<2x192xf32> to vector<2x64xf32>
    %20 = vector.extract_strided_slice %18 {offsets = [0, 64], sizes = [2, 64], strides = [1, 1]} : vector<2x192xf32> to vector<2x64xf32>
    %21 = vector.extract_strided_slice %18 {offsets = [0, 128], sizes = [2, 64], strides = [1, 1]} : vector<2x192xf32> to vector<2x64xf32>
    %22 = vector.extract_strided_slice %12 {offsets = [0, 192], sizes = [2, 64], strides = [1, 1]} : vector<2x256xf32> to vector<2x64xf32>
    %23 = math.tanh %22 : vector<2x64xf32>
    %24 = arith.mulf %20, %9 : vector<2x64xf32>
    %25 = arith.mulf %19, %23 : vector<2x64xf32>
    %26 = arith.addf %24, %25 : vector<2x64xf32>
    %27 = math.tanh %26 : vector<2x64xf32>
    %28 = arith.mulf %21, %27 : vector<2x64xf32>
    %c2 = arith.constant 2 : index
    %c0_15 = arith.constant 0 : index
    %29 = vector.load %arg17[%c2, %c0_15] : memref<64x256xf32, #tpu.memory_space<vmem>>, vector<2x256xf32>
    %cst_16 = arith.constant dense<0.000000e+00> : vector<2x256xf32>
    %30 = tpu.matmul %28, %7, %cst_16 {dimension_numbers = #tpu.dot_dimension_numbers<[1], [0], [0], [1], [0, 0, 1, 1], [], []>} : vector<2x64xf32>, vector<64x256xf32>, vector<2x256xf32> -> vector<2x256xf32>
    %31 = arith.addf %29, %30 : vector<2x256xf32>
    %32 = vector.extract_strided_slice %31 {offsets = [0, 0], sizes = [2, 192], strides = [1, 1]} : vector<2x256xf32> to vector<2x192xf32>
    %33 = arith.negf %32 : vector<2x192xf32>
    %34 = math.exp %33 : vector<2x192xf32>
    %cst_17 = arith.constant 1.000000e+00 : f32
    %35 = vector.broadcast %cst_17 : f32 to vector<2x192xf32>
    %36 = arith.addf %35, %34 : vector<2x192xf32>
    %37 = arith.divf %35, %36 : vector<2x192xf32>
    %38 = vector.extract_strided_slice %37 {offsets = [0, 0], sizes = [2, 64], strides = [1, 1]} : vector<2x192xf32> to vector<2x64xf32>
    %39 = vector.extract_strided_slice %37 {offsets = [0, 64], sizes = [2, 64], strides = [1, 1]} : vector<2x192xf32> to vector<2x64xf32>
    %40 = vector.extract_strided_slice %37 {offsets = [0, 128], sizes = [2, 64], strides = [1, 1]} : vector<2x192xf32> to vector<2x64xf32>
    %41 = vector.extract_strided_slice %31 {offsets = [0, 192], sizes = [2, 64], strides = [1, 1]} : vector<2x256xf32> to vector<2x64xf32>
    %42 = math.tanh %41 : vector<2x64xf32>
    %43 = arith.mulf %39, %26 : vector<2x64xf32>
    %44 = arith.mulf %38, %42 : vector<2x64xf32>
    %45 = arith.addf %43, %44 : vector<2x64xf32>
    %46 = math.tanh %45 : vector<2x64xf32>
    %47 = arith.mulf %40, %46 : vector<2x64xf32>
    %c4 = arith.constant 4 : index
    %c0_18 = arith.constant 0 : index
    %48 = vector.load %arg17[%c4, %c0_18] : memref<64x256xf32, #tpu.memory_space<vmem>>, vector<2x256xf32>
    %cst_19 = arith.constant dense<0.000000e+00> : vector<2x256xf32>
    %49 = tpu.matmul %47, %7, %cst_19 {dimension_numbers = #tpu.dot_dimension_numbers<[1], [0], [0], [1], [0, 0, 1, 1], [], []>} : vector<2x64xf32>, vector<64x256xf32>, vector<2x256xf32> -> vector<2x256xf32>
    %50 = arith.addf %48, %49 : vector<2x256xf32>
    %51 = vector.extract_strided_slice %50 {offsets = [0, 0], sizes = [2, 192], strides = [1, 1]} : vector<2x256xf32> to vector<2x192xf32>
    %52 = arith.negf %51 : vector<2x192xf32>
    %53 = math.exp %52 : vector<2x192xf32>
    %cst_20 = arith.constant 1.000000e+00 : f32
    %54 = vector.broadcast %cst_20 : f32 to vector<2x192xf32>
    %55 = arith.addf %54, %53 : vector<2x192xf32>
    %56 = arith.divf %54, %55 : vector<2x192xf32>
    %57 = vector.extract_strided_slice %56 {offsets = [0, 0], sizes = [2, 64], strides = [1, 1]} : vector<2x192xf32> to vector<2x64xf32>
    %58 = vector.extract_strided_slice %56 {offsets = [0, 64], sizes = [2, 64], strides = [1, 1]} : vector<2x192xf32> to vector<2x64xf32>
    %59 = vector.extract_strided_slice %56 {offsets = [0, 128], sizes = [2, 64], strides = [1, 1]} : vector<2x192xf32> to vector<2x64xf32>
    %60 = vector.extract_strided_slice %50 {offsets = [0, 192], sizes = [2, 64], strides = [1, 1]} : vector<2x256xf32> to vector<2x64xf32>
    %61 = math.tanh %60 : vector<2x64xf32>
    %62 = arith.mulf %58, %45 : vector<2x64xf32>
    %63 = arith.mulf %57, %61 : vector<2x64xf32>
    %64 = arith.addf %62, %63 : vector<2x64xf32>
    %65 = math.tanh %64 : vector<2x64xf32>
    %66 = arith.mulf %59, %65 : vector<2x64xf32>
    %c6 = arith.constant 6 : index
    %c0_21 = arith.constant 0 : index
    %67 = vector.load %arg17[%c6, %c0_21] : memref<64x256xf32, #tpu.memory_space<vmem>>, vector<2x256xf32>
    %cst_22 = arith.constant dense<0.000000e+00> : vector<2x256xf32>
    %68 = tpu.matmul %66, %7, %cst_22 {dimension_numbers = #tpu.dot_dimension_numbers<[1], [0], [0], [1], [0, 0, 1, 1], [], []>} : vector<2x64xf32>, vector<64x256xf32>, vector<2x256xf32> -> vector<2x256xf32>
    %69 = arith.addf %67, %68 : vector<2x256xf32>
    %70 = vector.extract_strided_slice %69 {offsets = [0, 0], sizes = [2, 192], strides = [1, 1]} : vector<2x256xf32> to vector<2x192xf32>
    %71 = arith.negf %70 : vector<2x192xf32>
    %72 = math.exp %71 : vector<2x192xf32>
    %cst_23 = arith.constant 1.000000e+00 : f32
    %73 = vector.broadcast %cst_23 : f32 to vector<2x192xf32>
    %74 = arith.addf %73, %72 : vector<2x192xf32>
    %75 = arith.divf %73, %74 : vector<2x192xf32>
    %76 = vector.extract_strided_slice %75 {offsets = [0, 0], sizes = [2, 64], strides = [1, 1]} : vector<2x192xf32> to vector<2x64xf32>
    %77 = vector.extract_strided_slice %75 {offsets = [0, 64], sizes = [2, 64], strides = [1, 1]} : vector<2x192xf32> to vector<2x64xf32>
    %78 = vector.extract_strided_slice %75 {offsets = [0, 128], sizes = [2, 64], strides = [1, 1]} : vector<2x192xf32> to vector<2x64xf32>
    %79 = vector.extract_strided_slice %69 {offsets = [0, 192], sizes = [2, 64], strides = [1, 1]} : vector<2x256xf32> to vector<2x64xf32>
    %80 = math.tanh %79 : vector<2x64xf32>
    %81 = arith.mulf %77, %64 : vector<2x64xf32>
    %82 = arith.mulf %76, %80 : vector<2x64xf32>
    %83 = arith.addf %81, %82 : vector<2x64xf32>
    %84 = math.tanh %83 : vector<2x64xf32>
    %85 = arith.mulf %78, %84 : vector<2x64xf32>
    %c8 = arith.constant 8 : index
    %c0_24 = arith.constant 0 : index
    %86 = vector.load %arg17[%c8, %c0_24] : memref<64x256xf32, #tpu.memory_space<vmem>>, vector<2x256xf32>
    %cst_25 = arith.constant dense<0.000000e+00> : vector<2x256xf32>
    %87 = tpu.matmul %85, %7, %cst_25 {dimension_numbers = #tpu.dot_dimension_numbers<[1], [0], [0], [1], [0, 0, 1, 1], [], []>} : vector<2x64xf32>, vector<64x256xf32>, vector<2x256xf32> -> vector<2x256xf32>
    %88 = arith.addf %86, %87 : vector<2x256xf32>
    %89 = vector.extract_strided_slice %88 {offsets = [0, 0], sizes = [2, 192], strides = [1, 1]} : vector<2x256xf32> to vector<2x192xf32>
    %90 = arith.negf %89 : vector<2x192xf32>
    %91 = math.exp %90 : vector<2x192xf32>
    %cst_26 = arith.constant 1.000000e+00 : f32
    %92 = vector.broadcast %cst_26 : f32 to vector<2x192xf32>
    %93 = arith.addf %92, %91 : vector<2x192xf32>
    %94 = arith.divf %92, %93 : vector<2x192xf32>
    %95 = vector.extract_strided_slice %94 {offsets = [0, 0], sizes = [2, 64], strides = [1, 1]} : vector<2x192xf32> to vector<2x64xf32>
    %96 = vector.extract_strided_slice %94 {offsets = [0, 64], sizes = [2, 64], strides = [1, 1]} : vector<2x192xf32> to vector<2x64xf32>
    %97 = vector.extract_strided_slice %94 {offsets = [0, 128], sizes = [2, 64], strides = [1, 1]} : vector<2x192xf32> to vector<2x64xf32>
    %98 = vector.extract_strided_slice %88 {offsets = [0, 192], sizes = [2, 64], strides = [1, 1]} : vector<2x256xf32> to vector<2x64xf32>
    %99 = math.tanh %98 : vector<2x64xf32>
    %100 = arith.mulf %96, %83 : vector<2x64xf32>
    %101 = arith.mulf %95, %99 : vector<2x64xf32>
    %102 = arith.addf %100, %101 : vector<2x64xf32>
    %103 = math.tanh %102 : vector<2x64xf32>
    %104 = arith.mulf %97, %103 : vector<2x64xf32>
    %c10 = arith.constant 10 : index
    %c0_27 = arith.constant 0 : index
    %105 = vector.load %arg17[%c10, %c0_27] : memref<64x256xf32, #tpu.memory_space<vmem>>, vector<2x256xf32>
    %cst_28 = arith.constant dense<0.000000e+00> : vector<2x256xf32>
    %106 = tpu.matmul %104, %7, %cst_28 {dimension_numbers = #tpu.dot_dimension_numbers<[1], [0], [0], [1], [0, 0, 1, 1], [], []>} : vector<2x64xf32>, vector<64x256xf32>, vector<2x256xf32> -> vector<2x256xf32>
    %107 = arith.addf %105, %106 : vector<2x256xf32>
    %108 = vector.extract_strided_slice %107 {offsets = [0, 0], sizes = [2, 192], strides = [1, 1]} : vector<2x256xf32> to vector<2x192xf32>
    %109 = arith.negf %108 : vector<2x192xf32>
    %110 = math.exp %109 : vector<2x192xf32>
    %cst_29 = arith.constant 1.000000e+00 : f32
    %111 = vector.broadcast %cst_29 : f32 to vector<2x192xf32>
    %112 = arith.addf %111, %110 : vector<2x192xf32>
    %113 = arith.divf %111, %112 : vector<2x192xf32>
    %114 = vector.extract_strided_slice %113 {offsets = [0, 0], sizes = [2, 64], strides = [1, 1]} : vector<2x192xf32> to vector<2x64xf32>
    %115 = vector.extract_strided_slice %113 {offsets = [0, 64], sizes = [2, 64], strides = [1, 1]} : vector<2x192xf32> to vector<2x64xf32>
    %116 = vector.extract_strided_slice %113 {offsets = [0, 128], sizes = [2, 64], strides = [1, 1]} : vector<2x192xf32> to vector<2x64xf32>
    %117 = vector.extract_strided_slice %107 {offsets = [0, 192], sizes = [2, 64], strides = [1, 1]} : vector<2x256xf32> to vector<2x64xf32>
    %118 = math.tanh %117 : vector<2x64xf32>
    %119 = arith.mulf %115, %102 : vector<2x64xf32>
    %120 = arith.mulf %114, %118 : vector<2x64xf32>
    %121 = arith.addf %119, %120 : vector<2x64xf32>
    %122 = math.tanh %121 : vector<2x64xf32>
    %123 = arith.mulf %116, %122 : vector<2x64xf32>
    %c12 = arith.constant 12 : index
    %c0_30 = arith.constant 0 : index
    %124 = vector.load %arg17[%c12, %c0_30] : memref<64x256xf32, #tpu.memory_space<vmem>>, vector<2x256xf32>
    %cst_31 = arith.constant dense<0.000000e+00> : vector<2x256xf32>
    %125 = tpu.matmul %123, %7, %cst_31 {dimension_numbers = #tpu.dot_dimension_numbers<[1], [0], [0], [1], [0, 0, 1, 1], [], []>} : vector<2x64xf32>, vector<64x256xf32>, vector<2x256xf32> -> vector<2x256xf32>
    %126 = arith.addf %124, %125 : vector<2x256xf32>
    %127 = vector.extract_strided_slice %126 {offsets = [0, 0], sizes = [2, 192], strides = [1, 1]} : vector<2x256xf32> to vector<2x192xf32>
    %128 = arith.negf %127 : vector<2x192xf32>
    %129 = math.exp %128 : vector<2x192xf32>
    %cst_32 = arith.constant 1.000000e+00 : f32
    %130 = vector.broadcast %cst_32 : f32 to vector<2x192xf32>
    %131 = arith.addf %130, %129 : vector<2x192xf32>
    %132 = arith.divf %130, %131 : vector<2x192xf32>
    %133 = vector.extract_strided_slice %132 {offsets = [0, 0], sizes = [2, 64], strides = [1, 1]} : vector<2x192xf32> to vector<2x64xf32>
    %134 = vector.extract_strided_slice %132 {offsets = [0, 64], sizes = [2, 64], strides = [1, 1]} : vector<2x192xf32> to vector<2x64xf32>
    %135 = vector.extract_strided_slice %132 {offsets = [0, 128], sizes = [2, 64], strides = [1, 1]} : vector<2x192xf32> to vector<2x64xf32>
    %136 = vector.extract_strided_slice %126 {offsets = [0, 192], sizes = [2, 64], strides = [1, 1]} : vector<2x256xf32> to vector<2x64xf32>
    %137 = math.tanh %136 : vector<2x64xf32>
    %138 = arith.mulf %134, %121 : vector<2x64xf32>
    %139 = arith.mulf %133, %137 : vector<2x64xf32>
    %140 = arith.addf %138, %139 : vector<2x64xf32>
    %141 = math.tanh %140 : vector<2x64xf32>
    %142 = arith.mulf %135, %141 : vector<2x64xf32>
    %c14 = arith.constant 14 : index
    %c0_33 = arith.constant 0 : index
    %143 = vector.load %arg17[%c14, %c0_33] : memref<64x256xf32, #tpu.memory_space<vmem>>, vector<2x256xf32>
    %cst_34 = arith.constant dense<0.000000e+00> : vector<2x256xf32>
    %144 = tpu.matmul %142, %7, %cst_34 {dimension_numbers = #tpu.dot_dimension_numbers<[1], [0], [0], [1], [0, 0, 1, 1], [], []>} : vector<2x64xf32>, vector<64x256xf32>, vector<2x256xf32> -> vector<2x256xf32>
    %145 = arith.addf %143, %144 : vector<2x256xf32>
    %146 = vector.extract_strided_slice %145 {offsets = [0, 0], sizes = [2, 192], strides = [1, 1]} : vector<2x256xf32> to vector<2x192xf32>
    %147 = arith.negf %146 : vector<2x192xf32>
    %148 = math.exp %147 : vector<2x192xf32>
    %cst_35 = arith.constant 1.000000e+00 : f32
    %149 = vector.broadcast %cst_35 : f32 to vector<2x192xf32>
    %150 = arith.addf %149, %148 : vector<2x192xf32>
    %151 = arith.divf %149, %150 : vector<2x192xf32>
    %152 = vector.extract_strided_slice %151 {offsets = [0, 0], sizes = [2, 64], strides = [1, 1]} : vector<2x192xf32> to vector<2x64xf32>
    %153 = vector.extract_strided_slice %151 {offsets = [0, 64], sizes = [2, 64], strides = [1, 1]} : vector<2x192xf32> to vector<2x64xf32>
    %154 = vector.extract_strided_slice %151 {offsets = [0, 128], sizes = [2, 64], strides = [1, 1]} : vector<2x192xf32> to vector<2x64xf32>
    %155 = vector.extract_strided_slice %145 {offsets = [0, 192], sizes = [2, 64], strides = [1, 1]} : vector<2x256xf32> to vector<2x64xf32>
    %156 = math.tanh %155 : vector<2x64xf32>
    %157 = arith.mulf %153, %140 : vector<2x64xf32>
    %158 = arith.mulf %152, %156 : vector<2x64xf32>
    %159 = arith.addf %157, %158 : vector<2x64xf32>
    %160 = math.tanh %159 : vector<2x64xf32>
    %161 = arith.mulf %154, %160 : vector<2x64xf32>
    %c16 = arith.constant 16 : index
    %c0_36 = arith.constant 0 : index
    %162 = vector.load %arg17[%c16, %c0_36] : memref<64x256xf32, #tpu.memory_space<vmem>>, vector<2x256xf32>
    %cst_37 = arith.constant dense<0.000000e+00> : vector<2x256xf32>
    %163 = tpu.matmul %161, %7, %cst_37 {dimension_numbers = #tpu.dot_dimension_numbers<[1], [0], [0], [1], [0, 0, 1, 1], [], []>} : vector<2x64xf32>, vector<64x256xf32>, vector<2x256xf32> -> vector<2x256xf32>
    %164 = arith.addf %162, %163 : vector<2x256xf32>
    %165 = vector.extract_strided_slice %164 {offsets = [0, 0], sizes = [2, 192], strides = [1, 1]} : vector<2x256xf32> to vector<2x192xf32>
    %166 = arith.negf %165 : vector<2x192xf32>
    %167 = math.exp %166 : vector<2x192xf32>
    %cst_38 = arith.constant 1.000000e+00 : f32
    %168 = vector.broadcast %cst_38 : f32 to vector<2x192xf32>
    %169 = arith.addf %168, %167 : vector<2x192xf32>
    %170 = arith.divf %168, %169 : vector<2x192xf32>
    %171 = vector.extract_strided_slice %170 {offsets = [0, 0], sizes = [2, 64], strides = [1, 1]} : vector<2x192xf32> to vector<2x64xf32>
    %172 = vector.extract_strided_slice %170 {offsets = [0, 64], sizes = [2, 64], strides = [1, 1]} : vector<2x192xf32> to vector<2x64xf32>
    %173 = vector.extract_strided_slice %170 {offsets = [0, 128], sizes = [2, 64], strides = [1, 1]} : vector<2x192xf32> to vector<2x64xf32>
    %174 = vector.extract_strided_slice %164 {offsets = [0, 192], sizes = [2, 64], strides = [1, 1]} : vector<2x256xf32> to vector<2x64xf32>
    %175 = math.tanh %174 : vector<2x64xf32>
    %176 = arith.mulf %172, %159 : vector<2x64xf32>
    %177 = arith.mulf %171, %175 : vector<2x64xf32>
    %178 = arith.addf %176, %177 : vector<2x64xf32>
    %179 = math.tanh %178 : vector<2x64xf32>
    %180 = arith.mulf %173, %179 : vector<2x64xf32>
    %c18 = arith.constant 18 : index
    %c0_39 = arith.constant 0 : index
    %181 = vector.load %arg17[%c18, %c0_39] : memref<64x256xf32, #tpu.memory_space<vmem>>, vector<2x256xf32>
    %cst_40 = arith.constant dense<0.000000e+00> : vector<2x256xf32>
    %182 = tpu.matmul %180, %7, %cst_40 {dimension_numbers = #tpu.dot_dimension_numbers<[1], [0], [0], [1], [0, 0, 1, 1], [], []>} : vector<2x64xf32>, vector<64x256xf32>, vector<2x256xf32> -> vector<2x256xf32>
    %183 = arith.addf %181, %182 : vector<2x256xf32>
    %184 = vector.extract_strided_slice %183 {offsets = [0, 0], sizes = [2, 192], strides = [1, 1]} : vector<2x256xf32> to vector<2x192xf32>
    %185 = arith.negf %184 : vector<2x192xf32>
    %186 = math.exp %185 : vector<2x192xf32>
    %cst_41 = arith.constant 1.000000e+00 : f32
    %187 = vector.broadcast %cst_41 : f32 to vector<2x192xf32>
    %188 = arith.addf %187, %186 : vector<2x192xf32>
    %189 = arith.divf %187, %188 : vector<2x192xf32>
    %190 = vector.extract_strided_slice %189 {offsets = [0, 0], sizes = [2, 64], strides = [1, 1]} : vector<2x192xf32> to vector<2x64xf32>
    %191 = vector.extract_strided_slice %189 {offsets = [0, 64], sizes = [2, 64], strides = [1, 1]} : vector<2x192xf32> to vector<2x64xf32>
    %192 = vector.extract_strided_slice %189 {offsets = [0, 128], sizes = [2, 64], strides = [1, 1]} : vector<2x192xf32> to vector<2x64xf32>
    %193 = vector.extract_strided_slice %183 {offsets = [0, 192], sizes = [2, 64], strides = [1, 1]} : vector<2x256xf32> to vector<2x64xf32>
    %194 = math.tanh %193 : vector<2x64xf32>
    %195 = arith.mulf %191, %178 : vector<2x64xf32>
    %196 = arith.mulf %190, %194 : vector<2x64xf32>
    %197 = arith.addf %195, %196 : vector<2x64xf32>
    %198 = math.tanh %197 : vector<2x64xf32>
    %199 = arith.mulf %192, %198 : vector<2x64xf32>
    %c20 = arith.constant 20 : index
    %c0_42 = arith.constant 0 : index
    %200 = vector.load %arg17[%c20, %c0_42] : memref<64x256xf32, #tpu.memory_space<vmem>>, vector<2x256xf32>
    %cst_43 = arith.constant dense<0.000000e+00> : vector<2x256xf32>
    %201 = tpu.matmul %199, %7, %cst_43 {dimension_numbers = #tpu.dot_dimension_numbers<[1], [0], [0], [1], [0, 0, 1, 1], [], []>} : vector<2x64xf32>, vector<64x256xf32>, vector<2x256xf32> -> vector<2x256xf32>
    %202 = arith.addf %200, %201 : vector<2x256xf32>
    %203 = vector.extract_strided_slice %202 {offsets = [0, 0], sizes = [2, 192], strides = [1, 1]} : vector<2x256xf32> to vector<2x192xf32>
    %204 = arith.negf %203 : vector<2x192xf32>
    %205 = math.exp %204 : vector<2x192xf32>
    %cst_44 = arith.constant 1.000000e+00 : f32
    %206 = vector.broadcast %cst_44 : f32 to vector<2x192xf32>
    %207 = arith.addf %206, %205 : vector<2x192xf32>
    %208 = arith.divf %206, %207 : vector<2x192xf32>
    %209 = vector.extract_strided_slice %208 {offsets = [0, 0], sizes = [2, 64], strides = [1, 1]} : vector<2x192xf32> to vector<2x64xf32>
    %210 = vector.extract_strided_slice %208 {offsets = [0, 64], sizes = [2, 64], strides = [1, 1]} : vector<2x192xf32> to vector<2x64xf32>
    %211 = vector.extract_strided_slice %208 {offsets = [0, 128], sizes = [2, 64], strides = [1, 1]} : vector<2x192xf32> to vector<2x64xf32>
    %212 = vector.extract_strided_slice %202 {offsets = [0, 192], sizes = [2, 64], strides = [1, 1]} : vector<2x256xf32> to vector<2x64xf32>
    %213 = math.tanh %212 : vector<2x64xf32>
    %214 = arith.mulf %210, %197 : vector<2x64xf32>
    %215 = arith.mulf %209, %213 : vector<2x64xf32>
    %216 = arith.addf %214, %215 : vector<2x64xf32>
    %217 = math.tanh %216 : vector<2x64xf32>
    %218 = arith.mulf %211, %217 : vector<2x64xf32>
    %c22 = arith.constant 22 : index
    %c0_45 = arith.constant 0 : index
    %219 = vector.load %arg17[%c22, %c0_45] : memref<64x256xf32, #tpu.memory_space<vmem>>, vector<2x256xf32>
    %cst_46 = arith.constant dense<0.000000e+00> : vector<2x256xf32>
    %220 = tpu.matmul %218, %7, %cst_46 {dimension_numbers = #tpu.dot_dimension_numbers<[1], [0], [0], [1], [0, 0, 1, 1], [], []>} : vector<2x64xf32>, vector<64x256xf32>, vector<2x256xf32> -> vector<2x256xf32>
    %221 = arith.addf %219, %220 : vector<2x256xf32>
    %222 = vector.extract_strided_slice %221 {offsets = [0, 0], sizes = [2, 192], strides = [1, 1]} : vector<2x256xf32> to vector<2x192xf32>
    %223 = arith.negf %222 : vector<2x192xf32>
    %224 = math.exp %223 : vector<2x192xf32>
    %cst_47 = arith.constant 1.000000e+00 : f32
    %225 = vector.broadcast %cst_47 : f32 to vector<2x192xf32>
    %226 = arith.addf %225, %224 : vector<2x192xf32>
    %227 = arith.divf %225, %226 : vector<2x192xf32>
    %228 = vector.extract_strided_slice %227 {offsets = [0, 0], sizes = [2, 64], strides = [1, 1]} : vector<2x192xf32> to vector<2x64xf32>
    %229 = vector.extract_strided_slice %227 {offsets = [0, 64], sizes = [2, 64], strides = [1, 1]} : vector<2x192xf32> to vector<2x64xf32>
    %230 = vector.extract_strided_slice %227 {offsets = [0, 128], sizes = [2, 64], strides = [1, 1]} : vector<2x192xf32> to vector<2x64xf32>
    %231 = vector.extract_strided_slice %221 {offsets = [0, 192], sizes = [2, 64], strides = [1, 1]} : vector<2x256xf32> to vector<2x64xf32>
    %232 = math.tanh %231 : vector<2x64xf32>
    %233 = arith.mulf %229, %216 : vector<2x64xf32>
    %234 = arith.mulf %228, %232 : vector<2x64xf32>
    %235 = arith.addf %233, %234 : vector<2x64xf32>
    %236 = math.tanh %235 : vector<2x64xf32>
    %237 = arith.mulf %230, %236 : vector<2x64xf32>
    %c24 = arith.constant 24 : index
    %c0_48 = arith.constant 0 : index
    %238 = vector.load %arg17[%c24, %c0_48] : memref<64x256xf32, #tpu.memory_space<vmem>>, vector<2x256xf32>
    %cst_49 = arith.constant dense<0.000000e+00> : vector<2x256xf32>
    %239 = tpu.matmul %237, %7, %cst_49 {dimension_numbers = #tpu.dot_dimension_numbers<[1], [0], [0], [1], [0, 0, 1, 1], [], []>} : vector<2x64xf32>, vector<64x256xf32>, vector<2x256xf32> -> vector<2x256xf32>
    %240 = arith.addf %238, %239 : vector<2x256xf32>
    %241 = vector.extract_strided_slice %240 {offsets = [0, 0], sizes = [2, 192], strides = [1, 1]} : vector<2x256xf32> to vector<2x192xf32>
    %242 = arith.negf %241 : vector<2x192xf32>
    %243 = math.exp %242 : vector<2x192xf32>
    %cst_50 = arith.constant 1.000000e+00 : f32
    %244 = vector.broadcast %cst_50 : f32 to vector<2x192xf32>
    %245 = arith.addf %244, %243 : vector<2x192xf32>
    %246 = arith.divf %244, %245 : vector<2x192xf32>
    %247 = vector.extract_strided_slice %246 {offsets = [0, 0], sizes = [2, 64], strides = [1, 1]} : vector<2x192xf32> to vector<2x64xf32>
    %248 = vector.extract_strided_slice %246 {offsets = [0, 64], sizes = [2, 64], strides = [1, 1]} : vector<2x192xf32> to vector<2x64xf32>
    %249 = vector.extract_strided_slice %246 {offsets = [0, 128], sizes = [2, 64], strides = [1, 1]} : vector<2x192xf32> to vector<2x64xf32>
    %250 = vector.extract_strided_slice %240 {offsets = [0, 192], sizes = [2, 64], strides = [1, 1]} : vector<2x256xf32> to vector<2x64xf32>
    %251 = math.tanh %250 : vector<2x64xf32>
    %252 = arith.mulf %248, %235 : vector<2x64xf32>
    %253 = arith.mulf %247, %251 : vector<2x64xf32>
    %254 = arith.addf %252, %253 : vector<2x64xf32>
    %255 = math.tanh %254 : vector<2x64xf32>
    %256 = arith.mulf %249, %255 : vector<2x64xf32>
    %c26 = arith.constant 26 : index
    %c0_51 = arith.constant 0 : index
    %257 = vector.load %arg17[%c26, %c0_51] : memref<64x256xf32, #tpu.memory_space<vmem>>, vector<2x256xf32>
    %cst_52 = arith.constant dense<0.000000e+00> : vector<2x256xf32>
    %258 = tpu.matmul %256, %7, %cst_52 {dimension_numbers = #tpu.dot_dimension_numbers<[1], [0], [0], [1], [0, 0, 1, 1], [], []>} : vector<2x64xf32>, vector<64x256xf32>, vector<2x256xf32> -> vector<2x256xf32>
    %259 = arith.addf %257, %258 : vector<2x256xf32>
    %260 = vector.extract_strided_slice %259 {offsets = [0, 0], sizes = [2, 192], strides = [1, 1]} : vector<2x256xf32> to vector<2x192xf32>
    %261 = arith.negf %260 : vector<2x192xf32>
    %262 = math.exp %261 : vector<2x192xf32>
    %cst_53 = arith.constant 1.000000e+00 : f32
    %263 = vector.broadcast %cst_53 : f32 to vector<2x192xf32>
    %264 = arith.addf %263, %262 : vector<2x192xf32>
    %265 = arith.divf %263, %264 : vector<2x192xf32>
    %266 = vector.extract_strided_slice %265 {offsets = [0, 0], sizes = [2, 64], strides = [1, 1]} : vector<2x192xf32> to vector<2x64xf32>
    %267 = vector.extract_strided_slice %265 {offsets = [0, 64], sizes = [2, 64], strides = [1, 1]} : vector<2x192xf32> to vector<2x64xf32>
    %268 = vector.extract_strided_slice %265 {offsets = [0, 128], sizes = [2, 64], strides = [1, 1]} : vector<2x192xf32> to vector<2x64xf32>
    %269 = vector.extract_strided_slice %259 {offsets = [0, 192], sizes = [2, 64], strides = [1, 1]} : vector<2x256xf32> to vector<2x64xf32>
    %270 = math.tanh %269 : vector<2x64xf32>
    %271 = arith.mulf %267, %254 : vector<2x64xf32>
    %272 = arith.mulf %266, %270 : vector<2x64xf32>
    %273 = arith.addf %271, %272 : vector<2x64xf32>
    %274 = math.tanh %273 : vector<2x64xf32>
    %275 = arith.mulf %268, %274 : vector<2x64xf32>
    %c28 = arith.constant 28 : index
    %c0_54 = arith.constant 0 : index
    %276 = vector.load %arg17[%c28, %c0_54] : memref<64x256xf32, #tpu.memory_space<vmem>>, vector<2x256xf32>
    %cst_55 = arith.constant dense<0.000000e+00> : vector<2x256xf32>
    %277 = tpu.matmul %275, %7, %cst_55 {dimension_numbers = #tpu.dot_dimension_numbers<[1], [0], [0], [1], [0, 0, 1, 1], [], []>} : vector<2x64xf32>, vector<64x256xf32>, vector<2x256xf32> -> vector<2x256xf32>
    %278 = arith.addf %276, %277 : vector<2x256xf32>
    %279 = vector.extract_strided_slice %278 {offsets = [0, 0], sizes = [2, 192], strides = [1, 1]} : vector<2x256xf32> to vector<2x192xf32>
    %280 = arith.negf %279 : vector<2x192xf32>
    %281 = math.exp %280 : vector<2x192xf32>
    %cst_56 = arith.constant 1.000000e+00 : f32
    %282 = vector.broadcast %cst_56 : f32 to vector<2x192xf32>
    %283 = arith.addf %282, %281 : vector<2x192xf32>
    %284 = arith.divf %282, %283 : vector<2x192xf32>
    %285 = vector.extract_strided_slice %284 {offsets = [0, 0], sizes = [2, 64], strides = [1, 1]} : vector<2x192xf32> to vector<2x64xf32>
    %286 = vector.extract_strided_slice %284 {offsets = [0, 64], sizes = [2, 64], strides = [1, 1]} : vector<2x192xf32> to vector<2x64xf32>
    %287 = vector.extract_strided_slice %284 {offsets = [0, 128], sizes = [2, 64], strides = [1, 1]} : vector<2x192xf32> to vector<2x64xf32>
    %288 = vector.extract_strided_slice %278 {offsets = [0, 192], sizes = [2, 64], strides = [1, 1]} : vector<2x256xf32> to vector<2x64xf32>
    %289 = math.tanh %288 : vector<2x64xf32>
    %290 = arith.mulf %286, %273 : vector<2x64xf32>
    %291 = arith.mulf %285, %289 : vector<2x64xf32>
    %292 = arith.addf %290, %291 : vector<2x64xf32>
    %293 = math.tanh %292 : vector<2x64xf32>
    %294 = arith.mulf %287, %293 : vector<2x64xf32>
    %c30 = arith.constant 30 : index
    %c0_57 = arith.constant 0 : index
    %295 = vector.load %arg17[%c30, %c0_57] : memref<64x256xf32, #tpu.memory_space<vmem>>, vector<2x256xf32>
    %cst_58 = arith.constant dense<0.000000e+00> : vector<2x256xf32>
    %296 = tpu.matmul %294, %7, %cst_58 {dimension_numbers = #tpu.dot_dimension_numbers<[1], [0], [0], [1], [0, 0, 1, 1], [], []>} : vector<2x64xf32>, vector<64x256xf32>, vector<2x256xf32> -> vector<2x256xf32>
    %297 = arith.addf %295, %296 : vector<2x256xf32>
    %298 = vector.extract_strided_slice %297 {offsets = [0, 0], sizes = [2, 192], strides = [1, 1]} : vector<2x256xf32> to vector<2x192xf32>
    %299 = arith.negf %298 : vector<2x192xf32>
    %300 = math.exp %299 : vector<2x192xf32>
    %cst_59 = arith.constant 1.000000e+00 : f32
    %301 = vector.broadcast %cst_59 : f32 to vector<2x192xf32>
    %302 = arith.addf %301, %300 : vector<2x192xf32>
    %303 = arith.divf %301, %302 : vector<2x192xf32>
    %304 = vector.extract_strided_slice %303 {offsets = [0, 0], sizes = [2, 64], strides = [1, 1]} : vector<2x192xf32> to vector<2x64xf32>
    %305 = vector.extract_strided_slice %303 {offsets = [0, 64], sizes = [2, 64], strides = [1, 1]} : vector<2x192xf32> to vector<2x64xf32>
    %306 = vector.extract_strided_slice %303 {offsets = [0, 128], sizes = [2, 64], strides = [1, 1]} : vector<2x192xf32> to vector<2x64xf32>
    %307 = vector.extract_strided_slice %297 {offsets = [0, 192], sizes = [2, 64], strides = [1, 1]} : vector<2x256xf32> to vector<2x64xf32>
    %308 = math.tanh %307 : vector<2x64xf32>
    %309 = arith.mulf %305, %292 : vector<2x64xf32>
    %310 = arith.mulf %304, %308 : vector<2x64xf32>
    %311 = arith.addf %309, %310 : vector<2x64xf32>
    %312 = math.tanh %311 : vector<2x64xf32>
    %313 = arith.mulf %306, %312 : vector<2x64xf32>
    %c32 = arith.constant 32 : index
    %c0_60 = arith.constant 0 : index
    %314 = vector.load %arg17[%c32, %c0_60] : memref<64x256xf32, #tpu.memory_space<vmem>>, vector<2x256xf32>
    %cst_61 = arith.constant dense<0.000000e+00> : vector<2x256xf32>
    %315 = tpu.matmul %313, %7, %cst_61 {dimension_numbers = #tpu.dot_dimension_numbers<[1], [0], [0], [1], [0, 0, 1, 1], [], []>} : vector<2x64xf32>, vector<64x256xf32>, vector<2x256xf32> -> vector<2x256xf32>
    %316 = arith.addf %314, %315 : vector<2x256xf32>
    %317 = vector.extract_strided_slice %316 {offsets = [0, 0], sizes = [2, 192], strides = [1, 1]} : vector<2x256xf32> to vector<2x192xf32>
    %318 = arith.negf %317 : vector<2x192xf32>
    %319 = math.exp %318 : vector<2x192xf32>
    %cst_62 = arith.constant 1.000000e+00 : f32
    %320 = vector.broadcast %cst_62 : f32 to vector<2x192xf32>
    %321 = arith.addf %320, %319 : vector<2x192xf32>
    %322 = arith.divf %320, %321 : vector<2x192xf32>
    %323 = vector.extract_strided_slice %322 {offsets = [0, 0], sizes = [2, 64], strides = [1, 1]} : vector<2x192xf32> to vector<2x64xf32>
    %324 = vector.extract_strided_slice %322 {offsets = [0, 64], sizes = [2, 64], strides = [1, 1]} : vector<2x192xf32> to vector<2x64xf32>
    %325 = vector.extract_strided_slice %322 {offsets = [0, 128], sizes = [2, 64], strides = [1, 1]} : vector<2x192xf32> to vector<2x64xf32>
    %326 = vector.extract_strided_slice %316 {offsets = [0, 192], sizes = [2, 64], strides = [1, 1]} : vector<2x256xf32> to vector<2x64xf32>
    %327 = math.tanh %326 : vector<2x64xf32>
    %328 = arith.mulf %324, %311 : vector<2x64xf32>
    %329 = arith.mulf %323, %327 : vector<2x64xf32>
    %330 = arith.addf %328, %329 : vector<2x64xf32>
    %331 = math.tanh %330 : vector<2x64xf32>
    %332 = arith.mulf %325, %331 : vector<2x64xf32>
    %c34 = arith.constant 34 : index
    %c0_63 = arith.constant 0 : index
    %333 = vector.load %arg17[%c34, %c0_63] : memref<64x256xf32, #tpu.memory_space<vmem>>, vector<2x256xf32>
    %cst_64 = arith.constant dense<0.000000e+00> : vector<2x256xf32>
    %334 = tpu.matmul %332, %7, %cst_64 {dimension_numbers = #tpu.dot_dimension_numbers<[1], [0], [0], [1], [0, 0, 1, 1], [], []>} : vector<2x64xf32>, vector<64x256xf32>, vector<2x256xf32> -> vector<2x256xf32>
    %335 = arith.addf %333, %334 : vector<2x256xf32>
    %336 = vector.extract_strided_slice %335 {offsets = [0, 0], sizes = [2, 192], strides = [1, 1]} : vector<2x256xf32> to vector<2x192xf32>
    %337 = arith.negf %336 : vector<2x192xf32>
    %338 = math.exp %337 : vector<2x192xf32>
    %cst_65 = arith.constant 1.000000e+00 : f32
    %339 = vector.broadcast %cst_65 : f32 to vector<2x192xf32>
    %340 = arith.addf %339, %338 : vector<2x192xf32>
    %341 = arith.divf %339, %340 : vector<2x192xf32>
    %342 = vector.extract_strided_slice %341 {offsets = [0, 0], sizes = [2, 64], strides = [1, 1]} : vector<2x192xf32> to vector<2x64xf32>
    %343 = vector.extract_strided_slice %341 {offsets = [0, 64], sizes = [2, 64], strides = [1, 1]} : vector<2x192xf32> to vector<2x64xf32>
    %344 = vector.extract_strided_slice %341 {offsets = [0, 128], sizes = [2, 64], strides = [1, 1]} : vector<2x192xf32> to vector<2x64xf32>
    %345 = vector.extract_strided_slice %335 {offsets = [0, 192], sizes = [2, 64], strides = [1, 1]} : vector<2x256xf32> to vector<2x64xf32>
    %346 = math.tanh %345 : vector<2x64xf32>
    %347 = arith.mulf %343, %330 : vector<2x64xf32>
    %348 = arith.mulf %342, %346 : vector<2x64xf32>
    %349 = arith.addf %347, %348 : vector<2x64xf32>
    %350 = math.tanh %349 : vector<2x64xf32>
    %351 = arith.mulf %344, %350 : vector<2x64xf32>
    %c36 = arith.constant 36 : index
    %c0_66 = arith.constant 0 : index
    %352 = vector.load %arg17[%c36, %c0_66] : memref<64x256xf32, #tpu.memory_space<vmem>>, vector<2x256xf32>
    %cst_67 = arith.constant dense<0.000000e+00> : vector<2x256xf32>
    %353 = tpu.matmul %351, %7, %cst_67 {dimension_numbers = #tpu.dot_dimension_numbers<[1], [0], [0], [1], [0, 0, 1, 1], [], []>} : vector<2x64xf32>, vector<64x256xf32>, vector<2x256xf32> -> vector<2x256xf32>
    %354 = arith.addf %352, %353 : vector<2x256xf32>
    %355 = vector.extract_strided_slice %354 {offsets = [0, 0], sizes = [2, 192], strides = [1, 1]} : vector<2x256xf32> to vector<2x192xf32>
    %356 = arith.negf %355 : vector<2x192xf32>
    %357 = math.exp %356 : vector<2x192xf32>
    %cst_68 = arith.constant 1.000000e+00 : f32
    %358 = vector.broadcast %cst_68 : f32 to vector<2x192xf32>
    %359 = arith.addf %358, %357 : vector<2x192xf32>
    %360 = arith.divf %358, %359 : vector<2x192xf32>
    %361 = vector.extract_strided_slice %360 {offsets = [0, 0], sizes = [2, 64], strides = [1, 1]} : vector<2x192xf32> to vector<2x64xf32>
    %362 = vector.extract_strided_slice %360 {offsets = [0, 64], sizes = [2, 64], strides = [1, 1]} : vector<2x192xf32> to vector<2x64xf32>
    %363 = vector.extract_strided_slice %360 {offsets = [0, 128], sizes = [2, 64], strides = [1, 1]} : vector<2x192xf32> to vector<2x64xf32>
    %364 = vector.extract_strided_slice %354 {offsets = [0, 192], sizes = [2, 64], strides = [1, 1]} : vector<2x256xf32> to vector<2x64xf32>
    %365 = math.tanh %364 : vector<2x64xf32>
    %366 = arith.mulf %362, %349 : vector<2x64xf32>
    %367 = arith.mulf %361, %365 : vector<2x64xf32>
    %368 = arith.addf %366, %367 : vector<2x64xf32>
    %369 = math.tanh %368 : vector<2x64xf32>
    %370 = arith.mulf %363, %369 : vector<2x64xf32>
    %c38 = arith.constant 38 : index
    %c0_69 = arith.constant 0 : index
    %371 = vector.load %arg17[%c38, %c0_69] : memref<64x256xf32, #tpu.memory_space<vmem>>, vector<2x256xf32>
    %cst_70 = arith.constant dense<0.000000e+00> : vector<2x256xf32>
    %372 = tpu.matmul %370, %7, %cst_70 {dimension_numbers = #tpu.dot_dimension_numbers<[1], [0], [0], [1], [0, 0, 1, 1], [], []>} : vector<2x64xf32>, vector<64x256xf32>, vector<2x256xf32> -> vector<2x256xf32>
    %373 = arith.addf %371, %372 : vector<2x256xf32>
    %374 = vector.extract_strided_slice %373 {offsets = [0, 0], sizes = [2, 192], strides = [1, 1]} : vector<2x256xf32> to vector<2x192xf32>
    %375 = arith.negf %374 : vector<2x192xf32>
    %376 = math.exp %375 : vector<2x192xf32>
    %cst_71 = arith.constant 1.000000e+00 : f32
    %377 = vector.broadcast %cst_71 : f32 to vector<2x192xf32>
    %378 = arith.addf %377, %376 : vector<2x192xf32>
    %379 = arith.divf %377, %378 : vector<2x192xf32>
    %380 = vector.extract_strided_slice %379 {offsets = [0, 0], sizes = [2, 64], strides = [1, 1]} : vector<2x192xf32> to vector<2x64xf32>
    %381 = vector.extract_strided_slice %379 {offsets = [0, 64], sizes = [2, 64], strides = [1, 1]} : vector<2x192xf32> to vector<2x64xf32>
    %382 = vector.extract_strided_slice %379 {offsets = [0, 128], sizes = [2, 64], strides = [1, 1]} : vector<2x192xf32> to vector<2x64xf32>
    %383 = vector.extract_strided_slice %373 {offsets = [0, 192], sizes = [2, 64], strides = [1, 1]} : vector<2x256xf32> to vector<2x64xf32>
    %384 = math.tanh %383 : vector<2x64xf32>
    %385 = arith.mulf %381, %368 : vector<2x64xf32>
    %386 = arith.mulf %380, %384 : vector<2x64xf32>
    %387 = arith.addf %385, %386 : vector<2x64xf32>
    %388 = math.tanh %387 : vector<2x64xf32>
    %389 = arith.mulf %382, %388 : vector<2x64xf32>
    %c40 = arith.constant 40 : index
    %c0_72 = arith.constant 0 : index
    %390 = vector.load %arg17[%c40, %c0_72] : memref<64x256xf32, #tpu.memory_space<vmem>>, vector<2x256xf32>
    %cst_73 = arith.constant dense<0.000000e+00> : vector<2x256xf32>
    %391 = tpu.matmul %389, %7, %cst_73 {dimension_numbers = #tpu.dot_dimension_numbers<[1], [0], [0], [1], [0, 0, 1, 1], [], []>} : vector<2x64xf32>, vector<64x256xf32>, vector<2x256xf32> -> vector<2x256xf32>
    %392 = arith.addf %390, %391 : vector<2x256xf32>
    %393 = vector.extract_strided_slice %392 {offsets = [0, 0], sizes = [2, 192], strides = [1, 1]} : vector<2x256xf32> to vector<2x192xf32>
    %394 = arith.negf %393 : vector<2x192xf32>
    %395 = math.exp %394 : vector<2x192xf32>
    %cst_74 = arith.constant 1.000000e+00 : f32
    %396 = vector.broadcast %cst_74 : f32 to vector<2x192xf32>
    %397 = arith.addf %396, %395 : vector<2x192xf32>
    %398 = arith.divf %396, %397 : vector<2x192xf32>
    %399 = vector.extract_strided_slice %398 {offsets = [0, 0], sizes = [2, 64], strides = [1, 1]} : vector<2x192xf32> to vector<2x64xf32>
    %400 = vector.extract_strided_slice %398 {offsets = [0, 64], sizes = [2, 64], strides = [1, 1]} : vector<2x192xf32> to vector<2x64xf32>
    %401 = vector.extract_strided_slice %398 {offsets = [0, 128], sizes = [2, 64], strides = [1, 1]} : vector<2x192xf32> to vector<2x64xf32>
    %402 = vector.extract_strided_slice %392 {offsets = [0, 192], sizes = [2, 64], strides = [1, 1]} : vector<2x256xf32> to vector<2x64xf32>
    %403 = math.tanh %402 : vector<2x64xf32>
    %404 = arith.mulf %400, %387 : vector<2x64xf32>
    %405 = arith.mulf %399, %403 : vector<2x64xf32>
    %406 = arith.addf %404, %405 : vector<2x64xf32>
    %407 = math.tanh %406 : vector<2x64xf32>
    %408 = arith.mulf %401, %407 : vector<2x64xf32>
    %c42 = arith.constant 42 : index
    %c0_75 = arith.constant 0 : index
    %409 = vector.load %arg17[%c42, %c0_75] : memref<64x256xf32, #tpu.memory_space<vmem>>, vector<2x256xf32>
    %cst_76 = arith.constant dense<0.000000e+00> : vector<2x256xf32>
    %410 = tpu.matmul %408, %7, %cst_76 {dimension_numbers = #tpu.dot_dimension_numbers<[1], [0], [0], [1], [0, 0, 1, 1], [], []>} : vector<2x64xf32>, vector<64x256xf32>, vector<2x256xf32> -> vector<2x256xf32>
    %411 = arith.addf %409, %410 : vector<2x256xf32>
    %412 = vector.extract_strided_slice %411 {offsets = [0, 0], sizes = [2, 192], strides = [1, 1]} : vector<2x256xf32> to vector<2x192xf32>
    %413 = arith.negf %412 : vector<2x192xf32>
    %414 = math.exp %413 : vector<2x192xf32>
    %cst_77 = arith.constant 1.000000e+00 : f32
    %415 = vector.broadcast %cst_77 : f32 to vector<2x192xf32>
    %416 = arith.addf %415, %414 : vector<2x192xf32>
    %417 = arith.divf %415, %416 : vector<2x192xf32>
    %418 = vector.extract_strided_slice %417 {offsets = [0, 0], sizes = [2, 64], strides = [1, 1]} : vector<2x192xf32> to vector<2x64xf32>
    %419 = vector.extract_strided_slice %417 {offsets = [0, 64], sizes = [2, 64], strides = [1, 1]} : vector<2x192xf32> to vector<2x64xf32>
    %420 = vector.extract_strided_slice %417 {offsets = [0, 128], sizes = [2, 64], strides = [1, 1]} : vector<2x192xf32> to vector<2x64xf32>
    %421 = vector.extract_strided_slice %411 {offsets = [0, 192], sizes = [2, 64], strides = [1, 1]} : vector<2x256xf32> to vector<2x64xf32>
    %422 = math.tanh %421 : vector<2x64xf32>
    %423 = arith.mulf %419, %406 : vector<2x64xf32>
    %424 = arith.mulf %418, %422 : vector<2x64xf32>
    %425 = arith.addf %423, %424 : vector<2x64xf32>
    %426 = math.tanh %425 : vector<2x64xf32>
    %427 = arith.mulf %420, %426 : vector<2x64xf32>
    %c44 = arith.constant 44 : index
    %c0_78 = arith.constant 0 : index
    %428 = vector.load %arg17[%c44, %c0_78] : memref<64x256xf32, #tpu.memory_space<vmem>>, vector<2x256xf32>
    %cst_79 = arith.constant dense<0.000000e+00> : vector<2x256xf32>
    %429 = tpu.matmul %427, %7, %cst_79 {dimension_numbers = #tpu.dot_dimension_numbers<[1], [0], [0], [1], [0, 0, 1, 1], [], []>} : vector<2x64xf32>, vector<64x256xf32>, vector<2x256xf32> -> vector<2x256xf32>
    %430 = arith.addf %428, %429 : vector<2x256xf32>
    %431 = vector.extract_strided_slice %430 {offsets = [0, 0], sizes = [2, 192], strides = [1, 1]} : vector<2x256xf32> to vector<2x192xf32>
    %432 = arith.negf %431 : vector<2x192xf32>
    %433 = math.exp %432 : vector<2x192xf32>
    %cst_80 = arith.constant 1.000000e+00 : f32
    %434 = vector.broadcast %cst_80 : f32 to vector<2x192xf32>
    %435 = arith.addf %434, %433 : vector<2x192xf32>
    %436 = arith.divf %434, %435 : vector<2x192xf32>
    %437 = vector.extract_strided_slice %436 {offsets = [0, 0], sizes = [2, 64], strides = [1, 1]} : vector<2x192xf32> to vector<2x64xf32>
    %438 = vector.extract_strided_slice %436 {offsets = [0, 64], sizes = [2, 64], strides = [1, 1]} : vector<2x192xf32> to vector<2x64xf32>
    %439 = vector.extract_strided_slice %436 {offsets = [0, 128], sizes = [2, 64], strides = [1, 1]} : vector<2x192xf32> to vector<2x64xf32>
    %440 = vector.extract_strided_slice %430 {offsets = [0, 192], sizes = [2, 64], strides = [1, 1]} : vector<2x256xf32> to vector<2x64xf32>
    %441 = math.tanh %440 : vector<2x64xf32>
    %442 = arith.mulf %438, %425 : vector<2x64xf32>
    %443 = arith.mulf %437, %441 : vector<2x64xf32>
    %444 = arith.addf %442, %443 : vector<2x64xf32>
    %445 = math.tanh %444 : vector<2x64xf32>
    %446 = arith.mulf %439, %445 : vector<2x64xf32>
    %c46 = arith.constant 46 : index
    %c0_81 = arith.constant 0 : index
    %447 = vector.load %arg17[%c46, %c0_81] : memref<64x256xf32, #tpu.memory_space<vmem>>, vector<2x256xf32>
    %cst_82 = arith.constant dense<0.000000e+00> : vector<2x256xf32>
    %448 = tpu.matmul %446, %7, %cst_82 {dimension_numbers = #tpu.dot_dimension_numbers<[1], [0], [0], [1], [0, 0, 1, 1], [], []>} : vector<2x64xf32>, vector<64x256xf32>, vector<2x256xf32> -> vector<2x256xf32>
    %449 = arith.addf %447, %448 : vector<2x256xf32>
    %450 = vector.extract_strided_slice %449 {offsets = [0, 0], sizes = [2, 192], strides = [1, 1]} : vector<2x256xf32> to vector<2x192xf32>
    %451 = arith.negf %450 : vector<2x192xf32>
    %452 = math.exp %451 : vector<2x192xf32>
    %cst_83 = arith.constant 1.000000e+00 : f32
    %453 = vector.broadcast %cst_83 : f32 to vector<2x192xf32>
    %454 = arith.addf %453, %452 : vector<2x192xf32>
    %455 = arith.divf %453, %454 : vector<2x192xf32>
    %456 = vector.extract_strided_slice %455 {offsets = [0, 0], sizes = [2, 64], strides = [1, 1]} : vector<2x192xf32> to vector<2x64xf32>
    %457 = vector.extract_strided_slice %455 {offsets = [0, 64], sizes = [2, 64], strides = [1, 1]} : vector<2x192xf32> to vector<2x64xf32>
    %458 = vector.extract_strided_slice %455 {offsets = [0, 128], sizes = [2, 64], strides = [1, 1]} : vector<2x192xf32> to vector<2x64xf32>
    %459 = vector.extract_strided_slice %449 {offsets = [0, 192], sizes = [2, 64], strides = [1, 1]} : vector<2x256xf32> to vector<2x64xf32>
    %460 = math.tanh %459 : vector<2x64xf32>
    %461 = arith.mulf %457, %444 : vector<2x64xf32>
    %462 = arith.mulf %456, %460 : vector<2x64xf32>
    %463 = arith.addf %461, %462 : vector<2x64xf32>
    %464 = math.tanh %463 : vector<2x64xf32>
    %465 = arith.mulf %458, %464 : vector<2x64xf32>
    %c48 = arith.constant 48 : index
    %c0_84 = arith.constant 0 : index
    %466 = vector.load %arg17[%c48, %c0_84] : memref<64x256xf32, #tpu.memory_space<vmem>>, vector<2x256xf32>
    %cst_85 = arith.constant dense<0.000000e+00> : vector<2x256xf32>
    %467 = tpu.matmul %465, %7, %cst_85 {dimension_numbers = #tpu.dot_dimension_numbers<[1], [0], [0], [1], [0, 0, 1, 1], [], []>} : vector<2x64xf32>, vector<64x256xf32>, vector<2x256xf32> -> vector<2x256xf32>
    %468 = arith.addf %466, %467 : vector<2x256xf32>
    %469 = vector.extract_strided_slice %468 {offsets = [0, 0], sizes = [2, 192], strides = [1, 1]} : vector<2x256xf32> to vector<2x192xf32>
    %470 = arith.negf %469 : vector<2x192xf32>
    %471 = math.exp %470 : vector<2x192xf32>
    %cst_86 = arith.constant 1.000000e+00 : f32
    %472 = vector.broadcast %cst_86 : f32 to vector<2x192xf32>
    %473 = arith.addf %472, %471 : vector<2x192xf32>
    %474 = arith.divf %472, %473 : vector<2x192xf32>
    %475 = vector.extract_strided_slice %474 {offsets = [0, 0], sizes = [2, 64], strides = [1, 1]} : vector<2x192xf32> to vector<2x64xf32>
    %476 = vector.extract_strided_slice %474 {offsets = [0, 64], sizes = [2, 64], strides = [1, 1]} : vector<2x192xf32> to vector<2x64xf32>
    %477 = vector.extract_strided_slice %474 {offsets = [0, 128], sizes = [2, 64], strides = [1, 1]} : vector<2x192xf32> to vector<2x64xf32>
    %478 = vector.extract_strided_slice %468 {offsets = [0, 192], sizes = [2, 64], strides = [1, 1]} : vector<2x256xf32> to vector<2x64xf32>
    %479 = math.tanh %478 : vector<2x64xf32>
    %480 = arith.mulf %476, %463 : vector<2x64xf32>
    %481 = arith.mulf %475, %479 : vector<2x64xf32>
    %482 = arith.addf %480, %481 : vector<2x64xf32>
    %483 = math.tanh %482 : vector<2x64xf32>
    %484 = arith.mulf %477, %483 : vector<2x64xf32>
    %c50 = arith.constant 50 : index
    %c0_87 = arith.constant 0 : index
    %485 = vector.load %arg17[%c50, %c0_87] : memref<64x256xf32, #tpu.memory_space<vmem>>, vector<2x256xf32>
    %cst_88 = arith.constant dense<0.000000e+00> : vector<2x256xf32>
    %486 = tpu.matmul %484, %7, %cst_88 {dimension_numbers = #tpu.dot_dimension_numbers<[1], [0], [0], [1], [0, 0, 1, 1], [], []>} : vector<2x64xf32>, vector<64x256xf32>, vector<2x256xf32> -> vector<2x256xf32>
    %487 = arith.addf %485, %486 : vector<2x256xf32>
    %488 = vector.extract_strided_slice %487 {offsets = [0, 0], sizes = [2, 192], strides = [1, 1]} : vector<2x256xf32> to vector<2x192xf32>
    %489 = arith.negf %488 : vector<2x192xf32>
    %490 = math.exp %489 : vector<2x192xf32>
    %cst_89 = arith.constant 1.000000e+00 : f32
    %491 = vector.broadcast %cst_89 : f32 to vector<2x192xf32>
    %492 = arith.addf %491, %490 : vector<2x192xf32>
    %493 = arith.divf %491, %492 : vector<2x192xf32>
    %494 = vector.extract_strided_slice %493 {offsets = [0, 0], sizes = [2, 64], strides = [1, 1]} : vector<2x192xf32> to vector<2x64xf32>
    %495 = vector.extract_strided_slice %493 {offsets = [0, 64], sizes = [2, 64], strides = [1, 1]} : vector<2x192xf32> to vector<2x64xf32>
    %496 = vector.extract_strided_slice %493 {offsets = [0, 128], sizes = [2, 64], strides = [1, 1]} : vector<2x192xf32> to vector<2x64xf32>
    %497 = vector.extract_strided_slice %487 {offsets = [0, 192], sizes = [2, 64], strides = [1, 1]} : vector<2x256xf32> to vector<2x64xf32>
    %498 = math.tanh %497 : vector<2x64xf32>
    %499 = arith.mulf %495, %482 : vector<2x64xf32>
    %500 = arith.mulf %494, %498 : vector<2x64xf32>
    %501 = arith.addf %499, %500 : vector<2x64xf32>
    %502 = math.tanh %501 : vector<2x64xf32>
    %503 = arith.mulf %496, %502 : vector<2x64xf32>
    %c52 = arith.constant 52 : index
    %c0_90 = arith.constant 0 : index
    %504 = vector.load %arg17[%c52, %c0_90] : memref<64x256xf32, #tpu.memory_space<vmem>>, vector<2x256xf32>
    %cst_91 = arith.constant dense<0.000000e+00> : vector<2x256xf32>
    %505 = tpu.matmul %503, %7, %cst_91 {dimension_numbers = #tpu.dot_dimension_numbers<[1], [0], [0], [1], [0, 0, 1, 1], [], []>} : vector<2x64xf32>, vector<64x256xf32>, vector<2x256xf32> -> vector<2x256xf32>
    %506 = arith.addf %504, %505 : vector<2x256xf32>
    %507 = vector.extract_strided_slice %506 {offsets = [0, 0], sizes = [2, 192], strides = [1, 1]} : vector<2x256xf32> to vector<2x192xf32>
    %508 = arith.negf %507 : vector<2x192xf32>
    %509 = math.exp %508 : vector<2x192xf32>
    %cst_92 = arith.constant 1.000000e+00 : f32
    %510 = vector.broadcast %cst_92 : f32 to vector<2x192xf32>
    %511 = arith.addf %510, %509 : vector<2x192xf32>
    %512 = arith.divf %510, %511 : vector<2x192xf32>
    %513 = vector.extract_strided_slice %512 {offsets = [0, 0], sizes = [2, 64], strides = [1, 1]} : vector<2x192xf32> to vector<2x64xf32>
    %514 = vector.extract_strided_slice %512 {offsets = [0, 64], sizes = [2, 64], strides = [1, 1]} : vector<2x192xf32> to vector<2x64xf32>
    %515 = vector.extract_strided_slice %512 {offsets = [0, 128], sizes = [2, 64], strides = [1, 1]} : vector<2x192xf32> to vector<2x64xf32>
    %516 = vector.extract_strided_slice %506 {offsets = [0, 192], sizes = [2, 64], strides = [1, 1]} : vector<2x256xf32> to vector<2x64xf32>
    %517 = math.tanh %516 : vector<2x64xf32>
    %518 = arith.mulf %514, %501 : vector<2x64xf32>
    %519 = arith.mulf %513, %517 : vector<2x64xf32>
    %520 = arith.addf %518, %519 : vector<2x64xf32>
    %521 = math.tanh %520 : vector<2x64xf32>
    %522 = arith.mulf %515, %521 : vector<2x64xf32>
    %c54 = arith.constant 54 : index
    %c0_93 = arith.constant 0 : index
    %523 = vector.load %arg17[%c54, %c0_93] : memref<64x256xf32, #tpu.memory_space<vmem>>, vector<2x256xf32>
    %cst_94 = arith.constant dense<0.000000e+00> : vector<2x256xf32>
    %524 = tpu.matmul %522, %7, %cst_94 {dimension_numbers = #tpu.dot_dimension_numbers<[1], [0], [0], [1], [0, 0, 1, 1], [], []>} : vector<2x64xf32>, vector<64x256xf32>, vector<2x256xf32> -> vector<2x256xf32>
    %525 = arith.addf %523, %524 : vector<2x256xf32>
    %526 = vector.extract_strided_slice %525 {offsets = [0, 0], sizes = [2, 192], strides = [1, 1]} : vector<2x256xf32> to vector<2x192xf32>
    %527 = arith.negf %526 : vector<2x192xf32>
    %528 = math.exp %527 : vector<2x192xf32>
    %cst_95 = arith.constant 1.000000e+00 : f32
    %529 = vector.broadcast %cst_95 : f32 to vector<2x192xf32>
    %530 = arith.addf %529, %528 : vector<2x192xf32>
    %531 = arith.divf %529, %530 : vector<2x192xf32>
    %532 = vector.extract_strided_slice %531 {offsets = [0, 0], sizes = [2, 64], strides = [1, 1]} : vector<2x192xf32> to vector<2x64xf32>
    %533 = vector.extract_strided_slice %531 {offsets = [0, 64], sizes = [2, 64], strides = [1, 1]} : vector<2x192xf32> to vector<2x64xf32>
    %534 = vector.extract_strided_slice %531 {offsets = [0, 128], sizes = [2, 64], strides = [1, 1]} : vector<2x192xf32> to vector<2x64xf32>
    %535 = vector.extract_strided_slice %525 {offsets = [0, 192], sizes = [2, 64], strides = [1, 1]} : vector<2x256xf32> to vector<2x64xf32>
    %536 = math.tanh %535 : vector<2x64xf32>
    %537 = arith.mulf %533, %520 : vector<2x64xf32>
    %538 = arith.mulf %532, %536 : vector<2x64xf32>
    %539 = arith.addf %537, %538 : vector<2x64xf32>
    %540 = math.tanh %539 : vector<2x64xf32>
    %541 = arith.mulf %534, %540 : vector<2x64xf32>
    %c56 = arith.constant 56 : index
    %c0_96 = arith.constant 0 : index
    %542 = vector.load %arg17[%c56, %c0_96] : memref<64x256xf32, #tpu.memory_space<vmem>>, vector<2x256xf32>
    %cst_97 = arith.constant dense<0.000000e+00> : vector<2x256xf32>
    %543 = tpu.matmul %541, %7, %cst_97 {dimension_numbers = #tpu.dot_dimension_numbers<[1], [0], [0], [1], [0, 0, 1, 1], [], []>} : vector<2x64xf32>, vector<64x256xf32>, vector<2x256xf32> -> vector<2x256xf32>
    %544 = arith.addf %542, %543 : vector<2x256xf32>
    %545 = vector.extract_strided_slice %544 {offsets = [0, 0], sizes = [2, 192], strides = [1, 1]} : vector<2x256xf32> to vector<2x192xf32>
    %546 = arith.negf %545 : vector<2x192xf32>
    %547 = math.exp %546 : vector<2x192xf32>
    %cst_98 = arith.constant 1.000000e+00 : f32
    %548 = vector.broadcast %cst_98 : f32 to vector<2x192xf32>
    %549 = arith.addf %548, %547 : vector<2x192xf32>
    %550 = arith.divf %548, %549 : vector<2x192xf32>
    %551 = vector.extract_strided_slice %550 {offsets = [0, 0], sizes = [2, 64], strides = [1, 1]} : vector<2x192xf32> to vector<2x64xf32>
    %552 = vector.extract_strided_slice %550 {offsets = [0, 64], sizes = [2, 64], strides = [1, 1]} : vector<2x192xf32> to vector<2x64xf32>
    %553 = vector.extract_strided_slice %550 {offsets = [0, 128], sizes = [2, 64], strides = [1, 1]} : vector<2x192xf32> to vector<2x64xf32>
    %554 = vector.extract_strided_slice %544 {offsets = [0, 192], sizes = [2, 64], strides = [1, 1]} : vector<2x256xf32> to vector<2x64xf32>
    %555 = math.tanh %554 : vector<2x64xf32>
    %556 = arith.mulf %552, %539 : vector<2x64xf32>
    %557 = arith.mulf %551, %555 : vector<2x64xf32>
    %558 = arith.addf %556, %557 : vector<2x64xf32>
    %559 = math.tanh %558 : vector<2x64xf32>
    %560 = arith.mulf %553, %559 : vector<2x64xf32>
    %c58 = arith.constant 58 : index
    %c0_99 = arith.constant 0 : index
    %561 = vector.load %arg17[%c58, %c0_99] : memref<64x256xf32, #tpu.memory_space<vmem>>, vector<2x256xf32>
    %cst_100 = arith.constant dense<0.000000e+00> : vector<2x256xf32>
    %562 = tpu.matmul %560, %7, %cst_100 {dimension_numbers = #tpu.dot_dimension_numbers<[1], [0], [0], [1], [0, 0, 1, 1], [], []>} : vector<2x64xf32>, vector<64x256xf32>, vector<2x256xf32> -> vector<2x256xf32>
    %563 = arith.addf %561, %562 : vector<2x256xf32>
    %564 = vector.extract_strided_slice %563 {offsets = [0, 0], sizes = [2, 192], strides = [1, 1]} : vector<2x256xf32> to vector<2x192xf32>
    %565 = arith.negf %564 : vector<2x192xf32>
    %566 = math.exp %565 : vector<2x192xf32>
    %cst_101 = arith.constant 1.000000e+00 : f32
    %567 = vector.broadcast %cst_101 : f32 to vector<2x192xf32>
    %568 = arith.addf %567, %566 : vector<2x192xf32>
    %569 = arith.divf %567, %568 : vector<2x192xf32>
    %570 = vector.extract_strided_slice %569 {offsets = [0, 0], sizes = [2, 64], strides = [1, 1]} : vector<2x192xf32> to vector<2x64xf32>
    %571 = vector.extract_strided_slice %569 {offsets = [0, 64], sizes = [2, 64], strides = [1, 1]} : vector<2x192xf32> to vector<2x64xf32>
    %572 = vector.extract_strided_slice %569 {offsets = [0, 128], sizes = [2, 64], strides = [1, 1]} : vector<2x192xf32> to vector<2x64xf32>
    %573 = vector.extract_strided_slice %563 {offsets = [0, 192], sizes = [2, 64], strides = [1, 1]} : vector<2x256xf32> to vector<2x64xf32>
    %574 = math.tanh %573 : vector<2x64xf32>
    %575 = arith.mulf %571, %558 : vector<2x64xf32>
    %576 = arith.mulf %570, %574 : vector<2x64xf32>
    %577 = arith.addf %575, %576 : vector<2x64xf32>
    %578 = math.tanh %577 : vector<2x64xf32>
    %579 = arith.mulf %572, %578 : vector<2x64xf32>
    %c60 = arith.constant 60 : index
    %c0_102 = arith.constant 0 : index
    %580 = vector.load %arg17[%c60, %c0_102] : memref<64x256xf32, #tpu.memory_space<vmem>>, vector<2x256xf32>
    %cst_103 = arith.constant dense<0.000000e+00> : vector<2x256xf32>
    %581 = tpu.matmul %579, %7, %cst_103 {dimension_numbers = #tpu.dot_dimension_numbers<[1], [0], [0], [1], [0, 0, 1, 1], [], []>} : vector<2x64xf32>, vector<64x256xf32>, vector<2x256xf32> -> vector<2x256xf32>
    %582 = arith.addf %580, %581 : vector<2x256xf32>
    %583 = vector.extract_strided_slice %582 {offsets = [0, 0], sizes = [2, 192], strides = [1, 1]} : vector<2x256xf32> to vector<2x192xf32>
    %584 = arith.negf %583 : vector<2x192xf32>
    %585 = math.exp %584 : vector<2x192xf32>
    %cst_104 = arith.constant 1.000000e+00 : f32
    %586 = vector.broadcast %cst_104 : f32 to vector<2x192xf32>
    %587 = arith.addf %586, %585 : vector<2x192xf32>
    %588 = arith.divf %586, %587 : vector<2x192xf32>
    %589 = vector.extract_strided_slice %588 {offsets = [0, 0], sizes = [2, 64], strides = [1, 1]} : vector<2x192xf32> to vector<2x64xf32>
    %590 = vector.extract_strided_slice %588 {offsets = [0, 64], sizes = [2, 64], strides = [1, 1]} : vector<2x192xf32> to vector<2x64xf32>
    %591 = vector.extract_strided_slice %588 {offsets = [0, 128], sizes = [2, 64], strides = [1, 1]} : vector<2x192xf32> to vector<2x64xf32>
    %592 = vector.extract_strided_slice %582 {offsets = [0, 192], sizes = [2, 64], strides = [1, 1]} : vector<2x256xf32> to vector<2x64xf32>
    %593 = math.tanh %592 : vector<2x64xf32>
    %594 = arith.mulf %590, %577 : vector<2x64xf32>
    %595 = arith.mulf %589, %593 : vector<2x64xf32>
    %596 = arith.addf %594, %595 : vector<2x64xf32>
    %597 = math.tanh %596 : vector<2x64xf32>
    %598 = arith.mulf %591, %597 : vector<2x64xf32>
    %c62 = arith.constant 62 : index
    %c0_105 = arith.constant 0 : index
    %599 = vector.load %arg17[%c62, %c0_105] : memref<64x256xf32, #tpu.memory_space<vmem>>, vector<2x256xf32>
    %cst_106 = arith.constant dense<0.000000e+00> : vector<2x256xf32>
    %600 = tpu.matmul %598, %7, %cst_106 {dimension_numbers = #tpu.dot_dimension_numbers<[1], [0], [0], [1], [0, 0, 1, 1], [], []>} : vector<2x64xf32>, vector<64x256xf32>, vector<2x256xf32> -> vector<2x256xf32>
    %601 = arith.addf %599, %600 : vector<2x256xf32>
    %602 = vector.extract_strided_slice %601 {offsets = [0, 0], sizes = [2, 192], strides = [1, 1]} : vector<2x256xf32> to vector<2x192xf32>
    %603 = arith.negf %602 : vector<2x192xf32>
    %604 = math.exp %603 : vector<2x192xf32>
    %cst_107 = arith.constant 1.000000e+00 : f32
    %605 = vector.broadcast %cst_107 : f32 to vector<2x192xf32>
    %606 = arith.addf %605, %604 : vector<2x192xf32>
    %607 = arith.divf %605, %606 : vector<2x192xf32>
    %608 = vector.extract_strided_slice %607 {offsets = [0, 0], sizes = [2, 64], strides = [1, 1]} : vector<2x192xf32> to vector<2x64xf32>
    %609 = vector.extract_strided_slice %607 {offsets = [0, 64], sizes = [2, 64], strides = [1, 1]} : vector<2x192xf32> to vector<2x64xf32>
    %610 = vector.extract_strided_slice %607 {offsets = [0, 128], sizes = [2, 64], strides = [1, 1]} : vector<2x192xf32> to vector<2x64xf32>
    %611 = vector.extract_strided_slice %601 {offsets = [0, 192], sizes = [2, 64], strides = [1, 1]} : vector<2x256xf32> to vector<2x64xf32>
    %612 = math.tanh %611 : vector<2x64xf32>
    %613 = arith.mulf %609, %596 : vector<2x64xf32>
    %614 = arith.mulf %608, %612 : vector<2x64xf32>
    %615 = arith.addf %613, %614 : vector<2x64xf32>
    %616 = math.tanh %615 : vector<2x64xf32>
    %617 = arith.mulf %610, %616 : vector<2x64xf32>
    %c0_108 = arith.constant 0 : index
    %c0_109 = arith.constant 0 : index
    %618 = vector.load %arg5[%c0_108, %c0_109] : memref<1x14xf32, #tpu.memory_space<vmem>>, vector<1x14xf32>
    %c0_110 = arith.constant 0 : index
    %c0_111 = arith.constant 0 : index
    %619 = vector.load %arg6[%c0_110, %c0_111] : memref<14x64xf32, #tpu.memory_space<vmem>>, vector<14x64xf32>
    %cst_112 = arith.constant dense<0.000000e+00> : vector<1x64xf32>
    %620 = tpu.matmul %618, %619, %cst_112 {dimension_numbers = #tpu.dot_dimension_numbers<[1], [0], [0], [1], [0, 0, 1, 1], [], []>} : vector<1x14xf32>, vector<14x64xf32>, vector<1x64xf32> -> vector<1x64xf32>
    %c0_113 = arith.constant 0 : index
    %c0_114 = arith.constant 0 : index
    %621 = vector.load %arg7[%c0_113, %c0_114] : memref<1x64xf32, #tpu.memory_space<vmem>>, vector<1x64xf32>
    %622 = arith.addf %620, %621 : vector<1x64xf32>
    %623 = vector.extract_strided_slice %617 {offsets = [0, 0], sizes = [1, 32], strides = [1, 1]} : vector<2x64xf32> to vector<1x32xf32>
    %624 = vector.extract_strided_slice %617 {offsets = [0, 32], sizes = [1, 32], strides = [1, 1]} : vector<2x64xf32> to vector<1x32xf32>
    %625 = vector.extract_strided_slice %622 {offsets = [0, 0], sizes = [1, 32], strides = [1, 1]} : vector<1x64xf32> to vector<1x32xf32>
    %626 = vector.extract_strided_slice %617 {offsets = [1, 0], sizes = [1, 32], strides = [1, 1]} : vector<2x64xf32> to vector<1x32xf32>
    %627 = vector.extract_strided_slice %617 {offsets = [1, 32], sizes = [1, 32], strides = [1, 1]} : vector<2x64xf32> to vector<1x32xf32>
    %628 = vector.extract_strided_slice %622 {offsets = [0, 32], sizes = [1, 32], strides = [1, 1]} : vector<1x64xf32> to vector<1x32xf32>
    %629 = tpu.concatenate %623, %624, %625, %626, %627, %628 in 0 : vector<1x32xf32>, vector<1x32xf32>, vector<1x32xf32>, vector<1x32xf32>, vector<1x32xf32>, vector<1x32xf32> -> vector<6x32xf32>
    %c0_115 = arith.constant 0 : index
    %c0_116 = arith.constant 0 : index
    %630 = vector.load %arg8[%c0_115, %c0_116] : memref<32x96xf32, #tpu.memory_space<vmem>>, vector<32x96xf32>
    %cst_117 = arith.constant dense<0.000000e+00> : vector<6x96xf32>
    %631 = tpu.matmul %629, %630, %cst_117 {dimension_numbers = #tpu.dot_dimension_numbers<[1], [0], [0], [1], [0, 0, 1, 1], [], []>} : vector<6x32xf32>, vector<32x96xf32>, vector<6x96xf32> -> vector<6x96xf32>
    %c0_118 = arith.constant 0 : index
    %c0_119 = arith.constant 0 : index
    %632 = vector.load %arg9[%c0_118, %c0_119] : memref<1x96xf32, #tpu.memory_space<vmem>>, vector<1x96xf32>
    %633 = vector.broadcast %632 : vector<1x96xf32> to vector<6x96xf32>
    %634 = arith.addf %631, %633 : vector<6x96xf32>
    %635 = vector.extract_strided_slice %634 {offsets = [0, 0], sizes = [6, 32], strides = [1, 1]} : vector<6x96xf32> to vector<6x32xf32>
    %cst_120 = arith.constant 0.353553385 : f32
    %636 = vector.broadcast %cst_120 : f32 to vector<6x32xf32>
    %637 = arith.mulf %635, %636 : vector<6x32xf32>
    %638 = vector.extract_strided_slice %634 {offsets = [0, 32], sizes = [6, 32], strides = [1, 1]} : vector<6x96xf32> to vector<6x32xf32>
    %639 = vector.extract_strided_slice %634 {offsets = [0, 64], sizes = [6, 32], strides = [1, 1]} : vector<6x96xf32> to vector<6x32xf32>
    %c0_121 = arith.constant 0 : index
    %c0_122 = arith.constant 0 : index
    %640 = vector.load %arg12[%c0_121, %c0_122] : memref<32x4xf32, #tpu.memory_space<vmem>>, vector<32x4xf32>
    %c0_123 = arith.constant 0 : index
    %c0_124 = arith.constant 0 : index
    %641 = vector.load %arg13[%c0_123, %c0_124] : memref<4x32xf32, #tpu.memory_space<vmem>>, vector<4x32xf32>
    %642 = arith.mulf %637, %638 : vector<6x32xf32>
    %cst_125 = arith.constant dense<0.000000e+00> : vector<6x4xf32>
    %643 = tpu.matmul %642, %640, %cst_125 {dimension_numbers = #tpu.dot_dimension_numbers<[1], [0], [0], [1], [0, 0, 1, 1], [], []>} : vector<6x32xf32>, vector<32x4xf32>, vector<6x4xf32> -> vector<6x4xf32>
    %644 = vector.extract_strided_slice %638 {offsets = [3, 0], sizes = [3, 32], strides = [1, 1]} : vector<6x32xf32> to vector<3x32xf32>
    %645 = vector.extract_strided_slice %638 {offsets = [0, 0], sizes = [3, 32], strides = [1, 1]} : vector<6x32xf32> to vector<3x32xf32>
    %646 = tpu.concatenate %644, %645 in 0 : vector<3x32xf32>, vector<3x32xf32> -> vector<6x32xf32>
    %647 = vector.extract_strided_slice %639 {offsets = [3, 0], sizes = [3, 32], strides = [1, 1]} : vector<6x32xf32> to vector<3x32xf32>
    %648 = vector.extract_strided_slice %639 {offsets = [0, 0], sizes = [3, 32], strides = [1, 1]} : vector<6x32xf32> to vector<3x32xf32>
    %649 = tpu.concatenate %647, %648 in 0 : vector<3x32xf32>, vector<3x32xf32> -> vector<6x32xf32>
    %650 = arith.mulf %637, %646 : vector<6x32xf32>
    %cst_126 = arith.constant dense<0.000000e+00> : vector<6x4xf32>
    %651 = tpu.matmul %650, %640, %cst_126 {dimension_numbers = #tpu.dot_dimension_numbers<[1], [0], [0], [1], [0, 0, 1, 1], [], []>} : vector<6x32xf32>, vector<32x4xf32>, vector<6x4xf32> -> vector<6x4xf32>
    %652 = arith.maximumf %643, %651 : vector<6x4xf32>
    %653 = arith.subf %643, %652 : vector<6x4xf32>
    %654 = math.exp %653 : vector<6x4xf32>
    %655 = arith.subf %651, %652 : vector<6x4xf32>
    %656 = math.exp %655 : vector<6x4xf32>
    %657 = arith.addf %654, %656 : vector<6x4xf32>
    %658 = tpu.reciprocal %657 {approx = true} : vector<6x4xf32> -> vector<6x4xf32>
    %659 = arith.mulf %654, %658 : vector<6x4xf32>
    %cst_127 = arith.constant dense<0.000000e+00> : vector<6x32xf32>
    %660 = tpu.matmul %659, %641, %cst_127 {dimension_numbers = #tpu.dot_dimension_numbers<[1], [0], [0], [1], [0, 0, 1, 1], [], []>} : vector<6x4xf32>, vector<4x32xf32>, vector<6x32xf32> -> vector<6x32xf32>
    %661 = arith.mulf %660, %639 : vector<6x32xf32>
    %662 = arith.mulf %656, %658 : vector<6x4xf32>
    %cst_128 = arith.constant dense<0.000000e+00> : vector<6x32xf32>
    %663 = tpu.matmul %662, %641, %cst_128 {dimension_numbers = #tpu.dot_dimension_numbers<[1], [0], [0], [1], [0, 0, 1, 1], [], []>} : vector<6x4xf32>, vector<4x32xf32>, vector<6x32xf32> -> vector<6x32xf32>
    %664 = arith.mulf %663, %649 : vector<6x32xf32>
    %665 = arith.addf %661, %664 : vector<6x32xf32>
    %c0_129 = arith.constant 0 : index
    %c0_130 = arith.constant 0 : index
    %666 = vector.load %arg10[%c0_129, %c0_130] : memref<32x32xf32, #tpu.memory_space<vmem>>, vector<32x32xf32>
    %cst_131 = arith.constant dense<0.000000e+00> : vector<6x32xf32>
    %667 = tpu.matmul %665, %666, %cst_131 {dimension_numbers = #tpu.dot_dimension_numbers<[1], [0], [0], [1], [0, 0, 1, 1], [], []>} : vector<6x32xf32>, vector<32x32xf32>, vector<6x32xf32> -> vector<6x32xf32>
    %c0_132 = arith.constant 0 : index
    %c0_133 = arith.constant 0 : index
    %668 = vector.load %arg11[%c0_132, %c0_133] : memref<1x32xf32, #tpu.memory_space<vmem>>, vector<1x32xf32>
    %669 = vector.broadcast %668 : vector<1x32xf32> to vector<6x32xf32>
    %670 = arith.addf %667, %669 : vector<6x32xf32>
    %c0_134 = arith.constant 0 : index
    %c0_135 = arith.constant 0 : index
    %671 = vector.load %arg14[%c0_134, %c0_135] : memref<32x36xf32, #tpu.memory_space<vmem>>, vector<32x36xf32>
    %cst_136 = arith.constant dense<0.000000e+00> : vector<6x36xf32>
    %672 = tpu.matmul %670, %671, %cst_136 {dimension_numbers = #tpu.dot_dimension_numbers<[1], [0], [0], [1], [0, 0, 1, 1], [], []>} : vector<6x32xf32>, vector<32x36xf32>, vector<6x36xf32> -> vector<6x36xf32>
    %c0_137 = arith.constant 0 : index
    %c0_138 = arith.constant 0 : index
    %673 = vector.load %arg15[%c0_137, %c0_138] : memref<1x6xf32, #tpu.memory_space<vmem>>, vector<1x6xf32>
    %674 = vector.extract_strided_slice %672 {offsets = [0, 0], sizes = [1, 6], strides = [1, 1]} : vector<6x36xf32> to vector<1x6xf32>
    %675 = arith.addf %673, %674 : vector<1x6xf32>
    %676 = vector.extract_strided_slice %672 {offsets = [1, 6], sizes = [1, 6], strides = [1, 1]} : vector<6x36xf32> to vector<1x6xf32>
    %677 = arith.addf %675, %676 : vector<1x6xf32>
    %678 = vector.extract_strided_slice %672 {offsets = [2, 12], sizes = [1, 6], strides = [1, 1]} : vector<6x36xf32> to vector<1x6xf32>
    %679 = arith.addf %677, %678 : vector<1x6xf32>
    %680 = vector.extract_strided_slice %672 {offsets = [3, 18], sizes = [1, 6], strides = [1, 1]} : vector<6x36xf32> to vector<1x6xf32>
    %681 = arith.addf %679, %680 : vector<1x6xf32>
    %682 = vector.extract_strided_slice %672 {offsets = [4, 24], sizes = [1, 6], strides = [1, 1]} : vector<6x36xf32> to vector<1x6xf32>
    %683 = arith.addf %681, %682 : vector<1x6xf32>
    %684 = vector.extract_strided_slice %672 {offsets = [5, 30], sizes = [1, 6], strides = [1, 1]} : vector<6x36xf32> to vector<1x6xf32>
    %685 = arith.addf %683, %684 : vector<1x6xf32>
    %686 = arith.negf %685 : vector<1x6xf32>
    %687 = math.exp %686 : vector<1x6xf32>
    %cst_139 = arith.constant 1.000000e+00 : f32
    %688 = vector.broadcast %cst_139 : f32 to vector<1x6xf32>
    %689 = arith.addf %688, %687 : vector<1x6xf32>
    %690 = arith.divf %688, %689 : vector<1x6xf32>
    %c0_140 = arith.constant 0 : index
    %c0_141 = arith.constant 0 : index
    %691 = vector.load %arg16[%c0_140, %c0_141] : memref<1x6xf32, #tpu.memory_space<vmem>>, vector<1x6xf32>
    tpu.vector_store %arg16[%c0_140, %c0_141], %690 {strides = array<i32>} : memref<1x6xf32, #tpu.memory_space<vmem>>, vector<1x6xf32>,
    return
  }
  func.func @transform_0(%arg0: i32) -> (i32, i32) {
    %c0_i32 = arith.constant 0 : i32
    %c0_i32_0 = arith.constant 0 : i32
    %c0_i32_1 = arith.constant 0 : i32
    return %c0_i32, %c0_i32_0 : i32, i32
  }
  func.func @transform_1(%arg0: i32) -> (i32, i32) {
    %c0_i32 = arith.constant 0 : i32
    %c0_i32_0 = arith.constant 0 : i32
    %c0_i32_1 = arith.constant 0 : i32
    return %c0_i32, %c0_i32_0 : i32, i32
  }
  func.func @transform_2(%arg0: i32) -> (i32, i32) {
    %c0_i32 = arith.constant 0 : i32
    %c0_i32_0 = arith.constant 0 : i32
    %c0_i32_1 = arith.constant 0 : i32
    return %c0_i32, %c0_i32_0 : i32, i32
  }
  func.func @transform_3(%arg0: i32) -> (i32, i32) {
    %c0_i32 = arith.constant 0 : i32
    %c0_i32_0 = arith.constant 0 : i32
    %c0_i32_1 = arith.constant 0 : i32
    return %c0_i32, %c0_i32_0 : i32, i32
  }
  func.func @transform_4(%arg0: i32) -> (i32, i32) {
    %c0_i32 = arith.constant 0 : i32
    %c0_i32_0 = arith.constant 0 : i32
    %c0_i32_1 = arith.constant 0 : i32
    return %c0_i32, %c0_i32_0 : i32, i32
  }
  func.func @transform_5(%arg0: i32) -> (i32, i32) {
    %c0_i32 = arith.constant 0 : i32
    %c0_i32_0 = arith.constant 0 : i32
    %c0_i32_1 = arith.constant 0 : i32
    return %c0_i32, %c0_i32_0 : i32, i32
  }
  func.func @transform_6(%arg0: i32) -> (i32, i32) {
    %c0_i32 = arith.constant 0 : i32
    %c0_i32_0 = arith.constant 0 : i32
    %c0_i32_1 = arith.constant 0 : i32
    return %c0_i32, %c0_i32_0 : i32, i32
  }
  func.func @transform_7(%arg0: i32) -> (i32, i32) {
    %c0_i32 = arith.constant 0 : i32
    %c0_i32_0 = arith.constant 0 : i32
    %c0_i32_1 = arith.constant 0 : i32
    return %c0_i32, %c0_i32_0 : i32, i32
  }
  func.func @transform_8(%arg0: i32) -> (i32, i32) {
    %c0_i32 = arith.constant 0 : i32
    %c0_i32_0 = arith.constant 0 : i32
    %c0_i32_1 = arith.constant 0 : i32
    return %c0_i32, %c0_i32_0 : i32, i32
  }
  func.func @transform_9(%arg0: i32) -> (i32, i32) {
    %c0_i32 = arith.constant 0 : i32
    %c0_i32_0 = arith.constant 0 : i32
    %c0_i32_1 = arith.constant 0 : i32
    return %c0_i32, %c0_i32_0 : i32, i32
  }
  func.func @transform_10(%arg0: i32) -> (i32, i32) {
    %c0_i32 = arith.constant 0 : i32
    %c0_i32_0 = arith.constant 0 : i32
    %c0_i32_1 = arith.constant 0 : i32
    return %c0_i32, %c0_i32_0 : i32, i32
  }
  func.func @transform_11(%arg0: i32) -> (i32, i32) {
    %c0_i32 = arith.constant 0 : i32
    %c0_i32_0 = arith.constant 0 : i32
    %c0_i32_1 = arith.constant 0 : i32
    return %c0_i32, %c0_i32_0 : i32, i32
  }
  func.func @transform_12(%arg0: i32) -> (i32, i32) {
    %c0_i32 = arith.constant 0 : i32
    %c0_i32_0 = arith.constant 0 : i32
    %c0_i32_1 = arith.constant 0 : i32
    return %c0_i32, %c0_i32_0 : i32, i32
  }
  func.func @transform_13(%arg0: i32) -> (i32, i32) {
    %c0_i32 = arith.constant 0 : i32
    %c0_i32_0 = arith.constant 0 : i32
    %c0_i32_1 = arith.constant 0 : i32
    return %c0_i32, %c0_i32_0 : i32, i32
  }
  func.func @transform_14(%arg0: i32) -> (i32, i32) {
    %c0_i32 = arith.constant 0 : i32
    %c0_i32_0 = arith.constant 0 : i32
    %c0_i32_1 = arith.constant 0 : i32
    return %c0_i32, %c0_i32_0 : i32, i32
  }
  func.func @transform_15(%arg0: i32) -> (i32, i32) {
    %c0_i32 = arith.constant 0 : i32
    %c0_i32_0 = arith.constant 0 : i32
    %c0_i32_1 = arith.constant 0 : i32
    return %c0_i32, %c0_i32_0 : i32, i32
  }
}

</mosaic_0001>

<bundles_post_ra>
// kernel: ssdp_forward.1
= control target key start
LH: loop header
LB: loop body
LE: loop exit
PB: predicated region body
PF: predicated region fallthrough
CT: control target
= control target key end

     0   :  { %v5411_v3 = vmov 0.0   ;;  %vm74_vm0 = vcmask 130048   ;;  %v64_v22 = vlaneseq  ;;  %vm246_vm1 = vcmask 523264   ;;  %s5414_s19 = smov 96   ;;  %s5418_s21 = smov 104   ;;  %s6674_s1 = inlined_call_operand.vmem [shape: f32[16,256], index: 1, kind: input, shape index: {}]   ;;  %s6675_s2 = inlined_call_operand.vmem [shape: f32[64,256], index: 2, kind: input, shape index: {}]   ;;  %s6676_s0 = inlined_call_operand.vmem [shape: f32[64,16], index: 0, kind: input, shape index: {}]   ;;  %s6677_s3 = inlined_call_operand.vmem [shape: f32[1,256], index: 3, kind: input, shape index: {}]   ;;  %s6678_s5 = inlined_call_operand.vmem [shape: f32[14,64], index: 5, kind: input, shape index: {}]   ;;  %s6679_s4 = inlined_call_operand.vmem [shape: f32[1,14], index: 4, kind: input, shape index: {}]   ;;  %s6680_s7 = inlined_call_operand.vmem [shape: f32[32,96], index: 7, kind: input, shape index: {}]   ;;  %s6681_s6 = inlined_call_operand.vmem [shape: f32[1,64], index: 6, kind: input, shape index: {}]   ;;  %s6682_s11 = inlined_call_operand.vmem [shape: f32[32,4], index: 11, kind: input, shape index: {}]   ;;  %s6683_s8 = inlined_call_operand.vmem [shape: f32[1,96], index: 8, kind: input, shape index: {}]   ;;  %s6684_s12 = inlined_call_operand.vmem [shape: f32[4,32], index: 12, kind: input, shape index: {}]   ;;  %s6685_s9 = inlined_call_operand.vmem [shape: f32[32,32], index: 9, kind: input, shape index: {}]   ;;  %s6686_s13 = inlined_call_operand.vmem [shape: f32[32,36], index: 13, kind: input, shape index: {}]   ;;  %s6687_s10 = inlined_call_operand.vmem [shape: f32[1,32], index: 10, kind: input, shape index: {}]   ;;  %s6688_s14 = inlined_call_operand.vmem [shape: f32[1,6], index: 14, kind: input, shape index: {}]   ;;  %s6689_s15 = inlined_call_operand.vmem [shape: f32[1,6], index: 15, kind: output, shape index: {}]  }
   0x1   :  { %v61_v0 = vld [vmem:[%s6674_s1 + $0x18] sm:$0xff]  ;;  %v60_v2 = vld [vmem:[%s6674_s1 + $0x10] sm:$0xff]  ;;  %163 = vmatprep.mubr.f32.mxu0 %v5411_v3  ;;  %314 = vmatprep.mubr.f32.mxu1 %v5411_v3  ;;  %v59_v5 = vld [vmem:[%s6674_s1 + $0x8] sm:$0xff]  ;;  %vm3969_vm2 = vcmask 1045504   ;;  %vm5413_vm3 = vmmov 0   ;;  %vm3965_vm4 = vcmask 113664  }
   0x2   :  { %v5507_v1 = vld [vmem:[%s6675_s2 + $0x78] sm:$0xff]  ;;  %127 = vmatprep.subr.mxu0 %v61_v0  ;;  %v5518_v4 = vld [vmem:[%s6675_s2 + $0x70] sm:$0xff]  ;;  %v5526_v6 = vld [vmem:[%s6675_s2 + $0x68] sm:$0xff]  ;;  %v5652_v23 = vshrl.u32 %v64_v22, 7  ;;  %vm4063_vm5 = vcmask 1040384   ;;  %vm4065_vm6 = vcmask 1041408  }
   0x3   :  { %266 = vmatprep.subr.mxu1 %v5507_v1  ;;  %128 = vmatpush1.msra.mxu0 %v60_v2  ;;  %v58_v7 = vld [vmem:[%s6674_s1] sm:$0xff]  ;;  %v5544_v10 = vld [vmem:[%s6675_s2 + $0x58] sm:$0xff]  ;;  %v5549_v11 = vld [vmem:[%s6675_s2 + $0x50] sm:$0xff]  ;;  %vm4067_vm7 = vcmask 1042432   ;;  %vm4069_vm8 = vcmask 1043456   ;;  %vm4071_vm9 = vcmask 1044480  }
   0x4   :  { %267 = vmatpush1.msra.mxu1 %v5518_v4  ;;  %v5535_v8 = vld [vmem:[%s6675_s2 + $0x60] sm:$0xff]  ;;  %129 = vmatprep.subr.mxu0 %v59_v5  ;;  %v5555_v12 = vld [vmem:[%s6675_s2 + $0x48] sm:$0xff]  ;;  %v5568_v14 = vld [vmem:[%s6675_s2 + $0x38] sm:$0xff]  ;;  %v66_v24 = vsub.s32 0, %v5652_v23  ;;  %v70_v26 = vsub.s32 1, %v5652_v23  ;;  %vm4084_vm10 = vcmask 261120  }
   0x5   :  { %v50_v9 = vld [vmem:[%s6676_s0] sm:$0xff]  ;;  %268 = vmatprep.subr.mxu1 %v5526_v6  ;;  %130 = vmatpush1.msra.mxu0 %v58_v7  ;;  %v5575_v15 = vld [vmem:[%s6675_s2 + $0x30] sm:$0xff]  ;;  %v5582_v16 = vld [vmem:[%s6675_s2 + $0x28] sm:$0xff]  ;;  %vm4335_vm11 = vcmask 31744   ;;  %s5419_s22 = smov 110   ;;  %vm4732_vm12 = vcmask 40960  }
   0x6   :  { %269 = vmatpush1.msra.mxu1 %v5535_v8  ;;  %4738 = vmatmul.mubr.msk.f32.vlgmr.msra.gmra.mxu0 %vm74_vm0, %v50_v9  ;;  %v5562_v13 = vld [vmem:[%s6675_s2 + $0x40] sm:$0xff]  ;;  %v5596_v18 = vld [vmem:[%s6675_s2 + $0x18] sm:$0xff]  ;;  %v5603_v19 = vld [vmem:[%s6675_s2 + $0x10] sm:$0xff] }
   0x7   :  { %270 = vmatprep.subr.mxu1 %v5544_v10  ;;  %492 = vmatprep.subr.mxu0 %v5507_v1  ;;  %v5589_v17 = vld [vmem:[%s6675_s2 + $0x20] sm:$0xff]  ;;  %v5610_v20 = vld [vmem:[%s6675_s2 + $0x8] sm:$0xff] }
   0x8   :  { %271 = vmatpush1.msra.mxu1 %v5549_v11  ;;  %493 = vmatpush1.msra.mxu0 %v5518_v4  ;;  %v5617_v21 = vld [vmem:[%s6675_s2] sm:$0xff] }
   0x9   :  { %272 = vmatprep.subr.mxu1 %v5555_v12  ;;  %169 = vmatprep.mubr.f32.mxu0 %v5411_v3  ;;  %v62_v25 = vld [vmem:[%s6677_s3] sm:$0x3]  ;;  %s5412_s3 = smov 64  }
   0xa   :  { %273 = vmatpush1.msra.mxu1 %v5562_v13  ;;  %494 = vmatprep.subr.mxu0 %v5526_v6  ;;  %v5659_v27 = vrot.slane %v62_v25, %v66_v24  ;;  %v5661_v28 = vrot.slane %v62_v25, %v70_v26  ;;  %v51_v25 = vld [vmem:[%s6676_s0 + $0x8] sm:$0xff]  ;;  %v52_v26 = vld [vmem:[%s6676_s0 + $0x10] sm:$0xff] }
   0xb   :  { %274 = vmatprep.subr.mxu1 %v5568_v14  ;;  %495 = vmatpush1.msra.mxu0 %v5535_v8 }
   0xc   :  { %275 = vmatpush1.msra.mxu1 %v5575_v15  ;;  %496 = vmatprep.subr.mxu0 %v5544_v10 }
   0xd   :  { %276 = vmatprep.subr.mxu1 %v5582_v16  ;;  %497 = vmatpush1.msra.mxu0 %v5549_v11 }
   0xe   :  { %277 = vmatpush1.msra.mxu1 %v5589_v17  ;;  %498 = vmatprep.subr.mxu0 %v5555_v12 }
   0xf   :  { %278 = vmatprep.subr.mxu1 %v5596_v18  ;;  %499 = vmatpush1.msra.mxu0 %v5562_v13 }
  0x10   :  { %279 = vmatpush1.msra.mxu1 %v5603_v19  ;;  %500 = vmatprep.subr.mxu0 %v5568_v14 }
  0x11   :  { %280 = vmatprep.subr.mxu1 %v5610_v20  ;;  %501 = vmatpush1.msra.mxu0 %v5575_v15 }
  0x12   :  { %281 = vmatpush1.msra.mxu1 %v5617_v21  ;;  %502 = vmatprep.subr.mxu0 %v5582_v16 }
  0x13   :  { %315 = vmatmul.mubr.f32.vlgmr.msra.gmra.mxu1 %v5411_v3  ;;  %374 = vmatprep.subr.mxu1 %v5507_v1 }
  0x14   :  { %375 = vmatpush1.msra.mxu1 %v5518_v4  ;;  %422 = vmatprep.mubr.f32.mxu1 %v5411_v3 }
  0x15   :  { %376 = vmatprep.subr.mxu1 %v5526_v6  ;;  %503 = vmatpush1.msra.mxu0 %v5589_v17 }
  0x16   :  { %377 = vmatpush1.msra.mxu1 %v5535_v8  ;;  %504 = vmatprep.subr.mxu0 %v5596_v18 }
  0x17   :  { %378 = vmatprep.subr.mxu1 %v5544_v10  ;;  %505 = vmatpush1.msra.mxu0 %v5603_v19 }
  0x18   :  { %379 = vmatpush1.msra.mxu1 %v5549_v11  ;;  %506 = vmatprep.subr.mxu0 %v5610_v20 }
  0x19   :  { %380 = vmatprep.subr.mxu1 %v5555_v12  ;;  %507 = vmatpush1.msra.mxu0 %v5617_v21 }
  0x1a   :  { %381 = vmatpush1.msra.mxu1 %v5562_v13  ;;  %728 = vmatprep.subr.mxu0 %v5507_v1 }
  0x1b   :  { %382 = vmatprep.subr.mxu1 %v5568_v14  ;;  %4739 = vmatmul.mubr.msk.f32.gmra.mxu0 %vm74_vm0, %v51_v25 }
  0x1c   :  { %383 = vmatpush1.msra.mxu1 %v5575_v15  ;;  %175 = vmatprep.mubr.f32.mxu0 %v5411_v3 }
  0x1d   :  { %384 = vmatprep.subr.mxu1 %v5582_v16 }
  0x1e   :  { %385 = vmatpush1.msra.mxu1 %v5589_v17 }
  0x1f   :  { %386 = vmatprep.subr.mxu1 %v5596_v18  ;;  %4740 = vmatmul.mubr.msk.f32.gmra.mxu0 %vm74_vm0, %v52_v26 }
  0x20   :  { %387 = vmatpush1.msra.mxu1 %v5603_v19  ;;  %181 = vmatprep.mubr.f32.mxu0 %v5411_v3 }
  0x21   :  { %388 = vmatprep.subr.mxu1 %v5610_v20 }
  0x22   :  { %389 = vmatpush1.msra.mxu1 %v5617_v21 }
  0x23   :  { %610 = vmatprep.subr.mxu1 %v5507_v1 }
  0xc6   :  { %v165_v29 = vpop.f32.mrf.mxu0 }
  0xc7   :  { %v166_v30 = vadd.f32 %v165_v29, %v5659_v27  ;;  %v53_v29 = vld [vmem:[%s6676_s0 + $0x18] sm:$0xff] }
  0xc8   :  { %v167_v31 = vpop.f32.mrf.mxu0  ;;  %4741 = vmatmul.mubr.msk.f32.gmra.mxu0 %vm74_vm0, %v53_v29 }
  0xc9   :  { %212 = vst [vmem:[#allocation2 + $0x30] sm:$0xff] %v166_v30  ;;  %v168_v32 = vadd.f32 %v167_v31, %v5661_v28  ;;  %187 = vmatprep.mubr.f32.mxu0 %v5411_v3  ;;  %v54_v30 = vld [vmem:[%s6676_s0 + $0x20] sm:$0xff]  ;;  %v55_v31 = vld [vmem:[%s6676_s0 + $0x28] sm:$0xff] }
  0xcb   :  { %213 = vst [vmem:[#allocation2] sm:$0xff] %v168_v32  ;;  %v56_v32 = vld [vmem:[%s6676_s0 + $0x30] sm:$0xff] }
  0xcc   :  { %4742 = vmatmul.mubr.msk.f32.gmra.mxu0 %vm74_vm0, %v54_v30 }
  0xcd   :  { %193 = vmatprep.mubr.f32.mxu0 %v5411_v3 }
  0xd0   :  { %v244_v38 = vld [vmem:[#allocation2 + $0x30] sm:$0x3]  ;;  %v353_v63 = vld [vmem:[#allocation2 + $0x30] sm:$0xc]  ;;  %4743 = vmatmul.mubr.msk.f32.gmra.mxu0 %vm74_vm0, %v55_v31 }
  0xd1   :  { %199 = vmatprep.mubr.f32.mxu0 %v5411_v3 }
  0xd2   :  { %v245_v34 = vld [vmem:[#allocation2] sm:$0x3]  ;;  %v354_v59 = vld [vmem:[#allocation2] sm:$0xc]  ;;  %v471_v31 = vld [vmem:[#allocation2] sm:$0x30] }
  0xd3   :  { %v316_v33 = vpop.f32.mrf.mxu1 }
  0xd4   :  { %v321_v39 = vadd.f32 %v316_v33, %v244_v38  ;;  %4744 = vmatmul.mubr.msk.f32.gmra.mxu0 %vm74_vm0, %v56_v32  ;;  %v57_v33 = vld [vmem:[%s6676_s0 + $0x38] sm:$0xff] }
  0xd5   :  { %v318_v35 = vpop.f32.mrf.mxu1  ;;  %205 = vmatprep.mubr.f32.mxu0 %v5411_v3 }
  0xd6   :  { %v322_v36 = vadd.f32 %v318_v35, %v245_v34  ;;  %v4746_v40 = vmul.f32 -1.442695, %v321_v39 }
  0xd8   :  { %4969 = vtanh.f32 %v322_v36  ;;  %v4747_v50 = vmul.f32 -1.442695, %v322_v36  ;;  %4745 = vmatmul.mubr.msk.f32.gmra.mxu0 %vm74_vm0, %v57_v33 }
  0xd9   :  { %4971 = vpow2.f32 %v4746_v40  ;;  %540 = vmatprep.mubr.f32.mxu0 %v5411_v3 }
  0xdb   :  { %v171_v39 = vpop.f32.mrf.mxu0 }
  0xdc   :  { %v172_v40 = vadd.f32 %v171_v39, %v5659_v27 }
  0xde   :  { %214 = vst [vmem:[#allocation2 + $0x58] sm:$0xff] %v172_v40 }
  0xe5   :  { %v4970_v37 = vpop.eup %4969 }
  0xe6   :  { %338 = vrot.lane.b32.xlu0 %v4970_v37, %s5412_s3  ;;  %v4972_v41 = vpop.eup %4971 }
  0xe7   :  { %v329_v42 = vadd.f32 1.0, %v4972_v41  ;;  %v173_v41 = vpop.f32.mrf.mxu0 }
  0xe9   :  { %4973 = vrcp.f32 %v329_v42  ;;  %v174_v42 = vadd.f32 %v173_v41, %v5661_v28 }
  0xeb   :  { %215 = vst [vmem:[#allocation2 + $0x18] sm:$0xff] %v174_v42 }
  0xf6   :  { %v4974_v43 = vpop.eup %4973 }
  0xf7   :  { %v336_v46 = vmul.f32 0.0, %v4974_v43 }
 0x158   :  { %v339_v44 = vpop.permute.xlu0 %338 }
 0x159   :  { %v341_v45 = vmul.f32 %v4974_v43, %v339_v44  ;;  %v177_v43 = vpop.f32.mrf.mxu0 }
 0x15a   :  { %v178_v44 = vadd.f32 %v177_v43, %v5659_v27 }
 0x15b   :  { %343 = vrot.lane.b32.xlu0 %v341_v45, %s5412_s3  ;;  %v179_v45 = vpop.f32.mrf.mxu0 }
 0x15c   :  { %216 = vst [vmem:[#allocation2 + $0x50] sm:$0xff] %v178_v44 }
 0x1cd   :  { %v344_v47 = vpop.permute.xlu0 %343 }
 0x1ce   :  { %v5667_v48 = vadd.f32 %v344_v47, %v336_v46  ;;  %v180_v46 = vadd.f32 %v179_v45, %v5661_v28  ;;  %v183_v47 = vpop.f32.mrf.mxu0 }
 0x1d0   :  { %4975 = vtanh.f32 %v5667_v48  ;;  %v451_v34 = vrot.slane %v5667_v48, 6  ;;  %217 = vst [vmem:[#allocation2 + $0x68] sm:$0xff] %v180_v46  ;;  %v184_v48 = vadd.f32 %v183_v47, %v5659_v27 }
 0x1d1   :  { %4977 = vpow2.f32 %v4747_v50 }
 0x1d2   :  { %218 = vst [vmem:[#allocation2 + $0x8] sm:$0xff] %v184_v48 }
 0x1dd   :  { %v4976_v49 = vpop.eup %4975 }
 0x1de   :  { %349 = vrot.lane.b32.xlu1 %v4976_v49, %s5412_s3  ;;  %v4978_v51 = vpop.eup %4977  ;;  %v185_v49 = vpop.f32.mrf.mxu0 }
 0x1df   :  { %v330_v52 = vadd.f32 1.0, %v4978_v51  ;;  %v186_v50 = vadd.f32 %v185_v49, %v5661_v28 }
 0x1e1   :  { %4979 = vrcp.f32 %v330_v52  ;;  %v189_v52 = vpop.f32.mrf.mxu0  ;;  %219 = vst [vmem:[#allocation2 + $0x48] sm:$0xff] %v186_v50 }
 0x1ee   :  { %v4980_v53 = vpop.eup %4979 }
 0x250   :  { %v350_v54 = vpop.permute.xlu1 %349 }
 0x251   :  { %v352_v55 = vmul.f32 %v4980_v53, %v350_v54  ;;  %v190_v53 = vadd.f32 %v189_v52, %v5659_v27  ;;  %v191_v54 = vpop.f32.mrf.mxu0 }
 0x253   :  { %4748 = vmatmul.mubr.msk.f32.vlgmr.msra.gmra.mxu1 %vm246_vm1, %v352_v55  ;;  %220 = vst [vmem:[#allocation2 + $0x40] sm:$0xff] %v190_v53  ;;  %v192_v55 = vadd.f32 %v191_v54, %v5661_v28 }
 0x254   :  { %611 = vmatpush1.msra.mxu1 %v5518_v4  ;;  %658 = vmatprep.mubr.f32.mxu1 %v5411_v3 }
 0x255   :  { %612 = vmatprep.subr.mxu1 %v5526_v6  ;;  %221 = vst [vmem:[#allocation2 + $0x20] sm:$0xff] %v192_v55 }
 0x256   :  { %613 = vmatpush1.msra.mxu1 %v5535_v8 }
 0x257   :  { %614 = vmatprep.subr.mxu1 %v5544_v10 }
 0x258   :  { %615 = vmatpush1.msra.mxu1 %v5549_v11 }
 0x259   :  { %616 = vmatprep.subr.mxu1 %v5555_v12 }
 0x25a   :  { %617 = vmatpush1.msra.mxu1 %v5562_v13 }
 0x25b   :  { %618 = vmatprep.subr.mxu1 %v5568_v14 }
 0x25c   :  { %619 = vmatpush1.msra.mxu1 %v5575_v15 }
 0x25d   :  { %620 = vmatprep.subr.mxu1 %v5582_v16 }
 0x25e   :  { %621 = vmatpush1.msra.mxu1 %v5589_v17 }
 0x25f   :  { %622 = vmatprep.subr.mxu1 %v5596_v18 }
 0x260   :  { %623 = vmatpush1.msra.mxu1 %v5603_v19 }
 0x261   :  { %624 = vmatprep.subr.mxu1 %v5610_v20 }
 0x262   :  { %625 = vmatpush1.msra.mxu1 %v5617_v21 }
 0x263   :  { %839 = vmatprep.subr.mxu1 %v5507_v1 }
 0x313   :  { %v424_v56 = vpop.f32.mrf.mxu1 }
 0x314   :  { %v431_v62 = vrot.slane %v424_v56, 6  ;;  %v195_v56 = vpop.f32.mrf.mxu0 }
 0x315   :  { %v426_v57 = vpop.f32.mrf.mxu1 }
 0x316   :  { %v432_v58 = vrot.slane %v426_v57, 6  ;;  %v435_v0 = vadd.f32 %v431_v62, %v353_v63  ;;  %v196_v57 = vadd.f32 %v195_v56, %v5659_v27 }
 0x318   :  { %v436_v60 = vadd.f32 %v432_v58, %v354_v59  ;;  %v4749_v2 = vmul.f32 -1.442695, %v435_v0  ;;  %v197_v58 = vpop.f32.mrf.mxu0  ;;  %222 = vst [vmem:[#allocation2 + $0x10] sm:$0xff] %v196_v57 }
 0x319   :  { %v198_v59 = vadd.f32 %v197_v58, %v5661_v28  ;;  %v589_v58 = vld [vmem:[#allocation2] sm:$0xc0] }
 0x31a   :  { %4981 = vtanh.f32 %v436_v60  ;;  %v4750_v51 = vmul.f32 -1.442695, %v436_v60 }
 0x31b   :  { %4983 = vpow2.f32 %v4749_v2  ;;  %223 = vst [vmem:[#allocation2 + $0x38] sm:$0xff] %v198_v59 }
 0x327   :  { %v4982_v61 = vpop.eup %4981 }
 0x328   :  { %455 = vrot.lane.b32.xlu1 %v4982_v61, %s5412_s3  ;;  %v4984_v5 = vpop.eup %4983  ;;  %v201_v61 = vpop.f32.mrf.mxu0 }
 0x329   :  { %v443_v7 = vadd.f32 1.0, %v4984_v5  ;;  %v202_v60 = vadd.f32 %v201_v61, %v5659_v27 }
 0x32a   :  { %v203_v62 = vpop.f32.mrf.mxu0 }
 0x32b   :  { %4985 = vrcp.f32 %v443_v7  ;;  %224 = vst [vmem:[#allocation2 + $0x60] sm:$0xff] %v202_v60  ;;  %v204_v63 = vadd.f32 %v203_v62, %v5661_v28  ;;  %v588_v62 = vld [vmem:[#allocation2 + $0x30] sm:$0xc0] }
 0x32c   :  { %v207_v0 = vpop.f32.mrf.mxu0 }
 0x32d   :  { %225 = vst [vmem:[#allocation2 + $0x70] sm:$0xff] %v204_v63  ;;  %v208_v2 = vadd.f32 %v207_v0, %v5659_v27 }
 0x32e   :  { %v209_v5 = vpop.f32.mrf.mxu0 }
 0x32f   :  { %226 = vst [vmem:[#allocation2 + $0x78] sm:$0xff] %v208_v2  ;;  %v210_v7 = vadd.f32 %v209_v5, %v5661_v28 }
 0x331   :  { %227 = vst [vmem:[#allocation2 + $0x28] sm:$0xff] %v210_v7 }
 0x338   :  { %v4986_v9 = vpop.eup %4985 }
 0x339   :  { %v453_v35 = vmul.f32 %v4986_v9, %v451_v34 }
 0x39a   :  { %v456_v22 = vpop.permute.xlu1 %455 }
 0x39b   :  { %v458_v24 = vmul.f32 %v4986_v9, %v456_v22 }
 0x39d   :  { %460 = vrot.lane.b32.xlu0 %v458_v24, %s5412_s3 }
 0x40f   :  { %v461_v36 = vpop.permute.xlu0 %460 }
 0x410   :  { %v5727_v37 = vadd.f32 %v461_v36, %v453_v35  ;;  %v470_v35 = vld [vmem:[#allocation2 + $0x30] sm:$0x30] }
 0x412   :  { %4987 = vtanh.f32 %v5727_v37  ;;  %v569_v44 = vrot.slane %v5727_v37, 6 }
 0x413   :  { %4989 = vpow2.f32 %v4750_v51 }
 0x41f   :  { %v4988_v38 = vpop.eup %4987 }
 0x420   :  { %466 = vrot.lane.b32.xlu1 %v4988_v38, %s5412_s3  ;;  %v4990_v9 = vpop.eup %4989 }
 0x421   :  { %v444_v22 = vadd.f32 1.0, %v4990_v9 }
 0x423   :  { %4991 = vrcp.f32 %v444_v22 }
 0x430   :  { %v4992_v24 = vpop.eup %4991 }
 0x492   :  { %v467_v25 = vpop.permute.xlu1 %466 }
 0x493   :  { %v469_v26 = vmul.f32 %v4992_v24, %v467_v25 }
 0x495   :  { %v473_v29 = vrot.slane %v469_v26, 2 }
 0x497   :  { %4751 = vmatmul.mubr.msk.f32.vlgmr.msra.gmra.mxu0 %vm246_vm1, %v473_v29 }
 0x498   :  { %729 = vmatpush1.msra.mxu0 %v5518_v4  ;;  %776 = vmatprep.mubr.f32.mxu0 %v5411_v3 }
 0x499   :  { %730 = vmatprep.subr.mxu0 %v5526_v6 }
 0x49a   :  { %731 = vmatpush1.msra.mxu0 %v5535_v8 }
 0x49b   :  { %732 = vmatprep.subr.mxu0 %v5544_v10 }
 0x49c   :  { %733 = vmatpush1.msra.mxu0 %v5549_v11 }
 0x49d   :  { %734 = vmatprep.subr.mxu0 %v5555_v12 }
 0x49e   :  { %735 = vmatpush1.msra.mxu0 %v5562_v13 }
 0x49f   :  { %736 = vmatprep.subr.mxu0 %v5568_v14 }
 0x4a0   :  { %737 = vmatpush1.msra.mxu0 %v5575_v15 }
 0x4a1   :  { %738 = vmatprep.subr.mxu0 %v5582_v16 }
 0x4a2   :  { %739 = vmatpush1.msra.mxu0 %v5589_v17 }
 0x4a3   :  { %740 = vmatprep.subr.mxu0 %v5596_v18 }
 0x4a4   :  { %741 = vmatpush1.msra.mxu0 %v5603_v19 }
 0x4a5   :  { %742 = vmatprep.subr.mxu0 %v5610_v20 }
 0x4a6   :  { %743 = vmatpush1.msra.mxu0 %v5617_v21 }
 0x4a7   :  { %957 = vmatprep.subr.mxu0 %v5507_v1 }
 0x557   :  { %v542_v27 = vpop.f32.mrf.mxu0 }
 0x558   :  { %v549_v34 = vrot.slane %v542_v27, 4 }
 0x559   :  { %v544_v28 = vpop.f32.mrf.mxu0 }
 0x55a   :  { %v550_v30 = vrot.slane %v544_v28, 4  ;;  %v553_v36 = vadd.f32 %v549_v34, %v470_v35 }
 0x55c   :  { %v554_v32 = vadd.f32 %v550_v30, %v471_v31  ;;  %v4752_v38 = vmul.f32 -1.442695, %v553_v36 }
 0x55e   :  { %4993 = vtanh.f32 %v554_v32  ;;  %v4753_v49 = vmul.f32 -1.442695, %v554_v32 }
 0x55f   :  { %4995 = vpow2.f32 %v4752_v38  ;;  %v707_v38 = vld [vmem:[#allocation2 + $0x18] sm:$0x3] }
 0x56b   :  { %v4994_v33 = vpop.eup %4993 }
 0x56c   :  { %573 = vrot.lane.b32.xlu0 %v4994_v33, %s5412_s3  ;;  %v4996_v39 = vpop.eup %4995 }
 0x56d   :  { %v561_v40 = vadd.f32 1.0, %v4996_v39 }
 0x56f   :  { %4997 = vrcp.f32 %v561_v40 }
 0x57c   :  { %v4998_v41 = vpop.eup %4997 }
 0x57d   :  { %v571_v45 = vmul.f32 %v4998_v41, %v569_v44 }
 0x5de   :  { %v574_v42 = vpop.permute.xlu0 %573 }
 0x5df   :  { %v576_v43 = vmul.f32 %v4998_v41, %v574_v42  ;;  %v706_v42 = vld [vmem:[#allocation2 + $0x58] sm:$0x3] }
 0x5e1   :  { %578 = vrot.lane.b32.xlu1 %v576_v43, %s5412_s3 }
 0x653   :  { %v579_v46 = vpop.permute.xlu1 %578 }
 0x654   :  { %v581_v47 = vadd.f32 %v579_v46, %v571_v45 }
 0x656   :  { %4999 = vtanh.f32 %v581_v47  ;;  %v687_v24 = vrot.slane %v581_v47, 6 }
 0x657   :  { %5001 = vpow2.f32 %v4753_v49 }
 0x663   :  { %v5000_v48 = vpop.eup %4999 }
 0x664   :  { %584 = vrot.lane.b32.xlu0 %v5000_v48, %s5412_s3  ;;  %v5002_v50 = vpop.eup %5001 }
 0x665   :  { %v562_v51 = vadd.f32 1.0, %v5002_v50 }
 0x667   :  { %5003 = vrcp.f32 %v562_v51 }
 0x674   :  { %v5004_v52 = vpop.eup %5003 }
 0x6d6   :  { %v585_v53 = vpop.permute.xlu0 %584 }
 0x6d7   :  { %v587_v54 = vmul.f32 %v5004_v52, %v585_v53 }
 0x6d9   :  { %v591_v55 = vrot.slane %v587_v54, 4 }
 0x6db   :  { %4754 = vmatmul.mubr.msk.f32.vlgmr.msra.gmra.mxu1 %vm246_vm1, %v591_v55 }
 0x6dc   :  { %840 = vmatpush1.msra.mxu1 %v5518_v4  ;;  %887 = vmatprep.mubr.f32.mxu1 %v5411_v3 }
 0x6dd   :  { %841 = vmatprep.subr.mxu1 %v5526_v6 }
 0x6de   :  { %842 = vmatpush1.msra.mxu1 %v5535_v8 }
 0x6df   :  { %843 = vmatprep.subr.mxu1 %v5544_v10 }
 0x6e0   :  { %844 = vmatpush1.msra.mxu1 %v5549_v11 }
 0x6e1   :  { %845 = vmatprep.subr.mxu1 %v5555_v12 }
 0x6e2   :  { %846 = vmatpush1.msra.mxu1 %v5562_v13 }
 0x6e3   :  { %847 = vmatprep.subr.mxu1 %v5568_v14 }
 0x6e4   :  { %848 = vmatpush1.msra.mxu1 %v5575_v15 }
 0x6e5   :  { %849 = vmatprep.subr.mxu1 %v5582_v16 }
 0x6e6   :  { %850 = vmatpush1.msra.mxu1 %v5589_v17 }
 0x6e7   :  { %851 = vmatprep.subr.mxu1 %v5596_v18 }
 0x6e8   :  { %852 = vmatpush1.msra.mxu1 %v5603_v19 }
 0x6e9   :  { %853 = vmatprep.subr.mxu1 %v5610_v20 }
 0x6ea   :  { %854 = vmatpush1.msra.mxu1 %v5617_v21 }
 0x6eb   :  { %1075 = vmatprep.subr.mxu1 %v5507_v1 }
 0x79b   :  { %v660_v37 = vpop.f32.mrf.mxu1 }
 0x79c   :  { %v667_v60 = vrot.slane %v660_v37, 2 }
 0x79d   :  { %v662_v56 = vpop.f32.mrf.mxu1 }
 0x79e   :  { %v668_v57 = vrot.slane %v662_v56, 2  ;;  %v671_v63 = vadd.f32 %v667_v60, %v588_v62 }
 0x7a0   :  { %v672_v59 = vadd.f32 %v668_v57, %v589_v58  ;;  %v4755_v0 = vmul.f32 -1.442695, %v671_v63  ;;  %v819_v63 = vld [vmem:[#allocation2 + $0x18] sm:$0xc] }
 0x7a2   :  { %5005 = vtanh.f32 %v672_v59  ;;  %v4756_v28 = vmul.f32 -1.442695, %v672_v59 }
 0x7a3   :  { %5007 = vpow2.f32 %v4755_v0 }
 0x7af   :  { %v5006_v61 = vpop.eup %5005 }
 0x7b0   :  { %691 = vrot.lane.b32.xlu1 %v5006_v61, %s5412_s3  ;;  %v5008_v2 = vpop.eup %5007 }
 0x7b1   :  { %v679_v5 = vadd.f32 1.0, %v5008_v2 }
 0x7b3   :  { %5009 = vrcp.f32 %v679_v5 }
 0x7c0   :  { %v5010_v7 = vpop.eup %5009 }
 0x7c1   :  { %v689_v25 = vmul.f32 %v5010_v7, %v687_v24 }
 0x822   :  { %v692_v9 = vpop.permute.xlu1 %691 }
 0x823   :  { %v694_v22 = vmul.f32 %v5010_v7, %v692_v9  ;;  %v818_v7 = vld [vmem:[#allocation2 + $0x58] sm:$0xc] }
 0x825   :  { %696 = vrot.lane.b32.xlu0 %v694_v22, %s5412_s3 }
 0x897   :  { %v697_v26 = vpop.permute.xlu0 %696 }
 0x898   :  { %v699_v29 = vadd.f32 %v697_v26, %v689_v25 }
 0x89a   :  { %5011 = vtanh.f32 %v699_v29  ;;  %v799_v50 = vrot.slane %v699_v29, 6 }
 0x89b   :  { %5013 = vpow2.f32 %v4756_v28 }
 0x8a7   :  { %v5012_v27 = vpop.eup %5011 }
 0x8a8   :  { %702 = vrot.lane.b32.xlu1 %v5012_v27, %s5412_s3  ;;  %v5014_v30 = vpop.eup %5013 }
 0x8a9   :  { %v680_v31 = vadd.f32 1.0, %v5014_v30 }
 0x8ab   :  { %5015 = vrcp.f32 %v680_v31 }
 0x8b8   :  { %v5016_v32 = vpop.eup %5015 }
 0x91a   :  { %v703_v33 = vpop.permute.xlu1 %702 }
 0x91b   :  { %v705_v34 = vmul.f32 %v5016_v32, %v703_v33 }
 0x91d   :  { %v709_v35 = vrot.slane %v705_v34, 6 }
 0x91f   :  { %4757 = vmatmul.mubr.msk.f32.vlgmr.msra.gmra.mxu0 %vm246_vm1, %v709_v35 }
 0x920   :  { %958 = vmatpush1.msra.mxu0 %v5518_v4  ;;  %1005 = vmatprep.mubr.f32.mxu0 %v5411_v3 }
 0x921   :  { %959 = vmatprep.subr.mxu0 %v5526_v6 }
 0x922   :  { %960 = vmatpush1.msra.mxu0 %v5535_v8 }
 0x923   :  { %961 = vmatprep.subr.mxu0 %v5544_v10 }
 0x924   :  { %962 = vmatpush1.msra.mxu0 %v5549_v11 }
 0x925   :  { %963 = vmatprep.subr.mxu0 %v5555_v12 }
 0x926   :  { %964 = vmatpush1.msra.mxu0 %v5562_v13 }
 0x927   :  { %965 = vmatprep.subr.mxu0 %v5568_v14 }
 0x928   :  { %966 = vmatpush1.msra.mxu0 %v5575_v15 }
 0x929   :  { %967 = vmatprep.subr.mxu0 %v5582_v16 }
 0x92a   :  { %968 = vmatpush1.msra.mxu0 %v5589_v17 }
 0x92b   :  { %969 = vmatprep.subr.mxu0 %v5596_v18 }
 0x92c   :  { %970 = vmatpush1.msra.mxu0 %v5603_v19 }
 0x92d   :  { %971 = vmatprep.subr.mxu0 %v5610_v20 }
 0x92e   :  { %972 = vmatpush1.msra.mxu0 %v5617_v21 }
 0x92f   :  { %1193 = vmatprep.subr.mxu0 %v5507_v1 }
 0x9df   :  { %v778_v36 = vpop.f32.mrf.mxu0 }
 0x9e0   :  { %v783_v43 = vadd.f32 %v778_v36, %v706_v42 }
 0x9e1   :  { %v780_v39 = vpop.f32.mrf.mxu0 }
 0x9e2   :  { %v784_v40 = vadd.f32 %v780_v39, %v707_v38  ;;  %v4758_v44 = vmul.f32 -1.442695, %v783_v43 }
 0x9e4   :  { %5017 = vtanh.f32 %v784_v40  ;;  %v4759_v55 = vmul.f32 -1.442695, %v784_v40 }
 0x9e5   :  { %5019 = vpow2.f32 %v4758_v44 }
 0x9f1   :  { %v5018_v41 = vpop.eup %5017 }
 0x9f2   :  { %803 = vrot.lane.b32.xlu0 %v5018_v41, %s5412_s3  ;;  %v5020_v45 = vpop.eup %5019 }
 0x9f3   :  { %v791_v46 = vadd.f32 1.0, %v5020_v45  ;;  %v936_v45 = vld [vmem:[#allocation2 + $0x18] sm:$0x30] }
 0x9f5   :  { %5021 = vrcp.f32 %v791_v46 }
 0xa02   :  { %v5022_v47 = vpop.eup %5021 }
 0xa03   :  { %v801_v51 = vmul.f32 %v5022_v47, %v799_v50 }
 0xa64   :  { %v804_v48 = vpop.permute.xlu0 %803 }
 0xa65   :  { %v806_v49 = vmul.f32 %v5022_v47, %v804_v48 }
 0xa67   :  { %808 = vrot.lane.b32.xlu1 %v806_v49, %s5412_s3  ;;  %v935_v49 = vld [vmem:[#allocation2 + $0x58] sm:$0x30] }
 0xad9   :  { %v809_v52 = vpop.permute.xlu1 %808 }
 0xada   :  { %v811_v53 = vadd.f32 %v809_v52, %v801_v51 }
 0xadc   :  { %5023 = vtanh.f32 %v811_v53  ;;  %v916_v28 = vrot.slane %v811_v53, 6 }
 0xadd   :  { %5025 = vpow2.f32 %v4759_v55 }
 0xae9   :  { %v5024_v54 = vpop.eup %5023 }
 0xaea   :  { %814 = vrot.lane.b32.xlu0 %v5024_v54, %s5412_s3  ;;  %v5026_v37 = vpop.eup %5025 }
 0xaeb   :  { %v792_v56 = vadd.f32 1.0, %v5026_v37 }
 0xaed   :  { %5027 = vrcp.f32 %v792_v56 }
 0xafa   :  { %v5028_v57 = vpop.eup %5027 }
 0xb5c   :  { %v815_v58 = vpop.permute.xlu0 %814 }
 0xb5d   :  { %v817_v59 = vmul.f32 %v5028_v57, %v815_v58 }
 0xb5f   :  { %4760 = vmatmul.mubr.msk.f32.vlgmr.msra.gmra.mxu1 %vm246_vm1, %v817_v59 }
 0xb60   :  { %1076 = vmatpush1.msra.mxu1 %v5518_v4  ;;  %1123 = vmatprep.mubr.f32.mxu1 %v5411_v3 }
 0xb61   :  { %1077 = vmatprep.subr.mxu1 %v5526_v6 }
 0xb62   :  { %1078 = vmatpush1.msra.mxu1 %v5535_v8 }
 0xb63   :  { %1079 = vmatprep.subr.mxu1 %v5544_v10 }
 0xb64   :  { %1080 = vmatpush1.msra.mxu1 %v5549_v11 }
 0xb65   :  { %1081 = vmatprep.subr.mxu1 %v5555_v12 }
 0xb66   :  { %1082 = vmatpush1.msra.mxu1 %v5562_v13 }
 0xb67   :  { %1083 = vmatprep.subr.mxu1 %v5568_v14 }
 0xb68   :  { %1084 = vmatpush1.msra.mxu1 %v5575_v15 }
 0xb69   :  { %1085 = vmatprep.subr.mxu1 %v5582_v16 }
 0xb6a   :  { %1086 = vmatpush1.msra.mxu1 %v5589_v17 }
 0xb6b   :  { %1087 = vmatprep.subr.mxu1 %v5596_v18 }
 0xb6c   :  { %1088 = vmatpush1.msra.mxu1 %v5603_v19 }
 0xb6d   :  { %1089 = vmatprep.subr.mxu1 %v5610_v20 }
 0xb6e   :  { %1090 = vmatpush1.msra.mxu1 %v5617_v21 }
 0xb6f   :  { %1304 = vmatprep.subr.mxu1 %v5507_v1 }
 0xc1f   :  { %v889_v61 = vpop.f32.mrf.mxu1 }
 0xc20   :  { %v896_v5 = vrot.slane %v889_v61, 6 }
 0xc21   :  { %v891_v60 = vpop.f32.mrf.mxu1 }
 0xc22   :  { %v897_v62 = vrot.slane %v891_v60, 6  ;;  %v900_v9 = vadd.f32 %v896_v5, %v818_v7 }
 0xc24   :  { %v901_v0 = vadd.f32 %v897_v62, %v819_v63  ;;  %v4761_v22 = vmul.f32 -1.442695, %v900_v9 }
 0xc26   :  { %5029 = vtanh.f32 %v901_v0  ;;  %v4762_v34 = vmul.f32 -1.442695, %v901_v0 }
 0xc27   :  { %5031 = vpow2.f32 %v4761_v22 }
 0xc33   :  { %v5030_v2 = vpop.eup %5029 }
 0xc34   :  { %920 = vrot.lane.b32.xlu1 %v5030_v2, %s5412_s3  ;;  %v5032_v24 = vpop.eup %5031 }
 0xc35   :  { %v908_v25 = vadd.f32 1.0, %v5032_v24 }
 0xc37   :  { %5033 = vrcp.f32 %v908_v25 }
 0xc44   :  { %v5034_v26 = vpop.eup %5033 }
 0xc45   :  { %v918_v30 = vmul.f32 %v5034_v26, %v916_v28 }
 0xca6   :  { %v921_v29 = vpop.permute.xlu1 %920 }
 0xca7   :  { %v923_v27 = vmul.f32 %v5034_v26, %v921_v29 }
 0xca9   :  { %925 = vrot.lane.b32.xlu0 %v923_v27, %s5412_s3 }
 0xd1b   :  { %v926_v31 = vpop.permute.xlu0 %925 }
 0xd1c   :  { %v928_v32 = vadd.f32 %v926_v31, %v918_v30 }
 0xd1e   :  { %5035 = vtanh.f32 %v928_v32  ;;  %v1034_v37 = vrot.slane %v928_v32, 6 }
 0xd1f   :  { %5037 = vpow2.f32 %v4762_v34  ;;  %v5884_v34 = vld [vmem:[%s6675_s2 + $0x70] sm:$0xff] }
 0xd2b   :  { %v5036_v33 = vpop.eup %5035 }
 0xd2c   :  { %931 = vrot.lane.b32.xlu1 %v5036_v33, %s5412_s3  ;;  %v5038_v35 = vpop.eup %5037 }
 0xd2d   :  { %v909_v36 = vadd.f32 1.0, %v5038_v35  ;;  %v5891_v35 = vld [vmem:[%s6675_s2 + $0x68] sm:$0xff] }
 0xd2f   :  { %5039 = vrcp.f32 %v909_v36  ;;  %v5897_v36 = vld [vmem:[%s6675_s2 + $0x60] sm:$0xff] }
 0xd3c   :  { %v5040_v38 = vpop.eup %5039 }
 0xd9e   :  { %v932_v39 = vpop.permute.xlu1 %931 }
 0xd9f   :  { %v934_v40 = vmul.f32 %v5040_v38, %v932_v39  ;;  %v5903_v38 = vld [vmem:[%s6675_s2 + $0x58] sm:$0xff]  ;;  %v5909_v39 = vld [vmem:[%s6675_s2 + $0x50] sm:$0xff] }
 0xda1   :  { %v938_v41 = vrot.slane %v934_v40, 2  ;;  %v5915_v40 = vld [vmem:[%s6675_s2 + $0x48] sm:$0xff] }
 0xda3   :  { %4763 = vmatmul.mubr.msk.f32.vlgmr.msra.gmra.mxu0 %vm246_vm1, %v938_v41  ;;  %v5921_v41 = vld [vmem:[%s6675_s2 + $0x40] sm:$0xff] }
 0xda4   :  { %1194 = vmatpush1.msra.mxu0 %v5518_v4  ;;  %1241 = vmatprep.mubr.f32.mxu0 %v5411_v3 }
 0xda5   :  { %1195 = vmatprep.subr.mxu0 %v5526_v6 }
 0xda6   :  { %1196 = vmatpush1.msra.mxu0 %v5535_v8 }
 0xda7   :  { %1197 = vmatprep.subr.mxu0 %v5544_v10 }
 0xda8   :  { %1198 = vmatpush1.msra.mxu0 %v5549_v11 }
 0xda9   :  { %1199 = vmatprep.subr.mxu0 %v5555_v12 }
 0xdaa   :  { %1200 = vmatpush1.msra.mxu0 %v5562_v13 }
 0xdab   :  { %1201 = vmatprep.subr.mxu0 %v5568_v14 }
 0xdac   :  { %1202 = vmatpush1.msra.mxu0 %v5575_v15 }
 0xdad   :  { %1203 = vmatprep.subr.mxu0 %v5582_v16 }
 0xdae   :  { %1204 = vmatpush1.msra.mxu0 %v5589_v17 }
 0xdaf   :  { %1205 = vmatprep.subr.mxu0 %v5596_v18 }
 0xdb0   :  { %1206 = vmatpush1.msra.mxu0 %v5603_v19 }
 0xdb1   :  { %1207 = vmatprep.subr.mxu0 %v5610_v20 }
 0xdb2   :  { %1208 = vmatpush1.msra.mxu0 %v5617_v21 }
 0xdb3   :  { %1422 = vmatprep.subr.mxu0 %v5507_v1 }
 0xe63   :  { %v1007_v42 = vpop.f32.mrf.mxu0 }
 0xe64   :  { %v1014_v48 = vrot.slane %v1007_v42, 4  ;;  %v5927_v42 = vld [vmem:[%s6675_s2 + $0x38] sm:$0xff] }
 0xe65   :  { %v1009_v43 = vpop.f32.mrf.mxu0 }
 0xe66   :  { %v1015_v44 = vrot.slane %v1009_v43, 4  ;;  %v1018_v50 = vadd.f32 %v1014_v48, %v935_v49  ;;  %v5933_v43 = vld [vmem:[%s6675_s2 + $0x30] sm:$0xff]  ;;  %v5963_v48 = vld [vmem:[%s6675_s2 + $0x8] sm:$0xff]  ;;  %v5969_v49 = vld [vmem:[%s6675_s2] sm:$0xff] }
 0xe68   :  { %v1019_v46 = vadd.f32 %v1015_v44, %v936_v45  ;;  %v4764_v51 = vmul.f32 -1.442695, %v1018_v50  ;;  %v5939_v44 = vld [vmem:[%s6675_s2 + $0x28] sm:$0xff]  ;;  %v5945_v45 = vld [vmem:[%s6675_s2 + $0x20] sm:$0xff] }
 0xe6a   :  { %5041 = vtanh.f32 %v1019_v46  ;;  %v4765_v61 = vmul.f32 -1.442695, %v1019_v46  ;;  %v5951_v46 = vld [vmem:[%s6675_s2 + $0x18] sm:$0xff] }
 0xe6b   :  { %5043 = vpow2.f32 %v4764_v51  ;;  %v1172_v51 = vld [vmem:[#allocation2 + $0x68] sm:$0x3] }
 0xe77   :  { %v5042_v47 = vpop.eup %5041 }
 0xe78   :  { %1038 = vrot.lane.b32.xlu0 %v5042_v47, %s5412_s3  ;;  %v5044_v52 = vpop.eup %5043  ;;  %v5957_v47 = vld [vmem:[%s6675_s2 + $0x10] sm:$0xff] }
 0xe79   :  { %v1026_v53 = vadd.f32 1.0, %v5044_v52 }
 0xe7b   :  { %5045 = vrcp.f32 %v1026_v53 }
 0xe88   :  { %v5046_v54 = vpop.eup %5045 }
 0xe89   :  { %v1036_v56 = vmul.f32 %v5046_v54, %v1034_v37 }
 0xeea   :  { %v1039_v55 = vpop.permute.xlu0 %1038 }
 0xeeb   :  { %v1041_v1 = vmul.f32 %v5046_v54, %v1039_v55  ;;  %v1171_v55 = vld [vmem:[#allocation2 + $0x50] sm:$0x3] }
 0xeed   :  { %1043 = vrot.lane.b32.xlu1 %v1041_v1, %s5412_s3 }
 0xf5f   :  { %v1044_v57 = vpop.permute.xlu1 %1043 }
 0xf60   :  { %v1046_v58 = vadd.f32 %v1044_v57, %v1036_v56 }
 0xf62   :  { %5047 = vtanh.f32 %v1046_v58  ;;  %v1152_v9 = vrot.slane %v1046_v58, 6 }
 0xf63   :  { %5049 = vpow2.f32 %v4765_v61 }
 0xf6f   :  { %v5048_v59 = vpop.eup %5047 }
 0xf70   :  { %1049 = vrot.lane.b32.xlu0 %v5048_v59, %s5412_s3  ;;  %v5050_v60 = vpop.eup %5049 }
 0xf71   :  { %v1027_v62 = vadd.f32 1.0, %v5050_v60 }
 0xf73   :  { %5051 = vrcp.f32 %v1027_v62 }
 0xf80   :  { %v5052_v63 = vpop.eup %5051 }
 0xfe2   :  { %v1050_v0 = vpop.permute.xlu0 %1049 }
 0xfe3   :  { %v1052_v2 = vmul.f32 %v5052_v63, %v1050_v0 }
 0xfe5   :  { %v1056_v5 = vrot.slane %v1052_v2, 4 }
 0xfe7   :  { %4766 = vmatmul.mubr.msk.f32.vlgmr.msra.gmra.mxu1 %vm246_vm1, %v1056_v5 }
 0xfe8   :  { %1305 = vmatpush1.msra.mxu1 %v5518_v4  ;;  %1352 = vmatprep.mubr.f32.mxu1 %v5411_v3  ;;  %v5871_v4 = vld [vmem:[%s6675_s2 + $0x78] sm:$0xff] }
 0xfe9   :  { %1306 = vmatprep.subr.mxu1 %v5526_v6 }
 0xfea   :  { %1307 = vmatpush1.msra.mxu1 %v5535_v8 }
 0xfeb   :  { %1308 = vmatprep.subr.mxu1 %v5544_v10 }
 0xfec   :  { %1309 = vmatpush1.msra.mxu1 %v5549_v11  ;;  %v1054_v11 = vld [vmem:[#allocation2 + $0x18] sm:$0xc0] }
 0xfed   :  { %1310 = vmatprep.subr.mxu1 %v5555_v12 }
 0xfee   :  { %1311 = vmatpush1.msra.mxu1 %v5562_v13 }
 0xfef   :  { %1312 = vmatprep.subr.mxu1 %v5568_v14 }
 0xff0   :  { %1313 = vmatpush1.msra.mxu1 %v5575_v15  ;;  %v1053_v15 = vld [vmem:[#allocation2 + $0x58] sm:$0xc0] }
 0xff1   :  { %1314 = vmatprep.subr.mxu1 %v5582_v16 }
 0xff2   :  { %1315 = vmatpush1.msra.mxu1 %v5589_v17 }
 0xff3   :  { %1316 = vmatprep.subr.mxu1 %v5596_v18 }
 0xff4   :  { %1317 = vmatpush1.msra.mxu1 %v5603_v19 }
 0xff5   :  { %1318 = vmatprep.subr.mxu1 %v5610_v20 }
 0xff6   :  { %1319 = vmatpush1.msra.mxu1 %v5617_v21 }
 0xff7   :  { %1540 = vmatprep.subr.mxu1 %v5871_v4 }
0x10a7   :  { %v1125_v6 = vpop.f32.mrf.mxu1 }
0x10a8   :  { %v1132_v14 = vrot.slane %v1125_v6, 2 }
0x10a9   :  { %v1127_v8 = vpop.f32.mrf.mxu1 }
0x10aa   :  { %v1133_v10 = vrot.slane %v1127_v8, 2  ;;  %v1136_v16 = vadd.f32 %v1132_v14, %v1053_v15 }
0x10ac   :  { %v1137_v12 = vadd.f32 %v1133_v10, %v1054_v11  ;;  %v4767_v17 = vmul.f32 -1.442695, %v1136_v16  ;;  %v1284_v16 = vld [vmem:[#allocation2 + $0x68] sm:$0xc] }
0x10ae   :  { %5053 = vtanh.f32 %v1137_v12  ;;  %v4768_v29 = vmul.f32 -1.442695, %v1137_v12 }
0x10af   :  { %5055 = vpow2.f32 %v4767_v17 }
0x10bb   :  { %v5054_v13 = vpop.eup %5053 }
0x10bc   :  { %1156 = vrot.lane.b32.xlu1 %v5054_v13, %s5412_s3  ;;  %v5056_v18 = vpop.eup %5055 }
0x10bd   :  { %v1144_v19 = vadd.f32 1.0, %v5056_v18 }
0x10bf   :  { %5057 = vrcp.f32 %v1144_v19 }
0x10cc   :  { %v5058_v20 = vpop.eup %5057 }
0x10cd   :  { %v1154_v22 = vmul.f32 %v5058_v20, %v1152_v9 }
0x112e   :  { %v1157_v21 = vpop.permute.xlu1 %1156 }
0x112f   :  { %v1159_v7 = vmul.f32 %v5058_v20, %v1157_v21  ;;  %v1283_v20 = vld [vmem:[#allocation2 + $0x50] sm:$0xc] }
0x1131   :  { %1161 = vrot.lane.b32.xlu0 %v1159_v7, %s5412_s3 }
0x11a3   :  { %v1162_v24 = vpop.permute.xlu0 %1161 }
0x11a4   :  { %v5876_v25 = vadd.f32 %v1162_v24, %v1154_v22 }
0x11a6   :  { %5059 = vtanh.f32 %v5876_v25  ;;  %v1264_v60 = vrot.slane %v5876_v25, 6 }
0x11a7   :  { %5061 = vpow2.f32 %v4768_v29 }
0x11b3   :  { %v5060_v26 = vpop.eup %5059 }
0x11b4   :  { %1167 = vrot.lane.b32.xlu1 %v5060_v26, %s5412_s3  ;;  %v5062_v27 = vpop.eup %5061 }
0x11b5   :  { %v1145_v28 = vadd.f32 1.0, %v5062_v27 }
0x11b7   :  { %5063 = vrcp.f32 %v1145_v28 }
0x11c4   :  { %v5064_v30 = vpop.eup %5063 }
0x1226   :  { %v1168_v31 = vpop.permute.xlu1 %1167 }
0x1227   :  { %v1170_v32 = vmul.f32 %v5064_v30, %v1168_v31 }
0x1229   :  { %v1174_v33 = vrot.slane %v1170_v32, 6 }
0x122b   :  { %4769 = vmatmul.mubr.msk.f32.vlgmr.msra.gmra.mxu0 %vm246_vm1, %v1174_v33 }
0x122c   :  { %1423 = vmatpush1.msra.mxu0 %v5884_v34  ;;  %1470 = vmatprep.mubr.f32.mxu0 %v5411_v3 }
0x122d   :  { %1424 = vmatprep.subr.mxu0 %v5891_v35 }
0x122e   :  { %1425 = vmatpush1.msra.mxu0 %v5897_v36 }
0x122f   :  { %1426 = vmatprep.subr.mxu0 %v5903_v38 }
0x1230   :  { %1427 = vmatpush1.msra.mxu0 %v5909_v39 }
0x1231   :  { %1428 = vmatprep.subr.mxu0 %v5915_v40 }
0x1232   :  { %1429 = vmatpush1.msra.mxu0 %v5921_v41 }
0x1233   :  { %1430 = vmatprep.subr.mxu0 %v5927_v42 }
0x1234   :  { %1431 = vmatpush1.msra.mxu0 %v5933_v43 }
0x1235   :  { %1432 = vmatprep.subr.mxu0 %v5939_v44 }
0x1236   :  { %1433 = vmatpush1.msra.mxu0 %v5945_v45 }
0x1237   :  { %1434 = vmatprep.subr.mxu0 %v5951_v46 }
0x1238   :  { %1435 = vmatpush1.msra.mxu0 %v5957_v47 }
0x1239   :  { %1436 = vmatprep.subr.mxu0 %v5963_v48 }
0x123a   :  { %1437 = vmatpush1.msra.mxu0 %v5969_v49 }
0x123b   :  { %1658 = vmatprep.subr.mxu0 %v5871_v4 }
0x12eb   :  { %v1243_v50 = vpop.f32.mrf.mxu0 }
0x12ec   :  { %v1248_v1 = vadd.f32 %v1243_v50, %v1171_v55 }
0x12ed   :  { %v1245_v52 = vpop.f32.mrf.mxu0 }
0x12ee   :  { %v1249_v53 = vadd.f32 %v1245_v52, %v1172_v51  ;;  %v4770_v37 = vmul.f32 -1.442695, %v1248_v1 }
0x12f0   :  { %5065 = vtanh.f32 %v1249_v53  ;;  %v4771_v5 = vmul.f32 -1.442695, %v1249_v53 }
0x12f1   :  { %5067 = vpow2.f32 %v4770_v37 }
0x12fd   :  { %v5066_v54 = vpop.eup %5065 }
0x12fe   :  { %1268 = vrot.lane.b32.xlu0 %v5066_v54, %s5412_s3  ;;  %v5068_v56 = vpop.eup %5067 }
0x12ff   :  { %v1256_v57 = vadd.f32 1.0, %v5068_v56  ;;  %v1401_v56 = vld [vmem:[#allocation2 + $0x68] sm:$0x30] }
0x1301   :  { %5069 = vrcp.f32 %v1256_v57 }
0x130e   :  { %v5070_v58 = vpop.eup %5069 }
0x130f   :  { %v1266_v62 = vmul.f32 %v5070_v58, %v1264_v60 }
0x1370   :  { %v1269_v59 = vpop.permute.xlu0 %1268 }
0x1371   :  { %v1271_v61 = vmul.f32 %v5070_v58, %v1269_v59 }
0x1373   :  { %1273 = vrot.lane.b32.xlu1 %v1271_v61, %s5412_s3  ;;  %v1400_v61 = vld [vmem:[#allocation2 + $0x50] sm:$0x30] }
0x13e5   :  { %v1274_v63 = vpop.permute.xlu1 %1273 }
0x13e6   :  { %v1276_v0 = vadd.f32 %v1274_v63, %v1266_v62 }
0x13e8   :  { %5071 = vtanh.f32 %v1276_v0  ;;  %v1381_v29 = vrot.slane %v1276_v0, 6 }
0x13e9   :  { %5073 = vpow2.f32 %v4771_v5 }
0x13f5   :  { %v5072_v2 = vpop.eup %5071 }
0x13f6   :  { %1279 = vrot.lane.b32.xlu0 %v5072_v2, %s5412_s3  ;;  %v5074_v6 = vpop.eup %5073 }
0x13f7   :  { %v1257_v8 = vadd.f32 1.0, %v5074_v6 }
0x13f9   :  { %5075 = vrcp.f32 %v1257_v8 }
0x1406   :  { %v5076_v10 = vpop.eup %5075 }
0x1468   :  { %v1280_v11 = vpop.permute.xlu0 %1279 }
0x1469   :  { %v1282_v12 = vmul.f32 %v5076_v10, %v1280_v11 }
0x146b   :  { %4772 = vmatmul.mubr.msk.f32.vlgmr.msra.gmra.mxu1 %vm246_vm1, %v1282_v12 }
0x146c   :  { %1541 = vmatpush1.msra.mxu1 %v5884_v34  ;;  %1588 = vmatprep.mubr.f32.mxu1 %v5411_v3 }
0x146d   :  { %1542 = vmatprep.subr.mxu1 %v5891_v35 }
0x146e   :  { %1543 = vmatpush1.msra.mxu1 %v5897_v36 }
0x146f   :  { %1544 = vmatprep.subr.mxu1 %v5903_v38 }
0x1470   :  { %1545 = vmatpush1.msra.mxu1 %v5909_v39 }
0x1471   :  { %1546 = vmatprep.subr.mxu1 %v5915_v40 }
0x1472   :  { %1547 = vmatpush1.msra.mxu1 %v5921_v41 }
0x1473   :  { %1548 = vmatprep.subr.mxu1 %v5927_v42 }
0x1474   :  { %1549 = vmatpush1.msra.mxu1 %v5933_v43 }
0x1475   :  { %1550 = vmatprep.subr.mxu1 %v5939_v44 }
0x1476   :  { %1551 = vmatpush1.msra.mxu1 %v5945_v45 }
0x1477   :  { %1552 = vmatprep.subr.mxu1 %v5951_v46 }
0x1478   :  { %1553 = vmatpush1.msra.mxu1 %v5957_v47 }
0x1479   :  { %1554 = vmatprep.subr.mxu1 %v5963_v48 }
0x147a   :  { %1555 = vmatpush1.msra.mxu1 %v5969_v49 }
0x147b   :  { %1769 = vmatprep.subr.mxu1 %v5871_v4 }
0x152b   :  { %v1354_v13 = vpop.f32.mrf.mxu1 }
0x152c   :  { %v1361_v19 = vrot.slane %v1354_v13, 6 }
0x152d   :  { %v1356_v14 = vpop.f32.mrf.mxu1 }
0x152e   :  { %v1362_v15 = vrot.slane %v1356_v14, 6  ;;  %v1365_v21 = vadd.f32 %v1361_v19, %v1283_v20 }
0x1530   :  { %v1366_v17 = vadd.f32 %v1362_v15, %v1284_v16  ;;  %v4773_v7 = vmul.f32 -1.442695, %v1365_v21 }
0x1532   :  { %5077 = vtanh.f32 %v1366_v17  ;;  %v4774_v32 = vmul.f32 -1.442695, %v1366_v17 }
0x1533   :  { %5079 = vpow2.f32 %v4773_v7 }
0x153f   :  { %v5078_v18 = vpop.eup %5077 }
0x1540   :  { %1385 = vrot.lane.b32.xlu1 %v5078_v18, %s5412_s3  ;;  %v5080_v9 = vpop.eup %5079 }
0x1541   :  { %v1373_v22 = vadd.f32 1.0, %v5080_v9 }
0x1543   :  { %5081 = vrcp.f32 %v1373_v22  ;;  %v1519_v22 = vld [vmem:[#allocation2 + $0x68] sm:$0xc0] }
0x1550   :  { %v5082_v24 = vpop.eup %5081 }
0x1551   :  { %v1383_v27 = vmul.f32 %v5082_v24, %v1381_v29  ;;  %v1518_v29 = vld [vmem:[#allocation2 + $0x50] sm:$0xc0] }
0x15b2   :  { %v1386_v25 = vpop.permute.xlu1 %1385 }
0x15b3   :  { %v1388_v26 = vmul.f32 %v5082_v24, %v1386_v25 }
0x15b5   :  { %1390 = vrot.lane.b32.xlu0 %v1388_v26, %s5412_s3 }
0x1627   :  { %v1391_v28 = vpop.permute.xlu0 %1390 }
0x1628   :  { %v1393_v30 = vadd.f32 %v1391_v28, %v1383_v27 }
0x162a   :  { %5083 = vtanh.f32 %v1393_v30  ;;  %v1499_v8 = vrot.slane %v1393_v30, 6 }
0x162b   :  { %5085 = vpow2.f32 %v4774_v32 }
0x1637   :  { %v5084_v31 = vpop.eup %5083 }
0x1638   :  { %1396 = vrot.lane.b32.xlu1 %v5084_v31, %s5412_s3  ;;  %v5086_v33 = vpop.eup %5085 }
0x1639   :  { %v1374_v50 = vadd.f32 1.0, %v5086_v33 }
0x163b   :  { %5087 = vrcp.f32 %v1374_v50 }
0x1648   :  { %v5088_v51 = vpop.eup %5087 }
0x16aa   :  { %v1397_v52 = vpop.permute.xlu1 %1396 }
0x16ab   :  { %v1399_v53 = vmul.f32 %v5088_v51, %v1397_v52 }
0x16ad   :  { %v1403_v54 = vrot.slane %v1399_v53, 2 }
0x16af   :  { %4775 = vmatmul.mubr.msk.f32.vlgmr.msra.gmra.mxu0 %vm246_vm1, %v1403_v54 }
0x16b0   :  { %1659 = vmatpush1.msra.mxu0 %v5884_v34  ;;  %1706 = vmatprep.mubr.f32.mxu0 %v5411_v3 }
0x16b1   :  { %1660 = vmatprep.subr.mxu0 %v5891_v35 }
0x16b2   :  { %1661 = vmatpush1.msra.mxu0 %v5897_v36 }
0x16b3   :  { %1662 = vmatprep.subr.mxu0 %v5903_v38 }
0x16b4   :  { %1663 = vmatpush1.msra.mxu0 %v5909_v39 }
0x16b5   :  { %1664 = vmatprep.subr.mxu0 %v5915_v40 }
0x16b6   :  { %1665 = vmatpush1.msra.mxu0 %v5921_v41 }
0x16b7   :  { %1666 = vmatprep.subr.mxu0 %v5927_v42 }
0x16b8   :  { %1667 = vmatpush1.msra.mxu0 %v5933_v43 }
0x16b9   :  { %1668 = vmatprep.subr.mxu0 %v5939_v44 }
0x16ba   :  { %1669 = vmatpush1.msra.mxu0 %v5945_v45 }
0x16bb   :  { %1670 = vmatprep.subr.mxu0 %v5951_v46 }
0x16bc   :  { %1671 = vmatpush1.msra.mxu0 %v5957_v47 }
0x16bd   :  { %1672 = vmatprep.subr.mxu0 %v5963_v48 }
0x16be   :  { %1673 = vmatpush1.msra.mxu0 %v5969_v49 }
0x16bf   :  { %1887 = vmatprep.subr.mxu0 %v5871_v4 }
0x176f   :  { %v1472_v55 = vpop.f32.mrf.mxu0 }
0x1770   :  { %v1479_v59 = vrot.slane %v1472_v55, 4 }
0x1771   :  { %v1474_v1 = vpop.f32.mrf.mxu0 }
0x1772   :  { %v1480_v37 = vrot.slane %v1474_v1, 4  ;;  %v1483_v60 = vadd.f32 %v1479_v59, %v1400_v61 }
0x1774   :  { %v1484_v57 = vadd.f32 %v1480_v37, %v1401_v56  ;;  %v4776_v62 = vmul.f32 -1.442695, %v1483_v60 }
0x1776   :  { %5089 = vtanh.f32 %v1484_v57  ;;  %v4777_v14 = vmul.f32 -1.442695, %v1484_v57 }
0x1777   :  { %5091 = vpow2.f32 %v4776_v62  ;;  %v1637_v62 = vld [vmem:[#allocation2 + $0x48] sm:$0x3] }
0x1783   :  { %v5090_v58 = vpop.eup %5089 }
0x1784   :  { %1503 = vrot.lane.b32.xlu0 %v5090_v58, %s5412_s3  ;;  %v5092_v63 = vpop.eup %5091 }
0x1785   :  { %v1491_v0 = vadd.f32 1.0, %v5092_v63 }
0x1787   :  { %5093 = vrcp.f32 %v1491_v0 }
0x1794   :  { %v5094_v2 = vpop.eup %5093 }
0x1795   :  { %v1501_v10 = vmul.f32 %v5094_v2, %v1499_v8 }
0x17f6   :  { %v1504_v5 = vpop.permute.xlu0 %1503 }
0x17f7   :  { %v1506_v6 = vmul.f32 %v5094_v2, %v1504_v5  ;;  %v1636_v5 = vld [vmem:[#allocation2 + $0x8] sm:$0x3] }
0x17f9   :  { %1508 = vrot.lane.b32.xlu1 %v1506_v6, %s5412_s3 }
0x186b   :  { %v1509_v11 = vpop.permute.xlu1 %1508 }
0x186c   :  { %v1511_v12 = vadd.f32 %v1509_v11, %v1501_v10 }
0x186e   :  { %5095 = vtanh.f32 %v1511_v12  ;;  %v1617_v51 = vrot.slane %v1511_v12, 6 }
0x186f   :  { %5097 = vpow2.f32 %v4777_v14 }
0x187b   :  { %v5096_v13 = vpop.eup %5095 }
0x187c   :  { %1514 = vrot.lane.b32.xlu0 %v5096_v13, %s5412_s3  ;;  %v5098_v15 = vpop.eup %5097 }
0x187d   :  { %v1492_v16 = vadd.f32 1.0, %v5098_v15 }
0x187f   :  { %5099 = vrcp.f32 %v1492_v16 }
0x188c   :  { %v5100_v17 = vpop.eup %5099 }
0x18ee   :  { %v1515_v18 = vpop.permute.xlu0 %1514 }
0x18ef   :  { %v1517_v19 = vmul.f32 %v5100_v17, %v1515_v18 }
0x18f1   :  { %v1521_v20 = vrot.slane %v1517_v19, 4 }
0x18f3   :  { %4778 = vmatmul.mubr.msk.f32.vlgmr.msra.gmra.mxu1 %vm246_vm1, %v1521_v20 }
0x18f4   :  { %1770 = vmatpush1.msra.mxu1 %v5884_v34  ;;  %1817 = vmatprep.mubr.f32.mxu1 %v5411_v3 }
0x18f5   :  { %1771 = vmatprep.subr.mxu1 %v5891_v35 }
0x18f6   :  { %1772 = vmatpush1.msra.mxu1 %v5897_v36 }
0x18f7   :  { %1773 = vmatprep.subr.mxu1 %v5903_v38 }
0x18f8   :  { %1774 = vmatpush1.msra.mxu1 %v5909_v39 }
0x18f9   :  { %1775 = vmatprep.subr.mxu1 %v5915_v40 }
0x18fa   :  { %1776 = vmatpush1.msra.mxu1 %v5921_v41 }
0x18fb   :  { %1777 = vmatprep.subr.mxu1 %v5927_v42 }
0x18fc   :  { %1778 = vmatpush1.msra.mxu1 %v5933_v43 }
0x18fd   :  { %1779 = vmatprep.subr.mxu1 %v5939_v44 }
0x18fe   :  { %1780 = vmatpush1.msra.mxu1 %v5945_v45 }
0x18ff   :  { %1781 = vmatprep.subr.mxu1 %v5951_v46 }
0x1900   :  { %1782 = vmatpush1.msra.mxu1 %v5957_v47 }
0x1901   :  { %1783 = vmatprep.subr.mxu1 %v5963_v48 }
0x1902   :  { %1784 = vmatpush1.msra.mxu1 %v5969_v49 }
0x1903   :  { %2005 = vmatprep.subr.mxu1 %v5871_v4 }
0x19b3   :  { %v1590_v21 = vpop.f32.mrf.mxu1 }
0x19b4   :  { %v1597_v26 = vrot.slane %v1590_v21, 2 }
0x19b5   :  { %v1592_v7 = vpop.f32.mrf.mxu1 }
0x19b6   :  { %v1598_v9 = vrot.slane %v1592_v7, 2  ;;  %v1601_v27 = vadd.f32 %v1597_v26, %v1518_v29 }
0x19b8   :  { %v1602_v24 = vadd.f32 %v1598_v9, %v1519_v22  ;;  %v4779_v28 = vmul.f32 -1.442695, %v1601_v27  ;;  %v1749_v27 = vld [vmem:[#allocation2 + $0x48] sm:$0xc] }
0x19ba   :  { %5101 = vtanh.f32 %v1602_v24  ;;  %v4780_v1 = vmul.f32 -1.442695, %v1602_v24 }
0x19bb   :  { %5103 = vpow2.f32 %v4779_v28 }
0x19c7   :  { %v5102_v25 = vpop.eup %5101 }
0x19c8   :  { %1621 = vrot.lane.b32.xlu1 %v5102_v25, %s5412_s3  ;;  %v5104_v30 = vpop.eup %5103 }
0x19c9   :  { %v1609_v31 = vadd.f32 1.0, %v5104_v30 }
0x19cb   :  { %5105 = vrcp.f32 %v1609_v31 }
0x19d8   :  { %v5106_v32 = vpop.eup %5105 }
0x19d9   :  { %v1619_v52 = vmul.f32 %v5106_v32, %v1617_v51 }
0x1a3a   :  { %v1622_v33 = vpop.permute.xlu1 %1621 }
0x1a3b   :  { %v1624_v50 = vmul.f32 %v5106_v32, %v1622_v33  ;;  %v1748_v32 = vld [vmem:[#allocation2 + $0x8] sm:$0xc] }
0x1a3d   :  { %1626 = vrot.lane.b32.xlu0 %v1624_v50, %s5412_s3 }
0x1aaf   :  { %v1627_v53 = vpop.permute.xlu0 %1626 }
0x1ab0   :  { %v1629_v54 = vadd.f32 %v1627_v53, %v1619_v52 }
0x1ab2   :  { %5107 = vtanh.f32 %v1629_v54  ;;  %v1729_v15 = vrot.slane %v1629_v54, 6 }
0x1ab3   :  { %5109 = vpow2.f32 %v4780_v1 }
0x1abf   :  { %v5108_v55 = vpop.eup %5107 }
0x1ac0   :  { %1632 = vrot.lane.b32.xlu1 %v5108_v55, %s5412_s3  ;;  %v5110_v37 = vpop.eup %5109 }
0x1ac1   :  { %v1610_v56 = vadd.f32 1.0, %v5110_v37 }
0x1ac3   :  { %5111 = vrcp.f32 %v1610_v56 }
0x1ad0   :  { %v5112_v57 = vpop.eup %5111 }
0x1b32   :  { %v1633_v58 = vpop.permute.xlu1 %1632 }
0x1b33   :  { %v1635_v59 = vmul.f32 %v5112_v57, %v1633_v58 }
0x1b35   :  { %v1639_v61 = vrot.slane %v1635_v59, 6 }
0x1b37   :  { %4781 = vmatmul.mubr.msk.f32.vlgmr.msra.gmra.mxu0 %vm246_vm1, %v1639_v61 }
0x1b38   :  { %1888 = vmatpush1.msra.mxu0 %v5884_v34  ;;  %1935 = vmatprep.mubr.f32.mxu0 %v5411_v3 }
0x1b39   :  { %1889 = vmatprep.subr.mxu0 %v5891_v35 }
0x1b3a   :  { %1890 = vmatpush1.msra.mxu0 %v5897_v36 }
0x1b3b   :  { %1891 = vmatprep.subr.mxu0 %v5903_v38 }
0x1b3c   :  { %1892 = vmatpush1.msra.mxu0 %v5909_v39 }
0x1b3d   :  { %1893 = vmatprep.subr.mxu0 %v5915_v40 }
0x1b3e   :  { %1894 = vmatpush1.msra.mxu0 %v5921_v41 }
0x1b3f   :  { %1895 = vmatprep.subr.mxu0 %v5927_v42 }
0x1b40   :  { %1896 = vmatpush1.msra.mxu0 %v5933_v43 }
0x1b41   :  { %1897 = vmatprep.subr.mxu0 %v5939_v44 }
0x1b42   :  { %1898 = vmatpush1.msra.mxu0 %v5945_v45 }
0x1b43   :  { %1899 = vmatprep.subr.mxu0 %v5951_v46 }
0x1b44   :  { %1900 = vmatpush1.msra.mxu0 %v5957_v47 }
0x1b45   :  { %1901 = vmatprep.subr.mxu0 %v5963_v48 }
0x1b46   :  { %1902 = vmatpush1.msra.mxu0 %v5969_v49 }
0x1b47   :  { %2123 = vmatprep.subr.mxu0 %v5871_v4 }
0x1bf7   :  { %v1708_v60 = vpop.f32.mrf.mxu0 }
0x1bf8   :  { %v1713_v6 = vadd.f32 %v1708_v60, %v1636_v5 }
0x1bf9   :  { %v1710_v63 = vpop.f32.mrf.mxu0 }
0x1bfa   :  { %v1714_v0 = vadd.f32 %v1710_v63, %v1637_v62  ;;  %v4782_v8 = vmul.f32 -1.442695, %v1713_v6 }
0x1bfc   :  { %5113 = vtanh.f32 %v1714_v0  ;;  %v4783_v20 = vmul.f32 -1.442695, %v1714_v0 }
0x1bfd   :  { %5115 = vpow2.f32 %v4782_v8 }
0x1c09   :  { %v5114_v2 = vpop.eup %5113 }
0x1c0a   :  { %1733 = vrot.lane.b32.xlu0 %v5114_v2, %s5412_s3  ;;  %v5116_v10 = vpop.eup %5115 }
0x1c0b   :  { %v1721_v11 = vadd.f32 1.0, %v5116_v10  ;;  %v1866_v10 = vld [vmem:[#allocation2 + $0x48] sm:$0x30] }
0x1c0d   :  { %5117 = vrcp.f32 %v1721_v11 }
0x1c1a   :  { %v5118_v12 = vpop.eup %5117 }
0x1c1b   :  { %v1731_v16 = vmul.f32 %v5118_v12, %v1729_v15 }
0x1c7c   :  { %v1734_v13 = vpop.permute.xlu0 %1733 }
0x1c7d   :  { %v1736_v14 = vmul.f32 %v5118_v12, %v1734_v13 }
0x1c7f   :  { %1738 = vrot.lane.b32.xlu1 %v1736_v14, %s5412_s3  ;;  %v1865_v14 = vld [vmem:[#allocation2 + $0x8] sm:$0x30] }
0x1cf1   :  { %v1739_v17 = vpop.permute.xlu1 %1738 }
0x1cf2   :  { %v1741_v18 = vadd.f32 %v1739_v17, %v1731_v16 }
0x1cf4   :  { %5119 = vtanh.f32 %v1741_v18  ;;  %v1846_v1 = vrot.slane %v1741_v18, 6 }
0x1cf5   :  { %5121 = vpow2.f32 %v4783_v20 }
0x1d01   :  { %v5120_v19 = vpop.eup %5119 }
0x1d02   :  { %1744 = vrot.lane.b32.xlu0 %v5120_v19, %s5412_s3  ;;  %v5122_v21 = vpop.eup %5121 }
0x1d03   :  { %v1722_v7 = vadd.f32 1.0, %v5122_v21 }
0x1d05   :  { %5123 = vrcp.f32 %v1722_v7 }
0x1d12   :  { %v5124_v9 = vpop.eup %5123 }
0x1d74   :  { %v1745_v22 = vpop.permute.xlu0 %1744 }
0x1d75   :  { %v1747_v24 = vmul.f32 %v5124_v9, %v1745_v22 }
0x1d77   :  { %4784 = vmatmul.mubr.msk.f32.vlgmr.msra.gmra.mxu1 %vm246_vm1, %v1747_v24 }
0x1d78   :  { %2006 = vmatpush1.msra.mxu1 %v5884_v34  ;;  %2053 = vmatprep.mubr.f32.mxu1 %v5411_v3 }
0x1d79   :  { %2007 = vmatprep.subr.mxu1 %v5891_v35 }
0x1d7a   :  { %2008 = vmatpush1.msra.mxu1 %v5897_v36 }
0x1d7b   :  { %2009 = vmatprep.subr.mxu1 %v5903_v38 }
0x1d7c   :  { %2010 = vmatpush1.msra.mxu1 %v5909_v39 }
0x1d7d   :  { %2011 = vmatprep.subr.mxu1 %v5915_v40 }
0x1d7e   :  { %2012 = vmatpush1.msra.mxu1 %v5921_v41 }
0x1d7f   :  { %2013 = vmatprep.subr.mxu1 %v5927_v42 }
0x1d80   :  { %2014 = vmatpush1.msra.mxu1 %v5933_v43 }
0x1d81   :  { %2015 = vmatprep.subr.mxu1 %v5939_v44 }
0x1d82   :  { %2016 = vmatpush1.msra.mxu1 %v5945_v45 }
0x1d83   :  { %2017 = vmatprep.subr.mxu1 %v5951_v46 }
0x1d84   :  { %2018 = vmatpush1.msra.mxu1 %v5957_v47 }
0x1d85   :  { %2019 = vmatprep.subr.mxu1 %v5963_v48 }
0x1d86   :  { %2020 = vmatpush1.msra.mxu1 %v5969_v49 }
0x1d87   :  { %2234 = vmatprep.subr.mxu1 %v5871_v4 }
0x1e37   :  { %v1819_v25 = vpop.f32.mrf.mxu1 }
0x1e38   :  { %v1826_v31 = vrot.slane %v1819_v25, 6 }
0x1e39   :  { %v1821_v26 = vpop.f32.mrf.mxu1 }
0x1e3a   :  { %v1827_v29 = vrot.slane %v1821_v26, 6  ;;  %v1830_v33 = vadd.f32 %v1826_v31, %v1748_v32 }
0x1e3c   :  { %v1831_v28 = vadd.f32 %v1827_v29, %v1749_v27  ;;  %v4785_v50 = vmul.f32 -1.442695, %v1830_v33 }
0x1e3e   :  { %5125 = vtanh.f32 %v1831_v28  ;;  %v4786_v59 = vmul.f32 -1.442695, %v1831_v28 }
0x1e3f   :  { %5127 = vpow2.f32 %v4785_v50 }
0x1e4b   :  { %v5126_v30 = vpop.eup %5125 }
0x1e4c   :  { %1850 = vrot.lane.b32.xlu1 %v5126_v30, %s5412_s3  ;;  %v5128_v51 = vpop.eup %5127 }
0x1e4d   :  { %v1838_v52 = vadd.f32 1.0, %v5128_v51 }
0x1e4f   :  { %5129 = vrcp.f32 %v1838_v52  ;;  %v1984_v52 = vld [vmem:[#allocation2 + $0x48] sm:$0xc0] }
0x1e5c   :  { %v5130_v53 = vpop.eup %5129 }
0x1e5d   :  { %v1848_v37 = vmul.f32 %v5130_v53, %v1846_v1  ;;  %v1983_v1 = vld [vmem:[#allocation2 + $0x8] sm:$0xc0] }
0x1ebe   :  { %v1851_v54 = vpop.permute.xlu1 %1850 }
0x1ebf   :  { %v1853_v55 = vmul.f32 %v5130_v53, %v1851_v54 }
0x1ec1   :  { %1855 = vrot.lane.b32.xlu0 %v1853_v55, %s5412_s3 }
0x1f33   :  { %v1856_v56 = vpop.permute.xlu0 %1855 }
0x1f34   :  { %v1858_v57 = vadd.f32 %v1856_v56, %v1848_v37 }
0x1f36   :  { %5131 = vtanh.f32 %v1858_v57  ;;  %v1964_v7 = vrot.slane %v1858_v57, 6 }
0x1f37   :  { %5133 = vpow2.f32 %v4786_v59 }
0x1f43   :  { %v5132_v58 = vpop.eup %5131 }
0x1f44   :  { %1861 = vrot.lane.b32.xlu1 %v5132_v58, %s5412_s3  ;;  %v5134_v61 = vpop.eup %5133 }
0x1f45   :  { %v1839_v60 = vadd.f32 1.0, %v5134_v61 }
0x1f47   :  { %5135 = vrcp.f32 %v1839_v60 }
0x1f54   :  { %v5136_v62 = vpop.eup %5135 }
0x1fb6   :  { %v1862_v63 = vpop.permute.xlu1 %1861 }
0x1fb7   :  { %v1864_v0 = vmul.f32 %v5136_v62, %v1862_v63 }
0x1fb9   :  { %v1868_v2 = vrot.slane %v1864_v0, 2 }
0x1fbb   :  { %4787 = vmatmul.mubr.msk.f32.vlgmr.msra.gmra.mxu0 %vm246_vm1, %v1868_v2 }
0x1fbc   :  { %2124 = vmatpush1.msra.mxu0 %v5884_v34  ;;  %2171 = vmatprep.mubr.f32.mxu0 %v5411_v3 }
0x1fbd   :  { %2125 = vmatprep.subr.mxu0 %v5891_v35 }
0x1fbe   :  { %2126 = vmatpush1.msra.mxu0 %v5897_v36 }
0x1fbf   :  { %2127 = vmatprep.subr.mxu0 %v5903_v38 }
0x1fc0   :  { %2128 = vmatpush1.msra.mxu0 %v5909_v39 }
0x1fc1   :  { %2129 = vmatprep.subr.mxu0 %v5915_v40 }
0x1fc2   :  { %2130 = vmatpush1.msra.mxu0 %v5921_v41 }
0x1fc3   :  { %2131 = vmatprep.subr.mxu0 %v5927_v42 }
0x1fc4   :  { %2132 = vmatpush1.msra.mxu0 %v5933_v43 }
0x1fc5   :  { %2133 = vmatprep.subr.mxu0 %v5939_v44 }
0x1fc6   :  { %2134 = vmatpush1.msra.mxu0 %v5945_v45 }
0x1fc7   :  { %2135 = vmatprep.subr.mxu0 %v5951_v46 }
0x1fc8   :  { %2136 = vmatpush1.msra.mxu0 %v5957_v47 }
0x1fc9   :  { %2137 = vmatprep.subr.mxu0 %v5963_v48 }
0x1fca   :  { %2138 = vmatpush1.msra.mxu0 %v5969_v49 }
0x1fcb   :  { %2352 = vmatprep.subr.mxu0 %v5871_v4 }
0x207b   :  { %v1937_v5 = vpop.f32.mrf.mxu0 }
0x207c   :  { %v1944_v13 = vrot.slane %v1937_v5, 4 }
0x207d   :  { %v1939_v6 = vpop.f32.mrf.mxu0 }
0x207e   :  { %v1945_v8 = vrot.slane %v1939_v6, 4  ;;  %v1948_v15 = vadd.f32 %v1944_v13, %v1865_v14 }
0x2080   :  { %v1949_v11 = vadd.f32 %v1945_v8, %v1866_v10  ;;  %v4788_v16 = vmul.f32 -1.442695, %v1948_v15 }
0x2082   :  { %5137 = vtanh.f32 %v1949_v11  ;;  %v4789_v26 = vmul.f32 -1.442695, %v1949_v11 }
0x2083   :  { %5139 = vpow2.f32 %v4788_v16  ;;  %v2102_v16 = vld [vmem:[#allocation2 + $0x20] sm:$0x3] }
0x208f   :  { %v5138_v12 = vpop.eup %5137 }
0x2090   :  { %1968 = vrot.lane.b32.xlu0 %v5138_v12, %s5412_s3  ;;  %v5140_v17 = vpop.eup %5139 }
0x2091   :  { %v1956_v18 = vadd.f32 1.0, %v5140_v17 }
0x2093   :  { %5141 = vrcp.f32 %v1956_v18 }
0x20a0   :  { %v5142_v19 = vpop.eup %5141 }
0x20a1   :  { %v1966_v9 = vmul.f32 %v5142_v19, %v1964_v7 }
0x2102   :  { %v1969_v20 = vpop.permute.xlu0 %1968 }
0x2103   :  { %v1971_v21 = vmul.f32 %v5142_v19, %v1969_v20  ;;  %v2101_v20 = vld [vmem:[#allocation2 + $0x40] sm:$0x3] }
0x2105   :  { %1973 = vrot.lane.b32.xlu1 %v1971_v21, %s5412_s3 }
0x2177   :  { %v1974_v22 = vpop.permute.xlu1 %1973 }
0x2178   :  { %v1976_v24 = vadd.f32 %v1974_v22, %v1966_v9 }
0x217a   :  { %5143 = vtanh.f32 %v1976_v24  ;;  %v2082_v62 = vrot.slane %v1976_v24, 6 }
0x217b   :  { %5145 = vpow2.f32 %v4789_v26 }
0x2187   :  { %v5144_v25 = vpop.eup %5143 }
0x2188   :  { %1979 = vrot.lane.b32.xlu0 %v5144_v25, %s5412_s3  ;;  %v5146_v29 = vpop.eup %5145 }
0x2189   :  { %v1957_v27 = vadd.f32 1.0, %v5146_v29 }
0x218b   :  { %5147 = vrcp.f32 %v1957_v27 }
0x2198   :  { %v5148_v28 = vpop.eup %5147 }
0x21fa   :  { %v1980_v30 = vpop.permute.xlu0 %1979 }
0x21fb   :  { %v1982_v31 = vmul.f32 %v5148_v28, %v1980_v30 }
0x21fd   :  { %v1986_v32 = vrot.slane %v1982_v31, 4 }
0x21ff   :  { %4790 = vmatmul.mubr.msk.f32.vlgmr.msra.gmra.mxu1 %vm246_vm1, %v1986_v32 }
0x2200   :  { %2235 = vmatpush1.msra.mxu1 %v5884_v34  ;;  %2282 = vmatprep.mubr.f32.mxu1 %v5411_v3 }
0x2201   :  { %2236 = vmatprep.subr.mxu1 %v5891_v35 }
0x2202   :  { %2237 = vmatpush1.msra.mxu1 %v5897_v36 }
0x2203   :  { %2238 = vmatprep.subr.mxu1 %v5903_v38 }
0x2204   :  { %2239 = vmatpush1.msra.mxu1 %v5909_v39 }
0x2205   :  { %2240 = vmatprep.subr.mxu1 %v5915_v40 }
0x2206   :  { %2241 = vmatpush1.msra.mxu1 %v5921_v41 }
0x2207   :  { %2242 = vmatprep.subr.mxu1 %v5927_v42 }
0x2208   :  { %2243 = vmatpush1.msra.mxu1 %v5933_v43 }
0x2209   :  { %2244 = vmatprep.subr.mxu1 %v5939_v44 }
0x220a   :  { %2245 = vmatpush1.msra.mxu1 %v5945_v45 }
0x220b   :  { %2246 = vmatprep.subr.mxu1 %v5951_v46 }
0x220c   :  { %2247 = vmatpush1.msra.mxu1 %v5957_v47 }
0x220d   :  { %2248 = vmatprep.subr.mxu1 %v5963_v48 }
0x220e   :  { %2249 = vmatpush1.msra.mxu1 %v5969_v49 }
0x220f   :  { %2470 = vmatprep.subr.mxu1 %v5871_v4 }
0x22bf   :  { %v2055_v33 = vpop.f32.mrf.mxu1 }
0x22c0   :  { %v2062_v55 = vrot.slane %v2055_v33, 2 }
0x22c1   :  { %v2057_v50 = vpop.f32.mrf.mxu1 }
0x22c2   :  { %v2063_v51 = vrot.slane %v2057_v50, 2  ;;  %v2066_v37 = vadd.f32 %v2062_v55, %v1983_v1 }
0x22c4   :  { %v2067_v53 = vadd.f32 %v2063_v51, %v1984_v52  ;;  %v4791_v56 = vmul.f32 -1.442695, %v2066_v37 }
0x22c6   :  { %5149 = vtanh.f32 %v2067_v53  ;;  %v4792_v6 = vmul.f32 -1.442695, %v2067_v53 }
0x22c7   :  { %5151 = vpow2.f32 %v4791_v56 }
0x22d3   :  { %v5150_v54 = vpop.eup %5149 }
0x22d4   :  { %2086 = vrot.lane.b32.xlu1 %v5150_v54, %s5412_s3  ;;  %v5152_v57 = vpop.eup %5151 }
0x22d5   :  { %v2074_v58 = vadd.f32 1.0, %v5152_v57 }
0x22d7   :  { %5153 = vrcp.f32 %v2074_v58 }
0x22e4   :  { %v5154_v59 = vpop.eup %5153 }
0x22e5   :  { %v2084_v63 = vmul.f32 %v5154_v59, %v2082_v62 }
0x2346   :  { %v2087_v61 = vpop.permute.xlu1 %2086 }
0x2347   :  { %v2089_v60 = vmul.f32 %v5154_v59, %v2087_v61 }
0x2349   :  { %2091 = vrot.lane.b32.xlu0 %v2089_v60, %s5412_s3 }
0x23bb   :  { %v2092_v0 = vpop.permute.xlu0 %2091 }
0x23bc   :  { %v2094_v2 = vadd.f32 %v2092_v0, %v2084_v63  ;;  %v6178_v0 = vld [vmem:[%s6675_s2 + $0x70] sm:$0xff] }
0x23be   :  { %5155 = vtanh.f32 %v2094_v2 }
0x23bf   :  { %5157 = vpow2.f32 %v4792_v6  ;;  %v6197_v6 = vld [vmem:[%s6675_s2 + $0x58] sm:$0xff] }
0x23cb   :  { %v5156_v5 = vpop.eup %5155 }
0x23cc   :  { %2097 = vrot.lane.b32.xlu1 %v5156_v5, %s5412_s3  ;;  %v5158_v8 = vpop.eup %5157  ;;  %v6191_v5 = vld [vmem:[%s6675_s2 + $0x60] sm:$0xff] }
0x23cd   :  { %v2075_v10 = vadd.f32 1.0, %v5158_v8  ;;  %v6203_v8 = vld [vmem:[%s6675_s2 + $0x50] sm:$0xff] }
0x23cf   :  { %5159 = vrcp.f32 %v2075_v10  ;;  %v6209_v10 = vld [vmem:[%s6675_s2 + $0x48] sm:$0xff] }
0x23dc   :  { %v5160_v11 = vpop.eup %5159 }
0x243e   :  { %v2098_v12 = vpop.permute.xlu1 %2097 }
0x243f   :  { %v2100_v13 = vmul.f32 %v5160_v11, %v2098_v12  ;;  %v6215_v11 = vld [vmem:[%s6675_s2 + $0x40] sm:$0xff]  ;;  %v6221_v12 = vld [vmem:[%s6675_s2 + $0x38] sm:$0xff] }
0x2441   :  { %v2104_v14 = vrot.slane %v2100_v13, 6  ;;  %v6227_v13 = vld [vmem:[%s6675_s2 + $0x30] sm:$0xff] }
0x2443   :  { %4793 = vmatmul.mubr.msk.f32.vlgmr.msra.gmra.mxu0 %vm246_vm1, %v2104_v14  ;;  %v6233_v14 = vld [vmem:[%s6675_s2 + $0x28] sm:$0xff] }
0x2444   :  { %2353 = vmatpush1.msra.mxu0 %v5884_v34  ;;  %2400 = vmatprep.mubr.f32.mxu0 %v5411_v3 }
0x2445   :  { %2354 = vmatprep.subr.mxu0 %v5891_v35 }
0x2446   :  { %2355 = vmatpush1.msra.mxu0 %v5897_v36 }
0x2447   :  { %2356 = vmatprep.subr.mxu0 %v5903_v38 }
0x2448   :  { %2357 = vmatpush1.msra.mxu0 %v5909_v39 }
0x2449   :  { %2358 = vmatprep.subr.mxu0 %v5915_v40 }
0x244a   :  { %2359 = vmatpush1.msra.mxu0 %v5921_v41 }
0x244b   :  { %2360 = vmatprep.subr.mxu0 %v5927_v42 }
0x244c   :  { %2361 = vmatpush1.msra.mxu0 %v5933_v43 }
0x244d   :  { %2362 = vmatprep.subr.mxu0 %v5939_v44 }
0x244e   :  { %2363 = vmatpush1.msra.mxu0 %v5945_v45 }
0x244f   :  { %2364 = vmatprep.subr.mxu0 %v5951_v46 }
0x2450   :  { %2365 = vmatpush1.msra.mxu0 %v5957_v47 }
0x2451   :  { %2366 = vmatprep.subr.mxu0 %v5963_v48 }
0x2452   :  { %2367 = vmatpush1.msra.mxu0 %v5969_v49 }
0x2453   :  { %2588 = vmatprep.subr.mxu0 %v5871_v4  ;;  %v2194_v4 = vrot.slane %v2094_v2, 6  ;;  %v6185_v2 = vld [vmem:[%s6675_s2 + $0x68] sm:$0xff] }
0x2503   :  { %v2173_v15 = vpop.f32.mrf.mxu0 }
0x2504   :  { %v2178_v21 = vadd.f32 %v2173_v15, %v2101_v20  ;;  %v6239_v15 = vld [vmem:[%s6675_s2 + $0x20] sm:$0xff] }
0x2505   :  { %v2175_v17 = vpop.f32.mrf.mxu0 }
0x2506   :  { %v2179_v18 = vadd.f32 %v2175_v17, %v2102_v16  ;;  %v4794_v7 = vmul.f32 -1.442695, %v2178_v21  ;;  %v6245_v16 = vld [vmem:[%s6675_s2 + $0x18] sm:$0xff]  ;;  %v6251_v17 = vld [vmem:[%s6675_s2 + $0x10] sm:$0xff] }
0x2508   :  { %5161 = vtanh.f32 %v2179_v18  ;;  %v4795_v31 = vmul.f32 -1.442695, %v2179_v18  ;;  %v6257_v18 = vld [vmem:[%s6675_s2 + $0x8] sm:$0xff] }
0x2509   :  { %5163 = vpow2.f32 %v4794_v7 }
0x2515   :  { %v5162_v19 = vpop.eup %5161 }
0x2516   :  { %2198 = vrot.lane.b32.xlu0 %v5162_v19, %s5412_s3  ;;  %v5164_v9 = vpop.eup %5163  ;;  %v6263_v19 = vld [vmem:[%s6675_s2] sm:$0xff] }
0x2517   :  { %v2186_v22 = vadd.f32 1.0, %v5164_v9  ;;  %v2331_v9 = vld [vmem:[#allocation2 + $0x20] sm:$0x30] }
0x2519   :  { %5165 = vrcp.f32 %v2186_v22 }
0x2526   :  { %v5166_v24 = vpop.eup %5165 }
0x2527   :  { %v2196_v29 = vmul.f32 %v5166_v24, %v2194_v4 }
0x2588   :  { %v2199_v25 = vpop.permute.xlu0 %2198 }
0x2589   :  { %v2201_v26 = vmul.f32 %v5166_v24, %v2199_v25 }
0x258b   :  { %2203 = vrot.lane.b32.xlu1 %v2201_v26, %s5412_s3  ;;  %v2330_v26 = vld [vmem:[#allocation2 + $0x40] sm:$0x30] }
0x25fd   :  { %v2204_v27 = vpop.permute.xlu1 %2203 }
0x25fe   :  { %v2206_v28 = vadd.f32 %v2204_v27, %v2196_v29 }
0x2600   :  { %5167 = vtanh.f32 %v2206_v28  ;;  %v2311_v54 = vrot.slane %v2206_v28, 6 }
0x2601   :  { %5169 = vpow2.f32 %v4795_v31 }
0x260d   :  { %v5168_v30 = vpop.eup %5167 }
0x260e   :  { %2209 = vrot.lane.b32.xlu0 %v5168_v30, %s5412_s3  ;;  %v5170_v32 = vpop.eup %5169 }
0x260f   :  { %v2187_v33 = vadd.f32 1.0, %v5170_v32 }
0x2611   :  { %5171 = vrcp.f32 %v2187_v33 }
0x261e   :  { %v5172_v50 = vpop.eup %5171 }
0x2680   :  { %v2210_v51 = vpop.permute.xlu0 %2209 }
0x2681   :  { %v2212_v52 = vmul.f32 %v5172_v50, %v2210_v51 }
0x2683   :  { %4796 = vmatmul.mubr.msk.f32.vlgmr.msra.gmra.mxu1 %vm246_vm1, %v2212_v52 }
0x2684   :  { %2471 = vmatpush1.msra.mxu1 %v5884_v34  ;;  %2518 = vmatprep.mubr.f32.mxu1 %v5411_v3  ;;  %v6165_v34 = vld [vmem:[%s6675_s2 + $0x78] sm:$0xff] }
0x2685   :  { %2472 = vmatprep.subr.mxu1 %v5891_v35 }
0x2686   :  { %2473 = vmatpush1.msra.mxu1 %v5897_v36 }
0x2687   :  { %2474 = vmatprep.subr.mxu1 %v5903_v38 }
0x2688   :  { %2475 = vmatpush1.msra.mxu1 %v5909_v39  ;;  %v2214_v39 = vld [vmem:[#allocation2 + $0x20] sm:$0xc] }
0x2689   :  { %2476 = vmatprep.subr.mxu1 %v5915_v40 }
0x268a   :  { %2477 = vmatpush1.msra.mxu1 %v5921_v41 }
0x268b   :  { %2478 = vmatprep.subr.mxu1 %v5927_v42 }
0x268c   :  { %2479 = vmatpush1.msra.mxu1 %v5933_v43  ;;  %v2213_v43 = vld [vmem:[#allocation2 + $0x40] sm:$0xc] }
0x268d   :  { %2480 = vmatprep.subr.mxu1 %v5939_v44 }
0x268e   :  { %2481 = vmatpush1.msra.mxu1 %v5945_v45 }
0x268f   :  { %2482 = vmatprep.subr.mxu1 %v5951_v46 }
0x2690   :  { %2483 = vmatpush1.msra.mxu1 %v5957_v47 }
0x2691   :  { %2484 = vmatprep.subr.mxu1 %v5963_v48 }
0x2692   :  { %2485 = vmatpush1.msra.mxu1 %v5969_v49 }
0x2693   :  { %2699 = vmatprep.subr.mxu1 %v6165_v34 }
0x2743   :  { %v2284_v35 = vpop.f32.mrf.mxu1 }
0x2744   :  { %v2291_v42 = vrot.slane %v2284_v35, 6 }
0x2745   :  { %v2286_v36 = vpop.f32.mrf.mxu1 }
0x2746   :  { %v2292_v38 = vrot.slane %v2286_v36, 6  ;;  %v2295_v44 = vadd.f32 %v2291_v42, %v2213_v43 }
0x2748   :  { %v2296_v40 = vadd.f32 %v2292_v38, %v2214_v39  ;;  %v4797_v45 = vmul.f32 -1.442695, %v2295_v44 }
0x274a   :  { %5173 = vtanh.f32 %v2296_v40  ;;  %v4798_v57 = vmul.f32 -1.442695, %v2296_v40 }
0x274b   :  { %5175 = vpow2.f32 %v4797_v45 }
0x2757   :  { %v5174_v41 = vpop.eup %5173 }
0x2758   :  { %2315 = vrot.lane.b32.xlu1 %v5174_v41, %s5412_s3  ;;  %v5176_v46 = vpop.eup %5175 }
0x2759   :  { %v2303_v47 = vadd.f32 1.0, %v5176_v46 }
0x275b   :  { %5177 = vrcp.f32 %v2303_v47  ;;  %v2449_v47 = vld [vmem:[#allocation2 + $0x20] sm:$0xc0] }
0x2768   :  { %v5178_v48 = vpop.eup %5177 }
0x2769   :  { %v2313_v55 = vmul.f32 %v5178_v48, %v2311_v54  ;;  %v2448_v54 = vld [vmem:[#allocation2 + $0x40] sm:$0xc0] }
0x27ca   :  { %v2316_v49 = vpop.permute.xlu1 %2315 }
0x27cb   :  { %v2318_v53 = vmul.f32 %v5178_v48, %v2316_v49 }
0x27cd   :  { %2320 = vrot.lane.b32.xlu0 %v2318_v53, %s5412_s3 }
0x283f   :  { %v2321_v1 = vpop.permute.xlu0 %2320 }
0x2840   :  { %v6170_v37 = vadd.f32 %v2321_v1, %v2313_v55 }
0x2842   :  { %5179 = vtanh.f32 %v6170_v37  ;;  %v2429_v33 = vrot.slane %v6170_v37, 6 }
0x2843   :  { %5181 = vpow2.f32 %v4798_v57 }
0x284f   :  { %v5180_v56 = vpop.eup %5179 }
0x2850   :  { %2326 = vrot.lane.b32.xlu1 %v5180_v56, %s5412_s3  ;;  %v5182_v58 = vpop.eup %5181 }
0x2851   :  { %v2304_v59 = vadd.f32 1.0, %v5182_v58 }
0x2853   :  { %5183 = vrcp.f32 %v2304_v59 }
0x2860   :  { %v5184_v61 = vpop.eup %5183 }
0x28c2   :  { %v2327_v60 = vpop.permute.xlu1 %2326 }
0x28c3   :  { %v2329_v62 = vmul.f32 %v5184_v61, %v2327_v60 }
0x28c5   :  { %v2333_v63 = vrot.slane %v2329_v62, 2 }
0x28c7   :  { %4799 = vmatmul.mubr.msk.f32.vlgmr.msra.gmra.mxu0 %vm246_vm1, %v2333_v63 }
0x28c8   :  { %2589 = vmatpush1.msra.mxu0 %v6178_v0  ;;  %2636 = vmatprep.mubr.f32.mxu0 %v5411_v3 }
0x28c9   :  { %2590 = vmatprep.subr.mxu0 %v6185_v2 }
0x28ca   :  { %2591 = vmatpush1.msra.mxu0 %v6191_v5 }
0x28cb   :  { %2592 = vmatprep.subr.mxu0 %v6197_v6 }
0x28cc   :  { %2593 = vmatpush1.msra.mxu0 %v6203_v8 }
0x28cd   :  { %2594 = vmatprep.subr.mxu0 %v6209_v10 }
0x28ce   :  { %2595 = vmatpush1.msra.mxu0 %v6215_v11 }
0x28cf   :  { %2596 = vmatprep.subr.mxu0 %v6221_v12 }
0x28d0   :  { %2597 = vmatpush1.msra.mxu0 %v6227_v13 }
0x28d1   :  { %2598 = vmatprep.subr.mxu0 %v6233_v14 }
0x28d2   :  { %2599 = vmatpush1.msra.mxu0 %v6239_v15 }
0x28d3   :  { %2600 = vmatprep.subr.mxu0 %v6245_v16 }
0x28d4   :  { %2601 = vmatpush1.msra.mxu0 %v6251_v17 }
0x28d5   :  { %2602 = vmatprep.subr.mxu0 %v6257_v18 }
0x28d6   :  { %2603 = vmatpush1.msra.mxu0 %v6263_v19 }
0x28d7   :  { %2817 = vmatprep.subr.mxu0 %v6165_v34 }
0x2987   :  { %v2402_v20 = vpop.f32.mrf.mxu0 }
0x2988   :  { %v2409_v25 = vrot.slane %v2402_v20, 4 }
0x2989   :  { %v2404_v21 = vpop.f32.mrf.mxu0 }
0x298a   :  { %v2410_v7 = vrot.slane %v2404_v21, 4  ;;  %v2413_v4 = vadd.f32 %v2409_v25, %v2330_v26 }
0x298c   :  { %v2414_v22 = vadd.f32 %v2410_v7, %v2331_v9  ;;  %v4800_v29 = vmul.f32 -1.442695, %v2413_v4 }
0x298e   :  { %5185 = vtanh.f32 %v2414_v22  ;;  %v4801_v36 = vmul.f32 -1.442695, %v2414_v22 }
0x298f   :  { %5187 = vpow2.f32 %v4800_v29  ;;  %v2567_v29 = vld [vmem:[#allocation2 + $0x38] sm:$0x3] }
0x299b   :  { %v5186_v24 = vpop.eup %5185 }
0x299c   :  { %2433 = vrot.lane.b32.xlu0 %v5186_v24, %s5412_s3  ;;  %v5188_v27 = vpop.eup %5187 }
0x299d   :  { %v2421_v28 = vadd.f32 1.0, %v5188_v27 }
0x299f   :  { %5189 = vrcp.f32 %v2421_v28 }
0x29ac   :  { %v5190_v30 = vpop.eup %5189 }
0x29ad   :  { %v2431_v50 = vmul.f32 %v5190_v30, %v2429_v33 }
0x2a0e   :  { %v2434_v31 = vpop.permute.xlu0 %2433 }
0x2a0f   :  { %v2436_v32 = vmul.f32 %v5190_v30, %v2434_v31  ;;  %v2566_v31 = vld [vmem:[#allocation2 + $0x10] sm:$0x3] }
0x2a11   :  { %2438 = vrot.lane.b32.xlu1 %v2436_v32, %s5412_s3 }
0x2a83   :  { %v2439_v51 = vpop.permute.xlu1 %2438 }
0x2a84   :  { %v2441_v52 = vadd.f32 %v2439_v51, %v2431_v50 }
0x2a86   :  { %5191 = vtanh.f32 %v2441_v52  ;;  %v2547_v61 = vrot.slane %v2441_v52, 6 }
0x2a87   :  { %5193 = vpow2.f32 %v4801_v36 }
0x2a93   :  { %v5192_v35 = vpop.eup %5191 }
0x2a94   :  { %2444 = vrot.lane.b32.xlu0 %v5192_v35, %s5412_s3  ;;  %v5194_v38 = vpop.eup %5193 }
0x2a95   :  { %v2422_v39 = vadd.f32 1.0, %v5194_v38 }
0x2a97   :  { %5195 = vrcp.f32 %v2422_v39 }
0x2aa4   :  { %v5196_v40 = vpop.eup %5195 }
0x2b06   :  { %v2445_v41 = vpop.permute.xlu0 %2444 }
0x2b07   :  { %v2447_v42 = vmul.f32 %v5196_v40, %v2445_v41 }
0x2b09   :  { %v2451_v43 = vrot.slane %v2447_v42, 4 }
0x2b0b   :  { %4802 = vmatmul.mubr.msk.f32.vlgmr.msra.gmra.mxu1 %vm246_vm1, %v2451_v43 }
0x2b0c   :  { %2700 = vmatpush1.msra.mxu1 %v6178_v0  ;;  %2747 = vmatprep.mubr.f32.mxu1 %v5411_v3 }
0x2b0d   :  { %2701 = vmatprep.subr.mxu1 %v6185_v2 }
0x2b0e   :  { %2702 = vmatpush1.msra.mxu1 %v6191_v5 }
0x2b0f   :  { %2703 = vmatprep.subr.mxu1 %v6197_v6 }
0x2b10   :  { %2704 = vmatpush1.msra.mxu1 %v6203_v8 }
0x2b11   :  { %2705 = vmatprep.subr.mxu1 %v6209_v10 }
0x2b12   :  { %2706 = vmatpush1.msra.mxu1 %v6215_v11 }
0x2b13   :  { %2707 = vmatprep.subr.mxu1 %v6221_v12 }
0x2b14   :  { %2708 = vmatpush1.msra.mxu1 %v6227_v13 }
0x2b15   :  { %2709 = vmatprep.subr.mxu1 %v6233_v14 }
0x2b16   :  { %2710 = vmatpush1.msra.mxu1 %v6239_v15 }
0x2b17   :  { %2711 = vmatprep.subr.mxu1 %v6245_v16 }
0x2b18   :  { %2712 = vmatpush1.msra.mxu1 %v6251_v17 }
0x2b19   :  { %2713 = vmatprep.subr.mxu1 %v6257_v18 }
0x2b1a   :  { %2714 = vmatpush1.msra.mxu1 %v6263_v19 }
0x2b1b   :  { %2935 = vmatprep.subr.mxu1 %v6165_v34 }
0x2bcb   :  { %v2520_v44 = vpop.f32.mrf.mxu1 }
0x2bcc   :  { %v2527_v53 = vrot.slane %v2520_v44, 2 }
0x2bcd   :  { %v2522_v45 = vpop.f32.mrf.mxu1 }
0x2bce   :  { %v2528_v46 = vrot.slane %v2522_v45, 2  ;;  %v2531_v55 = vadd.f32 %v2527_v53, %v2448_v54 }
0x2bd0   :  { %v2532_v48 = vadd.f32 %v2528_v46, %v2449_v47  ;;  %v4803_v1 = vmul.f32 -1.442695, %v2531_v55  ;;  %v2679_v55 = vld [vmem:[#allocation2 + $0x38] sm:$0xc] }
0x2bd2   :  { %5197 = vtanh.f32 %v2532_v48  ;;  %v4804_v21 = vmul.f32 -1.442695, %v2532_v48 }
0x2bd3   :  { %5199 = vpow2.f32 %v4803_v1 }
0x2bdf   :  { %v5198_v49 = vpop.eup %5197 }
0x2be0   :  { %2551 = vrot.lane.b32.xlu1 %v5198_v49, %s5412_s3  ;;  %v5200_v37 = vpop.eup %5199 }
0x2be1   :  { %v2539_v56 = vadd.f32 1.0, %v5200_v37 }
0x2be3   :  { %5201 = vrcp.f32 %v2539_v56 }
0x2bf0   :  { %v5202_v57 = vpop.eup %5201 }
0x2bf1   :  { %v2549_v60 = vmul.f32 %v5202_v57, %v2547_v61 }
0x2c52   :  { %v2552_v58 = vpop.permute.xlu1 %2551 }
0x2c53   :  { %v2554_v59 = vmul.f32 %v5202_v57, %v2552_v58  ;;  %v2678_v57 = vld [vmem:[#allocation2 + $0x10] sm:$0xc] }
0x2c55   :  { %2556 = vrot.lane.b32.xlu0 %v2554_v59, %s5412_s3 }
0x2cc7   :  { %v2557_v62 = vpop.permute.xlu0 %2556 }
0x2cc8   :  { %v2559_v63 = vadd.f32 %v2557_v62, %v2549_v60 }
0x2cca   :  { %5203 = vtanh.f32 %v2559_v63  ;;  %v2659_v38 = vrot.slane %v2559_v63, 6 }
0x2ccb   :  { %5205 = vpow2.f32 %v4804_v21 }
0x2cd7   :  { %v5204_v20 = vpop.eup %5203 }
0x2cd8   :  { %2562 = vrot.lane.b32.xlu1 %v5204_v20, %s5412_s3  ;;  %v5206_v7 = vpop.eup %5205 }
0x2cd9   :  { %v2540_v9 = vadd.f32 1.0, %v5206_v7 }
0x2cdb   :  { %5207 = vrcp.f32 %v2540_v9 }
0x2ce8   :  { %v5208_v22 = vpop.eup %5207 }
0x2d4a   :  { %v2563_v24 = vpop.permute.xlu1 %2562 }
0x2d4b   :  { %v2565_v25 = vmul.f32 %v5208_v22, %v2563_v24 }
0x2d4d   :  { %v2569_v26 = vrot.slane %v2565_v25, 6 }
0x2d4f   :  { %4805 = vmatmul.mubr.msk.f32.vlgmr.msra.gmra.mxu0 %vm246_vm1, %v2569_v26 }
0x2d50   :  { %2818 = vmatpush1.msra.mxu0 %v6178_v0  ;;  %2865 = vmatprep.mubr.f32.mxu0 %v5411_v3 }
0x2d51   :  { %2819 = vmatprep.subr.mxu0 %v6185_v2 }
0x2d52   :  { %2820 = vmatpush1.msra.mxu0 %v6191_v5 }
0x2d53   :  { %2821 = vmatprep.subr.mxu0 %v6197_v6 }
0x2d54   :  { %2822 = vmatpush1.msra.mxu0 %v6203_v8 }
0x2d55   :  { %2823 = vmatprep.subr.mxu0 %v6209_v10 }
0x2d56   :  { %2824 = vmatpush1.msra.mxu0 %v6215_v11 }
0x2d57   :  { %2825 = vmatprep.subr.mxu0 %v6221_v12 }
0x2d58   :  { %2826 = vmatpush1.msra.mxu0 %v6227_v13 }
0x2d59   :  { %2827 = vmatprep.subr.mxu0 %v6233_v14 }
0x2d5a   :  { %2828 = vmatpush1.msra.mxu0 %v6239_v15 }
0x2d5b   :  { %2829 = vmatprep.subr.mxu0 %v6245_v16 }
0x2d5c   :  { %2830 = vmatpush1.msra.mxu0 %v6251_v17 }
0x2d5d   :  { %2831 = vmatprep.subr.mxu0 %v6257_v18 }
0x2d5e   :  { %2832 = vmatpush1.msra.mxu0 %v6263_v19 }
0x2d5f   :  { %3053 = vmatprep.subr.mxu0 %v6165_v34 }
0x2e0f   :  { %v2638_v4 = vpop.f32.mrf.mxu0 }
0x2e10   :  { %v2643_v32 = vadd.f32 %v2638_v4, %v2566_v31 }
0x2e11   :  { %v2640_v27 = vpop.f32.mrf.mxu0 }
0x2e12   :  { %v2644_v28 = vadd.f32 %v2640_v27, %v2567_v29  ;;  %v4806_v33 = vmul.f32 -1.442695, %v2643_v32 }
0x2e14   :  { %5209 = vtanh.f32 %v2644_v28  ;;  %v4807_v43 = vmul.f32 -1.442695, %v2644_v28 }
0x2e15   :  { %5211 = vpow2.f32 %v4806_v33 }
0x2e21   :  { %v5210_v30 = vpop.eup %5209 }
0x2e22   :  { %2663 = vrot.lane.b32.xlu0 %v5210_v30, %s5412_s3  ;;  %v5212_v50 = vpop.eup %5211 }
0x2e23   :  { %v2651_v51 = vadd.f32 1.0, %v5212_v50  ;;  %v2796_v50 = vld [vmem:[#allocation2 + $0x38] sm:$0x30] }
0x2e25   :  { %5213 = vrcp.f32 %v2651_v51 }
0x2e32   :  { %v5214_v52 = vpop.eup %5213 }
0x2e33   :  { %v2661_v39 = vmul.f32 %v5214_v52, %v2659_v38 }
0x2e94   :  { %v2664_v35 = vpop.permute.xlu0 %2663 }
0x2e95   :  { %v2666_v36 = vmul.f32 %v5214_v52, %v2664_v35 }
0x2e97   :  { %2668 = vrot.lane.b32.xlu1 %v2666_v36, %s5412_s3  ;;  %v2795_v36 = vld [vmem:[#allocation2 + $0x10] sm:$0x30] }
0x2f09   :  { %v2669_v40 = vpop.permute.xlu1 %2668 }
0x2f0a   :  { %v2671_v41 = vadd.f32 %v2669_v40, %v2661_v39 }
0x2f0c   :  { %5215 = vtanh.f32 %v2671_v41  ;;  %v2776_v21 = vrot.slane %v2671_v41, 6 }
0x2f0d   :  { %5217 = vpow2.f32 %v4807_v43 }
0x2f19   :  { %v5216_v42 = vpop.eup %5215 }
0x2f1a   :  { %2674 = vrot.lane.b32.xlu0 %v5216_v42, %s5412_s3  ;;  %v5218_v44 = vpop.eup %5217 }
0x2f1b   :  { %v2652_v45 = vadd.f32 1.0, %v5218_v44 }
0x2f1d   :  { %5219 = vrcp.f32 %v2652_v45 }
0x2f2a   :  { %v5220_v46 = vpop.eup %5219 }
0x2f8c   :  { %v2675_v47 = vpop.permute.xlu0 %2674 }
0x2f8d   :  { %v2677_v48 = vmul.f32 %v5220_v46, %v2675_v47 }
0x2f8f   :  { %4808 = vmatmul.mubr.msk.f32.vlgmr.msra.gmra.mxu1 %vm246_vm1, %v2677_v48 }
0x2f90   :  { %2936 = vmatpush1.msra.mxu1 %v6178_v0  ;;  %2983 = vmatprep.mubr.f32.mxu1 %v5411_v3 }
0x2f91   :  { %2937 = vmatprep.subr.mxu1 %v6185_v2 }
0x2f92   :  { %2938 = vmatpush1.msra.mxu1 %v6191_v5 }
0x2f93   :  { %2939 = vmatprep.subr.mxu1 %v6197_v6 }
0x2f94   :  { %2940 = vmatpush1.msra.mxu1 %v6203_v8 }
0x2f95   :  { %2941 = vmatprep.subr.mxu1 %v6209_v10 }
0x2f96   :  { %2942 = vmatpush1.msra.mxu1 %v6215_v11 }
0x2f97   :  { %2943 = vmatprep.subr.mxu1 %v6221_v12 }
0x2f98   :  { %2944 = vmatpush1.msra.mxu1 %v6227_v13 }
0x2f99   :  { %2945 = vmatprep.subr.mxu1 %v6233_v14 }
0x2f9a   :  { %2946 = vmatpush1.msra.mxu1 %v6239_v15 }
0x2f9b   :  { %2947 = vmatprep.subr.mxu1 %v6245_v16 }
0x2f9c   :  { %2948 = vmatpush1.msra.mxu1 %v6251_v17 }
0x2f9d   :  { %2949 = vmatprep.subr.mxu1 %v6257_v18 }
0x2f9e   :  { %2950 = vmatpush1.msra.mxu1 %v6263_v19 }
0x2f9f   :  { %3164 = vmatprep.subr.mxu1 %v6165_v34 }
0x304f   :  { %v2749_v49 = vpop.f32.mrf.mxu1 }
0x3050   :  { %v2756_v56 = vrot.slane %v2749_v49, 6 }
0x3051   :  { %v2751_v53 = vpop.f32.mrf.mxu1 }
0x3052   :  { %v2757_v54 = vrot.slane %v2751_v53, 6  ;;  %v2760_v58 = vadd.f32 %v2756_v56, %v2678_v57 }
0x3054   :  { %v2761_v1 = vadd.f32 %v2757_v54, %v2679_v55  ;;  %v4809_v59 = vmul.f32 -1.442695, %v2760_v58 }
0x3056   :  { %5221 = vtanh.f32 %v2761_v1  ;;  %v4810_v25 = vmul.f32 -1.442695, %v2761_v1 }
0x3057   :  { %5223 = vpow2.f32 %v4809_v59 }
0x3063   :  { %v5222_v37 = vpop.eup %5221 }
0x3064   :  { %2780 = vrot.lane.b32.xlu1 %v5222_v37, %s5412_s3  ;;  %v5224_v61 = vpop.eup %5223 }
0x3065   :  { %v2768_v60 = vadd.f32 1.0, %v5224_v61 }
0x3067   :  { %5225 = vrcp.f32 %v2768_v60  ;;  %v2914_v60 = vld [vmem:[#allocation2 + $0x38] sm:$0xc0] }
0x3074   :  { %v5226_v62 = vpop.eup %5225 }
0x3075   :  { %v2778_v7 = vmul.f32 %v5226_v62, %v2776_v21  ;;  %v2913_v21 = vld [vmem:[#allocation2 + $0x10] sm:$0xc0] }
0x30d6   :  { %v2781_v63 = vpop.permute.xlu1 %2780 }
0x30d7   :  { %v2783_v20 = vmul.f32 %v5226_v62, %v2781_v63 }
0x30d9   :  { %2785 = vrot.lane.b32.xlu0 %v2783_v20, %s5412_s3 }
0x314b   :  { %v2786_v9 = vpop.permute.xlu0 %2785 }
0x314c   :  { %v2788_v22 = vadd.f32 %v2786_v9, %v2778_v7 }
0x314e   :  { %5227 = vtanh.f32 %v2788_v22  ;;  %v2894_v45 = vrot.slane %v2788_v22, 6 }
0x314f   :  { %5229 = vpow2.f32 %v4810_v25 }
0x315b   :  { %v5228_v24 = vpop.eup %5227 }
0x315c   :  { %2791 = vrot.lane.b32.xlu1 %v5228_v24, %s5412_s3  ;;  %v5230_v26 = vpop.eup %5229 }
0x315d   :  { %v2769_v4 = vadd.f32 1.0, %v5230_v26 }
0x315f   :  { %5231 = vrcp.f32 %v2769_v4 }
0x316c   :  { %v5232_v29 = vpop.eup %5231 }
0x31ce   :  { %v2792_v27 = vpop.permute.xlu1 %2791 }
0x31cf   :  { %v2794_v28 = vmul.f32 %v5232_v29, %v2792_v27 }
0x31d1   :  { %v2798_v30 = vrot.slane %v2794_v28, 2 }
0x31d3   :  { %4811 = vmatmul.mubr.msk.f32.vlgmr.msra.gmra.mxu0 %vm246_vm1, %v2798_v30 }
0x31d4   :  { %3054 = vmatpush1.msra.mxu0 %v6178_v0  ;;  %3101 = vmatprep.mubr.f32.mxu0 %v5411_v3 }
0x31d5   :  { %3055 = vmatprep.subr.mxu0 %v6185_v2 }
0x31d6   :  { %3056 = vmatpush1.msra.mxu0 %v6191_v5 }
0x31d7   :  { %3057 = vmatprep.subr.mxu0 %v6197_v6 }
0x31d8   :  { %3058 = vmatpush1.msra.mxu0 %v6203_v8 }
0x31d9   :  { %3059 = vmatprep.subr.mxu0 %v6209_v10 }
0x31da   :  { %3060 = vmatpush1.msra.mxu0 %v6215_v11 }
0x31db   :  { %3061 = vmatprep.subr.mxu0 %v6221_v12 }
0x31dc   :  { %3062 = vmatpush1.msra.mxu0 %v6227_v13 }
0x31dd   :  { %3063 = vmatprep.subr.mxu0 %v6233_v14 }
0x31de   :  { %3064 = vmatpush1.msra.mxu0 %v6239_v15 }
0x31df   :  { %3065 = vmatprep.subr.mxu0 %v6245_v16 }
0x31e0   :  { %3066 = vmatpush1.msra.mxu0 %v6251_v17 }
0x31e1   :  { %3067 = vmatprep.subr.mxu0 %v6257_v18 }
0x31e2   :  { %3068 = vmatpush1.msra.mxu0 %v6263_v19 }
0x31e3   :  { %3282 = vmatprep.subr.mxu0 %v6165_v34 }
0x3293   :  { %v2867_v31 = vpop.f32.mrf.mxu0 }
0x3294   :  { %v2874_v35 = vrot.slane %v2867_v31, 4 }
0x3295   :  { %v2869_v32 = vpop.f32.mrf.mxu0 }
0x3296   :  { %v2875_v33 = vrot.slane %v2869_v32, 4  ;;  %v2878_v38 = vadd.f32 %v2874_v35, %v2795_v36 }
0x3298   :  { %v2879_v51 = vadd.f32 %v2875_v33, %v2796_v50  ;;  %v4812_v39 = vmul.f32 -1.442695, %v2878_v38 }
0x329a   :  { %5233 = vtanh.f32 %v2879_v51  ;;  %v4813_v53 = vmul.f32 -1.442695, %v2879_v51 }
0x329b   :  { %5235 = vpow2.f32 %v4812_v39  ;;  %v3032_v39 = vld [vmem:[#allocation2 + $0x70] sm:$0x3] }
0x32a7   :  { %v5234_v52 = vpop.eup %5233 }
0x32a8   :  { %2898 = vrot.lane.b32.xlu0 %v5234_v52, %s5412_s3  ;;  %v5236_v40 = vpop.eup %5235 }
0x32a9   :  { %v2886_v41 = vadd.f32 1.0, %v5236_v40 }
0x32ab   :  { %5237 = vrcp.f32 %v2886_v41 }
0x32b8   :  { %v5238_v42 = vpop.eup %5237 }
0x32b9   :  { %v2896_v46 = vmul.f32 %v5238_v42, %v2894_v45 }
0x331a   :  { %v2899_v43 = vpop.permute.xlu0 %2898 }
0x331b   :  { %v2901_v44 = vmul.f32 %v5238_v42, %v2899_v43  ;;  %v3031_v43 = vld [vmem:[#allocation2 + $0x60] sm:$0x3] }
0x331d   :  { %2903 = vrot.lane.b32.xlu1 %v2901_v44, %s5412_s3 }
0x338f   :  { %v2904_v47 = vpop.permute.xlu1 %2903 }
0x3390   :  { %v2906_v48 = vadd.f32 %v2904_v47, %v2896_v46 }
0x3392   :  { %5239 = vtanh.f32 %v2906_v48  ;;  %v3012_v29 = vrot.slane %v2906_v48, 6 }
0x3393   :  { %5241 = vpow2.f32 %v4813_v53 }
0x339f   :  { %v5240_v49 = vpop.eup %5239 }
0x33a0   :  { %2909 = vrot.lane.b32.xlu0 %v5240_v49, %s5412_s3  ;;  %v5242_v54 = vpop.eup %5241 }
0x33a1   :  { %v2887_v55 = vadd.f32 1.0, %v5242_v54 }
0x33a3   :  { %5243 = vrcp.f32 %v2887_v55 }
0x33b0   :  { %v5244_v1 = vpop.eup %5243 }
0x3412   :  { %v2910_v37 = vpop.permute.xlu0 %2909 }
0x3413   :  { %v2912_v56 = vmul.f32 %v5244_v1, %v2910_v37 }
0x3415   :  { %v2916_v57 = vrot.slane %v2912_v56, 4 }
0x3417   :  { %4814 = vmatmul.mubr.msk.f32.vlgmr.msra.gmra.mxu1 %vm246_vm1, %v2916_v57 }
0x3418   :  { %3165 = vmatpush1.msra.mxu1 %v6178_v0  ;;  %3212 = vmatprep.mubr.f32.mxu1 %v5411_v3 }
0x3419   :  { %3166 = vmatprep.subr.mxu1 %v6185_v2 }
0x341a   :  { %3167 = vmatpush1.msra.mxu1 %v6191_v5 }
0x341b   :  { %3168 = vmatprep.subr.mxu1 %v6197_v6 }
0x341c   :  { %3169 = vmatpush1.msra.mxu1 %v6203_v8 }
0x341d   :  { %3170 = vmatprep.subr.mxu1 %v6209_v10 }
0x341e   :  { %3171 = vmatpush1.msra.mxu1 %v6215_v11 }
0x341f   :  { %3172 = vmatprep.subr.mxu1 %v6221_v12 }
0x3420   :  { %3173 = vmatpush1.msra.mxu1 %v6227_v13 }
0x3421   :  { %3174 = vmatprep.subr.mxu1 %v6233_v14 }
0x3422   :  { %3175 = vmatpush1.msra.mxu1 %v6239_v15 }
0x3423   :  { %3176 = vmatprep.subr.mxu1 %v6245_v16 }
0x3424   :  { %3177 = vmatpush1.msra.mxu1 %v6251_v17 }
0x3425   :  { %3178 = vmatprep.subr.mxu1 %v6257_v18 }
0x3426   :  { %3179 = vmatpush1.msra.mxu1 %v6263_v19 }
0x3427   :  { %3400 = vmatprep.subr.mxu1 %v6165_v34 }
0x34d7   :  { %v2985_v58 = vpop.f32.mrf.mxu1 }
0x34d8   :  { %v2992_v20 = vrot.slane %v2985_v58, 2 }
0x34d9   :  { %v2987_v59 = vpop.f32.mrf.mxu1 }
0x34da   :  { %v2993_v61 = vrot.slane %v2987_v59, 2  ;;  %v2996_v7 = vadd.f32 %v2992_v20, %v2913_v21 }
0x34dc   :  { %v2997_v62 = vadd.f32 %v2993_v61, %v2914_v60  ;;  %v4815_v9 = vmul.f32 -1.442695, %v2996_v7  ;;  %v3144_v7 = vld [vmem:[#allocation2 + $0x70] sm:$0xc] }
0x34de   :  { %5245 = vtanh.f32 %v2997_v62  ;;  %v4816_v32 = vmul.f32 -1.442695, %v2997_v62 }
0x34df   :  { %5247 = vpow2.f32 %v4815_v9 }
0x34eb   :  { %v5246_v63 = vpop.eup %5245 }
0x34ec   :  { %3016 = vrot.lane.b32.xlu1 %v5246_v63, %s5412_s3  ;;  %v5248_v22 = vpop.eup %5247 }
0x34ed   :  { %v3004_v24 = vadd.f32 1.0, %v5248_v22 }
0x34ef   :  { %5249 = vrcp.f32 %v3004_v24 }
0x34fc   :  { %v5250_v25 = vpop.eup %5249 }
0x34fd   :  { %v3014_v27 = vmul.f32 %v5250_v25, %v3012_v29 }
0x355e   :  { %v3017_v26 = vpop.permute.xlu1 %3016 }
0x355f   :  { %v3019_v4 = vmul.f32 %v5250_v25, %v3017_v26  ;;  %v3143_v25 = vld [vmem:[#allocation2 + $0x60] sm:$0xc] }
0x3561   :  { %3021 = vrot.lane.b32.xlu0 %v3019_v4, %s5412_s3 }
0x35d3   :  { %v3022_v28 = vpop.permute.xlu0 %3021 }
0x35d4   :  { %v3024_v30 = vadd.f32 %v3022_v28, %v3014_v27 }
0x35d6   :  { %5251 = vtanh.f32 %v3024_v30  ;;  %v3124_v54 = vrot.slane %v3024_v30, 6 }
0x35d7   :  { %5253 = vpow2.f32 %v4816_v32 }
0x35e3   :  { %v5252_v31 = vpop.eup %5251 }
0x35e4   :  { %3027 = vrot.lane.b32.xlu1 %v5252_v31, %s5412_s3  ;;  %v5254_v33 = vpop.eup %5253 }
0x35e5   :  { %v3005_v50 = vadd.f32 1.0, %v5254_v33 }
0x35e7   :  { %5255 = vrcp.f32 %v3005_v50 }
0x35f4   :  { %v5256_v51 = vpop.eup %5255 }
0x3656   :  { %v3028_v52 = vpop.permute.xlu1 %3027 }
0x3657   :  { %v3030_v35 = vmul.f32 %v5256_v51, %v3028_v52 }
0x3659   :  { %v3034_v36 = vrot.slane %v3030_v35, 6 }
0x365b   :  { %4817 = vmatmul.mubr.msk.f32.vlgmr.msra.gmra.mxu0 %vm246_vm1, %v3034_v36 }
0x365c   :  { %3283 = vmatpush1.msra.mxu0 %v6178_v0  ;;  %3330 = vmatprep.mubr.f32.mxu0 %v5411_v3 }
0x365d   :  { %3284 = vmatprep.subr.mxu0 %v6185_v2 }
0x365e   :  { %3285 = vmatpush1.msra.mxu0 %v6191_v5 }
0x365f   :  { %3286 = vmatprep.subr.mxu0 %v6197_v6 }
0x3660   :  { %3287 = vmatpush1.msra.mxu0 %v6203_v8 }
0x3661   :  { %3288 = vmatprep.subr.mxu0 %v6209_v10 }
0x3662   :  { %3289 = vmatpush1.msra.mxu0 %v6215_v11 }
0x3663   :  { %3290 = vmatprep.subr.mxu0 %v6221_v12 }
0x3664   :  { %3291 = vmatpush1.msra.mxu0 %v6227_v13 }
0x3665   :  { %3292 = vmatprep.subr.mxu0 %v6233_v14 }
0x3666   :  { %3293 = vmatpush1.msra.mxu0 %v6239_v15 }
0x3667   :  { %3294 = vmatprep.subr.mxu0 %v6245_v16 }
0x3668   :  { %3295 = vmatpush1.msra.mxu0 %v6251_v17 }
0x3669   :  { %3296 = vmatprep.subr.mxu0 %v6257_v18 }
0x366a   :  { %3297 = vmatpush1.msra.mxu0 %v6263_v19 }
0x366b   :  { %3518 = vmatprep.subr.mxu0 %v6165_v34 }
0x371b   :  { %v3103_v38 = vpop.f32.mrf.mxu0 }
0x371c   :  { %v3108_v44 = vadd.f32 %v3103_v38, %v3031_v43 }
0x371d   :  { %v3105_v40 = vpop.f32.mrf.mxu0 }
0x371e   :  { %v3109_v41 = vadd.f32 %v3105_v40, %v3032_v39  ;;  %v4818_v45 = vmul.f32 -1.442695, %v3108_v44 }
0x3720   :  { %5257 = vtanh.f32 %v3109_v41  ;;  %v4819_v57 = vmul.f32 -1.442695, %v3109_v41 }
0x3721   :  { %5259 = vpow2.f32 %v4818_v45 }
0x372d   :  { %v5258_v42 = vpop.eup %5257 }
0x372e   :  { %3128 = vrot.lane.b32.xlu0 %v5258_v42, %s5412_s3  ;;  %v5260_v46 = vpop.eup %5259 }
0x372f   :  { %v3116_v47 = vadd.f32 1.0, %v5260_v46  ;;  %v3261_v46 = vld [vmem:[#allocation2 + $0x70] sm:$0x30] }
0x3731   :  { %5261 = vrcp.f32 %v3116_v47 }
0x373e   :  { %v5262_v48 = vpop.eup %5261 }
0x373f   :  { %v3126_v55 = vmul.f32 %v5262_v48, %v3124_v54 }
0x37a0   :  { %v3129_v49 = vpop.permute.xlu0 %3128 }
0x37a1   :  { %v3131_v53 = vmul.f32 %v5262_v48, %v3129_v49 }
0x37a3   :  { %3133 = vrot.lane.b32.xlu1 %v3131_v53, %s5412_s3  ;;  %v3260_v53 = vld [vmem:[#allocation2 + $0x60] sm:$0x30] }
0x3815   :  { %v3134_v1 = vpop.permute.xlu1 %3133 }
0x3816   :  { %v3136_v37 = vadd.f32 %v3134_v1, %v3126_v55 }
0x3818   :  { %5263 = vtanh.f32 %v3136_v37  ;;  %v3241_v32 = vrot.slane %v3136_v37, 6 }
0x3819   :  { %5265 = vpow2.f32 %v4819_v57 }
0x3825   :  { %v5264_v56 = vpop.eup %5263 }
0x3826   :  { %3139 = vrot.lane.b32.xlu0 %v5264_v56, %s5412_s3  ;;  %v5266_v58 = vpop.eup %5265 }
0x3827   :  { %v3117_v59 = vadd.f32 1.0, %v5266_v58 }
0x3829   :  { %5267 = vrcp.f32 %v3117_v59 }
0x3836   :  { %v5268_v61 = vpop.eup %5267 }
0x3898   :  { %v3140_v60 = vpop.permute.xlu0 %3139 }
0x3899   :  { %v3142_v62 = vmul.f32 %v5268_v61, %v3140_v60 }
0x389b   :  { %4820 = vmatmul.mubr.msk.f32.vlgmr.msra.gmra.mxu1 %vm246_vm1, %v3142_v62 }
0x389c   :  { %3401 = vmatpush1.msra.mxu1 %v6178_v0  ;;  %3448 = vmatprep.mubr.f32.mxu1 %v5411_v3 }
0x389d   :  { %3402 = vmatprep.subr.mxu1 %v6185_v2 }
0x389e   :  { %3403 = vmatpush1.msra.mxu1 %v6191_v5 }
0x389f   :  { %3404 = vmatprep.subr.mxu1 %v6197_v6 }
0x38a0   :  { %3405 = vmatpush1.msra.mxu1 %v6203_v8 }
0x38a1   :  { %3406 = vmatprep.subr.mxu1 %v6209_v10 }
0x38a2   :  { %3407 = vmatpush1.msra.mxu1 %v6215_v11 }
0x38a3   :  { %3408 = vmatprep.subr.mxu1 %v6221_v12 }
0x38a4   :  { %3409 = vmatpush1.msra.mxu1 %v6227_v13 }
0x38a5   :  { %3410 = vmatprep.subr.mxu1 %v6233_v14 }
0x38a6   :  { %3411 = vmatpush1.msra.mxu1 %v6239_v15 }
0x38a7   :  { %3412 = vmatprep.subr.mxu1 %v6245_v16 }
0x38a8   :  { %3413 = vmatpush1.msra.mxu1 %v6251_v17 }
0x38a9   :  { %3414 = vmatprep.subr.mxu1 %v6257_v18 }
0x38aa   :  { %3415 = vmatpush1.msra.mxu1 %v6263_v19 }
0x38ab   :  { %3629 = vmatprep.subr.mxu1 %v6165_v34 }
0x395b   :  { %v3214_v63 = vpop.f32.mrf.mxu1 }
0x395c   :  { %v3221_v24 = vrot.slane %v3214_v63, 6 }
0x395d   :  { %v3216_v20 = vpop.f32.mrf.mxu1 }
0x395e   :  { %v3222_v21 = vrot.slane %v3216_v20, 6  ;;  %v3225_v26 = vadd.f32 %v3221_v24, %v3143_v25 }
0x3960   :  { %v3226_v9 = vadd.f32 %v3222_v21, %v3144_v7  ;;  %v4821_v4 = vmul.f32 -1.442695, %v3225_v26 }
0x3962   :  { %5269 = vtanh.f32 %v3226_v9  ;;  %v4822_v35 = vmul.f32 -1.442695, %v3226_v9 }
0x3963   :  { %5271 = vpow2.f32 %v4821_v4 }
0x396f   :  { %v5270_v22 = vpop.eup %5269 }
0x3970   :  { %3245 = vrot.lane.b32.xlu1 %v5270_v22, %s5412_s3  ;;  %v5272_v29 = vpop.eup %5271 }
0x3971   :  { %v3233_v27 = vadd.f32 1.0, %v5272_v29 }
0x3973   :  { %5273 = vrcp.f32 %v3233_v27 }
0x3980   :  { %v5274_v28 = vpop.eup %5273 }
0x3981   :  { %v3243_v33 = vmul.f32 %v5274_v28, %v3241_v32 }
0x39e2   :  { %v3246_v30 = vpop.permute.xlu1 %3245 }
0x39e3   :  { %v3248_v31 = vmul.f32 %v5274_v28, %v3246_v30 }
0x39e5   :  { %3250 = vrot.lane.b32.xlu0 %v3248_v31, %s5412_s3 }
0x3a57   :  { %v3251_v50 = vpop.permute.xlu0 %3250 }
0x3a58   :  { %v3253_v51 = vadd.f32 %v3251_v50, %v3243_v33 }
0x3a5a   :  { %5275 = vtanh.f32 %v3253_v51  ;;  %v3359_v58 = vrot.slane %v3253_v51, 6 }
0x3a5b   :  { %5277 = vpow2.f32 %v4822_v35  ;;  %v6469_v35 = vld [vmem:[%s6675_s2 + $0x70] sm:$0xff] }
0x3a67   :  { %v5276_v52 = vpop.eup %5275 }
0x3a68   :  { %3256 = vrot.lane.b32.xlu1 %v5276_v52, %s5412_s3  ;;  %v5278_v36 = vpop.eup %5277 }
0x3a69   :  { %v3234_v38 = vadd.f32 1.0, %v5278_v36  ;;  %v6476_v36 = vld [vmem:[%s6675_s2 + $0x68] sm:$0xff] }
0x3a6b   :  { %5279 = vrcp.f32 %v3234_v38  ;;  %v6482_v38 = vld [vmem:[%s6675_s2 + $0x60] sm:$0xff] }
0x3a78   :  { %v5280_v39 = vpop.eup %5279 }
0x3ada   :  { %v3257_v40 = vpop.permute.xlu1 %3256 }
0x3adb   :  { %v3259_v41 = vmul.f32 %v5280_v39, %v3257_v40  ;;  %v5399_v39 = vld [vmem:[%s6675_s2 + $0x58] sm:$0xff]  ;;  %v5400_v40 = vld [vmem:[%s6675_s2 + $0x50] sm:$0xff] }
0x3add   :  { %v3263_v42 = vrot.slane %v3259_v41, 2  ;;  %v5401_v41 = vld [vmem:[%s6675_s2 + $0x48] sm:$0xff] }
0x3adf   :  { %4823 = vmatmul.mubr.msk.f32.vlgmr.msra.gmra.mxu0 %vm246_vm1, %v3263_v42  ;;  %v5402_v42 = vld [vmem:[%s6675_s2 + $0x40] sm:$0xff] }
0x3ae0   :  { %3519 = vmatpush1.msra.mxu0 %v6178_v0  ;;  %3566 = vmatprep.mubr.f32.mxu0 %v5411_v3 }
0x3ae1   :  { %3520 = vmatprep.subr.mxu0 %v6185_v2 }
0x3ae2   :  { %3521 = vmatpush1.msra.mxu0 %v6191_v5 }
0x3ae3   :  { %3522 = vmatprep.subr.mxu0 %v6197_v6 }
0x3ae4   :  { %3523 = vmatpush1.msra.mxu0 %v6203_v8 }
0x3ae5   :  { %3524 = vmatprep.subr.mxu0 %v6209_v10 }
0x3ae6   :  { %3525 = vmatpush1.msra.mxu0 %v6215_v11 }
0x3ae7   :  { %3526 = vmatprep.subr.mxu0 %v6221_v12 }
0x3ae8   :  { %3527 = vmatpush1.msra.mxu0 %v6227_v13 }
0x3ae9   :  { %3528 = vmatprep.subr.mxu0 %v6233_v14 }
0x3aea   :  { %3529 = vmatpush1.msra.mxu0 %v6239_v15 }
0x3aeb   :  { %3530 = vmatprep.subr.mxu0 %v6245_v16 }
0x3aec   :  { %3531 = vmatpush1.msra.mxu0 %v6251_v17 }
0x3aed   :  { %3532 = vmatprep.subr.mxu0 %v6257_v18 }
0x3aee   :  { %3533 = vmatpush1.msra.mxu0 %v6263_v19 }
0x3aef   :  { %3747 = vmatprep.subr.mxu0 %v6165_v34 }
0x3b9f   :  { %v3332_v43 = vpop.f32.mrf.mxu0 }
0x3ba0   :  { %v3339_v49 = vrot.slane %v3332_v43, 4  ;;  %v5403_v43 = vld [vmem:[%s6675_s2 + $0x38] sm:$0xff] }
0x3ba1   :  { %v3334_v44 = vpop.f32.mrf.mxu0 }
0x3ba2   :  { %v3340_v45 = vrot.slane %v3334_v44, 4  ;;  %v3343_v54 = vadd.f32 %v3339_v49, %v3260_v53  ;;  %v5404_v44 = vld [vmem:[%s6675_s2 + $0x30] sm:$0xff]  ;;  %v5409_v49 = vld [vmem:[%s6675_s2 + $0x8] sm:$0xff]  ;;  %v5410_v53 = vld [vmem:[%s6675_s2] sm:$0xff] }
0x3ba4   :  { %v3344_v47 = vadd.f32 %v3340_v45, %v3261_v46  ;;  %v4824_v55 = vmul.f32 -1.442695, %v3343_v54  ;;  %v5405_v45 = vld [vmem:[%s6675_s2 + $0x28] sm:$0xff]  ;;  %v5406_v46 = vld [vmem:[%s6675_s2 + $0x20] sm:$0xff] }
0x3ba6   :  { %5281 = vtanh.f32 %v3344_v47  ;;  %v4825_v63 = vmul.f32 -1.442695, %v3344_v47  ;;  %v5407_v47 = vld [vmem:[%s6675_s2 + $0x18] sm:$0xff] }
0x3ba7   :  { %5283 = vpow2.f32 %v4824_v55  ;;  %v3497_v55 = vld [vmem:[#allocation2 + $0x28] sm:$0x3] }
0x3bb3   :  { %v5282_v48 = vpop.eup %5281 }
0x3bb4   :  { %3363 = vrot.lane.b32.xlu0 %v5282_v48, %s5412_s3  ;;  %v5284_v1 = vpop.eup %5283  ;;  %v5408_v48 = vld [vmem:[%s6675_s2 + $0x10] sm:$0xff] }
0x3bb5   :  { %v3351_v37 = vadd.f32 1.0, %v5284_v1 }
0x3bb7   :  { %5285 = vrcp.f32 %v3351_v37 }
0x3bc4   :  { %v5286_v56 = vpop.eup %5285 }
0x3bc5   :  { %v3361_v59 = vmul.f32 %v5286_v56, %v3359_v58 }
0x3c26   :  { %v3364_v57 = vpop.permute.xlu0 %3363 }
0x3c27   :  { %v3366_v34 = vmul.f32 %v5286_v56, %v3364_v57  ;;  %v3496_v57 = vld [vmem:[#allocation2 + $0x78] sm:$0x3] }
0x3c29   :  { %3368 = vrot.lane.b32.xlu1 %v3366_v34, %s5412_s3 }
0x3c9b   :  { %v3369_v61 = vpop.permute.xlu1 %3368 }
0x3c9c   :  { %v3371_v60 = vadd.f32 %v3369_v61, %v3361_v59 }
0x3c9e   :  { %5287 = vtanh.f32 %v3371_v60  ;;  %v3477_v26 = vrot.slane %v3371_v60, 6 }
0x3c9f   :  { %5289 = vpow2.f32 %v4825_v63 }
0x3cab   :  { %v5288_v62 = vpop.eup %5287 }
0x3cac   :  { %3374 = vrot.lane.b32.xlu0 %v5288_v62, %s5412_s3  ;;  %v5290_v20 = vpop.eup %5289 }
0x3cad   :  { %v3352_v21 = vadd.f32 1.0, %v5290_v20 }
0x3caf   :  { %5291 = vrcp.f32 %v3352_v21 }
0x3cbc   :  { %v5292_v7 = vpop.eup %5291 }
0x3d1e   :  { %v3375_v9 = vpop.permute.xlu0 %3374 }
0x3d1f   :  { %v3377_v22 = vmul.f32 %v5292_v7, %v3375_v9 }
0x3d21   :  { %v3381_v24 = vrot.slane %v3377_v22, 4 }
0x3d23   :  { %4826 = vmatmul.mubr.msk.f32.vlgmr.msra.gmra.mxu1 %vm246_vm1, %v3381_v24 }
0x3d24   :  { %3630 = vmatpush1.msra.mxu1 %v6178_v0  ;;  %3677 = vmatprep.mubr.f32.mxu1 %v5411_v3  ;;  %v5395_v0 = vld [vmem:[%s6675_s2 + $0x78] sm:$0xff]  ;;  %s5420_s2 = smov 98  }
0x3d25   :  { %3631 = vmatprep.subr.mxu1 %v6185_v2 }
0x3d26   :  { %3632 = vmatpush1.msra.mxu1 %v6191_v5 }
0x3d27   :  { %3633 = vmatprep.subr.mxu1 %v6197_v6 }
0x3d28   :  { %3634 = vmatpush1.msra.mxu1 %v6203_v8  ;;  %v3379_v8 = vld [vmem:[#allocation2 + $0x70] sm:$0xc0] }
0x3d29   :  { %3635 = vmatprep.subr.mxu1 %v6209_v10 }
0x3d2a   :  { %3636 = vmatpush1.msra.mxu1 %v6215_v11 }
0x3d2b   :  { %3637 = vmatprep.subr.mxu1 %v6221_v12 }
0x3d2c   :  { %3638 = vmatpush1.msra.mxu1 %v6227_v13  ;;  %v3378_v13 = vld [vmem:[#allocation2 + $0x60] sm:$0xc0] }
0x3d2d   :  { %3639 = vmatprep.subr.mxu1 %v6233_v14 }
0x3d2e   :  { %3640 = vmatpush1.msra.mxu1 %v6239_v15 }
0x3d2f   :  { %3641 = vmatprep.subr.mxu1 %v6245_v16 }
0x3d30   :  { %3642 = vmatpush1.msra.mxu1 %v6251_v17 }
0x3d31   :  { %3643 = vmatprep.subr.mxu1 %v6257_v18 }
0x3d32   :  { %3644 = vmatpush1.msra.mxu1 %v6263_v19 }
0x3d33   :  { %3865 = vmatprep.subr.mxu1 %v5395_v0 }
0x3de3   :  { %v3450_v2 = vpop.f32.mrf.mxu1 }
0x3de4   :  { %v3457_v12 = vrot.slane %v3450_v2, 2 }
0x3de5   :  { %v3452_v5 = vpop.f32.mrf.mxu1 }
0x3de6   :  { %v3458_v6 = vrot.slane %v3452_v5, 2  ;;  %v3461_v14 = vadd.f32 %v3457_v12, %v3378_v13  ;;  %v3609_v13 = vld [vmem:[#allocation2 + $0x28] sm:$0xc] }
0x3de8   :  { %v3462_v10 = vadd.f32 %v3458_v6, %v3379_v8  ;;  %v4827_v15 = vmul.f32 -1.442695, %v3461_v14 }
0x3dea   :  { %5293 = vtanh.f32 %v3462_v10  ;;  %v4828_v30 = vmul.f32 -1.442695, %v3462_v10 }
0x3deb   :  { %5295 = vpow2.f32 %v4827_v15 }
0x3df7   :  { %v5294_v11 = vpop.eup %5293 }
0x3df8   :  { %3481 = vrot.lane.b32.xlu1 %v5294_v11, %s5412_s3  ;;  %v5296_v16 = vpop.eup %5295 }
0x3df9   :  { %v3469_v17 = vadd.f32 1.0, %v5296_v16 }
0x3dfb   :  { %5297 = vrcp.f32 %v3469_v17  ;;  %v3608_v17 = vld [vmem:[#allocation2 + $0x78] sm:$0xc] }
0x3e08   :  { %v5298_v18 = vpop.eup %5297 }
0x3e09   :  { %v3479_v4 = vmul.f32 %v5298_v18, %v3477_v26 }
0x3e6a   :  { %v3482_v19 = vpop.permute.xlu1 %3481 }
0x3e6b   :  { %v3484_v25 = vmul.f32 %v5298_v18, %v3482_v19 }
0x3e6d   :  { %3486 = vrot.lane.b32.xlu0 %v3484_v25, %s5412_s3 }
0x3edf   :  { %v3487_v29 = vpop.permute.xlu0 %3486 }
0x3ee0   :  { %v6461_v27 = vadd.f32 %v3487_v29, %v3479_v4 }
0x3ee2   :  { %5299 = vtanh.f32 %v6461_v27  ;;  %v3589_v20 = vrot.slane %v6461_v27, 6 }
0x3ee3   :  { %5301 = vpow2.f32 %v4828_v30 }
0x3eef   :  { %v5300_v28 = vpop.eup %5299 }
0x3ef0   :  { %3492 = vrot.lane.b32.xlu1 %v5300_v28, %s5412_s3  ;;  %v5302_v31 = vpop.eup %5301 }
0x3ef1   :  { %v3470_v32 = vadd.f32 1.0, %v5302_v31 }
0x3ef3   :  { %5303 = vrcp.f32 %v3470_v32 }
0x3f00   :  { %v5304_v33 = vpop.eup %5303 }
0x3f62   :  { %v3493_v50 = vpop.permute.xlu1 %3492 }
0x3f63   :  { %v3495_v51 = vmul.f32 %v5304_v33, %v3493_v50 }
0x3f65   :  { %v3499_v52 = vrot.slane %v3495_v51, 6 }
0x3f67   :  { %4829 = vmatmul.mubr.msk.f32.vlgmr.msra.gmra.mxu0 %vm246_vm1, %v3499_v52 }
0x3f68   :  { %3748 = vmatpush1.msra.mxu0 %v6469_v35  ;;  %3795 = vmatprep.mubr.f32.mxu0 %v5411_v3 }
0x3f69   :  { %3749 = vmatprep.subr.mxu0 %v6476_v36 }
0x3f6a   :  { %3750 = vmatpush1.msra.mxu0 %v6482_v38 }
0x3f6b   :  { %3751 = vmatprep.subr.mxu0 %v5399_v39 }
0x3f6c   :  { %3752 = vmatpush1.msra.mxu0 %v5400_v40 }
0x3f6d   :  { %3753 = vmatprep.subr.mxu0 %v5401_v41 }
0x3f6e   :  { %3754 = vmatpush1.msra.mxu0 %v5402_v42 }
0x3f6f   :  { %3755 = vmatprep.subr.mxu0 %v5403_v43 }
0x3f70   :  { %3756 = vmatpush1.msra.mxu0 %v5404_v44 }
0x3f71   :  { %3757 = vmatprep.subr.mxu0 %v5405_v45 }
0x3f72   :  { %3758 = vmatpush1.msra.mxu0 %v5406_v46 }
0x3f73   :  { %3759 = vmatprep.subr.mxu0 %v5407_v47 }
0x3f74   :  { %3760 = vmatpush1.msra.mxu0 %v5408_v48 }
0x3f75   :  { %3761 = vmatprep.subr.mxu0 %v5409_v49 }
0x3f76   :  { %3762 = vmatpush1.msra.mxu0 %v5410_v53 }
0x3f77   :  { %4887 = vmatprep.subr.mxu0 %v5411_v3 }
0x4027   :  { %v3568_v54 = vpop.f32.mrf.mxu0 }
0x4028   :  { %v3573_v34 = vadd.f32 %v3568_v54, %v3496_v57 }
0x4029   :  { %v3570_v1 = vpop.f32.mrf.mxu0 }
0x402a   :  { %v3574_v37 = vadd.f32 %v3570_v1, %v3497_v55  ;;  %v4830_v58 = vmul.f32 -1.442695, %v3573_v34 }
0x402c   :  { %5305 = vtanh.f32 %v3574_v37  ;;  %v4831_v24 = vmul.f32 -1.442695, %v3574_v37 }
0x402d   :  { %5307 = vpow2.f32 %v4830_v58 }
0x4039   :  { %v5306_v56 = vpop.eup %5305 }
0x403a   :  { %3593 = vrot.lane.b32.xlu0 %v5306_v56, %s5412_s3  ;;  %v5308_v59 = vpop.eup %5307 }
0x403b   :  { %v3581_v61 = vadd.f32 1.0, %v5308_v59 }
0x403d   :  { %5309 = vrcp.f32 %v3581_v61 }
0x404a   :  { %v5310_v60 = vpop.eup %5309 }
0x404b   :  { %v3591_v21 = vmul.f32 %v5310_v60, %v3589_v20 }
0x40ac   :  { %v3594_v62 = vpop.permute.xlu0 %3593 }
0x40ad   :  { %v3596_v63 = vmul.f32 %v5310_v60, %v3594_v62 }
0x40af   :  { %3598 = vrot.lane.b32.xlu1 %v3596_v63, %s5412_s3 }
0x4121   :  { %v3599_v7 = vpop.permute.xlu1 %3598 }
0x4122   :  { %v3601_v9 = vadd.f32 %v3599_v7, %v3591_v21 }
0x4124   :  { %5311 = vtanh.f32 %v3601_v9  ;;  %v3706_v28 = vrot.slane %v3601_v9, 6 }
0x4125   :  { %5313 = vpow2.f32 %v4831_v24 }
0x4131   :  { %v5312_v22 = vpop.eup %5311 }
0x4132   :  { %3604 = vrot.lane.b32.xlu0 %v5312_v22, %s5412_s3  ;;  %v5314_v0 = vpop.eup %5313 }
0x4133   :  { %v3582_v2 = vadd.f32 1.0, %v5314_v0  ;;  %v3844_v0 = vld [vmem:[#allocation2 + $0x28] sm:$0xc0] }
0x4135   :  { %5315 = vrcp.f32 %v3582_v2 }
0x4142   :  { %v5316_v5 = vpop.eup %5315 }
0x41a4   :  { %v3605_v6 = vpop.permute.xlu0 %3604 }
0x41a5   :  { %v3607_v8 = vmul.f32 %v5316_v5, %v3605_v6  ;;  %v3963_v5 = vld [vmem:[%s6678_s5 + $0x8] sm:$0x3f]  ;;  %v3962_v6 = vld [vmem:[%s6678_s5] sm:$0xff] }
0x41a7   :  { %4832 = vmatmul.mubr.msk.f32.vlgmr.msra.gmra.mxu1 %vm246_vm1, %v3607_v8  ;;  %v3961_v8 = vld [vmem:[%s6679_s4] sm:$0x1] }
0x41a8   :  { %3866 = vmatpush1.msra.mxu1 %v6469_v35  ;;  %3913 = vmatprep.mubr.f32.mxu1 %v5411_v3 }
0x41a9   :  { %3867 = vmatprep.subr.mxu1 %v6476_v36 }
0x41aa   :  { %3868 = vmatpush1.msra.mxu1 %v6482_v38 }
0x41ab   :  { %3869 = vmatprep.subr.mxu1 %v5399_v39 }
0x41ac   :  { %3870 = vmatpush1.msra.mxu1 %v5400_v40 }
0x41ad   :  { %3871 = vmatprep.subr.mxu1 %v5401_v41 }
0x41ae   :  { %3872 = vmatpush1.msra.mxu1 %v5402_v42 }
0x41af   :  { %3873 = vmatprep.subr.mxu1 %v5403_v43  ;;  %v3726_v43 = vld [vmem:[#allocation2 + $0x28] sm:$0x30] }
0x41b0   :  { %3874 = vmatpush1.msra.mxu1 %v5404_v44 }
0x41b1   :  { %3875 = vmatprep.subr.mxu1 %v5405_v45 }
0x41b2   :  { %3876 = vmatpush1.msra.mxu1 %v5406_v46 }
0x41b3   :  { %3877 = vmatprep.subr.mxu1 %v5407_v47  ;;  %v3725_v47 = vld [vmem:[#allocation2 + $0x78] sm:$0x30] }
0x41b4   :  { %3878 = vmatpush1.msra.mxu1 %v5408_v48 }
0x41b5   :  { %3879 = vmatprep.subr.mxu1 %v5409_v49 }
0x41b6   :  { %3880 = vmatpush1.msra.mxu1 %v5410_v53 }
0x41b7   :  { %4916 = vmatprep.subr.mxu1 %v5411_v3 }
0x4267   :  { %v3679_v10 = vpop.f32.mrf.mxu1 }
0x4268   :  { %v3686_v16 = vrot.slane %v3679_v10, 6 }
0x4269   :  { %v3681_v11 = vpop.f32.mrf.mxu1 }
0x426a   :  { %v3687_v12 = vrot.slane %v3681_v11, 6  ;;  %v3690_v18 = vadd.f32 %v3686_v16, %v3608_v17 }
0x426c   :  { %v3691_v14 = vadd.f32 %v3687_v12, %v3609_v13  ;;  %v4833_v19 = vmul.f32 -1.442695, %v3690_v18  ;;  %v3843_v12 = vld [vmem:[#allocation2 + $0x78] sm:$0xc0] }
0x426e   :  { %5317 = vtanh.f32 %v3691_v14  ;;  %v4834_v50 = vmul.f32 -1.442695, %v3691_v14 }
0x426f   :  { %5319 = vpow2.f32 %v4833_v19 }
0x427b   :  { %v5318_v15 = vpop.eup %5317 }
0x427c   :  { %3710 = vrot.lane.b32.xlu1 %v5318_v15, %s5412_s3  ;;  %v5320_v25 = vpop.eup %5319 }
0x427d   :  { %v3698_v26 = vadd.f32 1.0, %v5320_v25 }
0x427f   :  { %5321 = vrcp.f32 %v3698_v26 }
0x428c   :  { %v5322_v4 = vpop.eup %5321 }
0x428d   :  { %v3708_v30 = vmul.f32 %v5322_v4, %v3706_v28 }
0x42ee   :  { %v3711_v29 = vpop.permute.xlu1 %3710 }
0x42ef   :  { %v3713_v27 = vmul.f32 %v5322_v4, %v3711_v29 }
0x42f1   :  { %3715 = vrot.lane.b32.xlu0 %v3713_v27, %s5412_s3 }
0x4363   :  { %v3716_v31 = vpop.permute.xlu0 %3715 }
0x4364   :  { %v3718_v32 = vadd.f32 %v3716_v31, %v3708_v30  ;;  %v4076_v30 = vld [vmem:[%s6680_s7 + $0x18] sm:$0xff] }
0x4366   :  { %5323 = vtanh.f32 %v3718_v32  ;;  %v3824_v56 = vrot.slane %v3718_v32, 6 }
0x4367   :  { %5325 = vpow2.f32 %v4834_v50 }
0x4373   :  { %v5324_v33 = vpop.eup %5323 }
0x4374   :  { %3721 = vrot.lane.b32.xlu1 %v5324_v33, %s5412_s3  ;;  %v5326_v51 = vpop.eup %5325 }
0x4375   :  { %v3699_v52 = vadd.f32 1.0, %v5326_v51  ;;  %v4075_v51 = vld [vmem:[%s6680_s7 + $0x10] sm:$0xff] }
0x4377   :  { %5327 = vrcp.f32 %v3699_v52  ;;  %v4074_v52 = vld [vmem:[%s6680_s7 + $0x8] sm:$0xff] }
0x4384   :  { %v5328_v35 = vpop.eup %5327 }
0x43e6   :  { %v3722_v36 = vpop.permute.xlu1 %3721 }
0x43e7   :  { %v3724_v38 = vmul.f32 %v5328_v35, %v3722_v36  ;;  %v4073_v35 = vld [vmem:[%s6680_s7] sm:$0xff] }
0x43e8   :  { %v3964_v36 = vld [vmem:[%s6681_s6] sm:$0x1] }
0x43e9   :  { %v3728_v39 = vrot.slane %v3724_v38, 2 }
0x43eb   :  { %4835 = vmatmul.mubr.msk.f32.vlgmr.msra.gmra.mxu0 %vm246_vm1, %v3728_v39 }
0x43ec   :  { %4891 = vmatprep.mubr.msk.f32.mxu0 %vm5413_vm3, %v5411_v3  ;;  %4888 = vmatpush3.msk.msra.mxu0 %vm3969_vm2, %v3963_v5  ;;  %v4163_v5 = vld [vmem:[%s6684_s12] sm:$0xf] }
0x43ed   :  { %4889 = vmatprep.subr.mxu0 %v5411_v3 }
0x43ee   :  { %4890 = vmatpush3.msra.mxu0 %v3962_v6 }
0x43ef   :  { %4892 = vmatmul.mubr.msk.f32.vlgmr.msra.gmra.mxu0 %vm3965_vm4, %v3961_v8  ;;  %4894 = vmatprep.subr.mxu0 %v5411_v3 }
0x43f0   :  { %4902 = vmatprep.mubr.msk.f32.mxu0 %vm5413_vm3, %v5411_v3  ;;  %4895 = vmatpush3.msra.mxu0 %v4076_v30  ;;  %v4495_v30 = vld [vmem:[%s6685_s9] sm:$0xff] }
0x43f1   :  { %4896 = vmatprep.subr.mxu0 %v5411_v3 }
0x43f2   :  { %4897 = vmatpush3.msra.mxu0 %v4075_v51 }
0x43f3   :  { %4898 = vmatprep.subr.mxu0 %v5411_v3 }
0x43f4   :  { %4899 = vmatpush3.msra.mxu0 %v4074_v52 }
0x43f5   :  { %4900 = vmatprep.subr.mxu0 %v5411_v3 }
0x43f6   :  { %4901 = vmatpush3.msra.mxu0 %v4073_v35 }
0x43f7   :  { %4905 = vmatprep.subr.mxu0 %v5411_v3 }
0x44ab   :  { %v3797_v40 = vpop.f32.mrf.mxu0 }
0x44ac   :  { %v3804_v46 = vrot.slane %v3797_v40, 4 }
0x44ad   :  { %v3799_v41 = vpop.f32.mrf.mxu0 }
0x44ae   :  { %v3805_v42 = vrot.slane %v3799_v41, 4  ;;  %v3808_v48 = vadd.f32 %v3804_v46, %v3725_v47 }
0x44af   :  { %v4039_v27 = vpop.f32.mrf.mxu0 }
0x44b0   :  { %v3809_v44 = vadd.f32 %v3805_v42, %v3726_v43  ;;  %v4836_v49 = vmul.f32 -1.442695, %v3808_v48  ;;  %v4040_v41 = vadd.f32 %v4039_v27, %v3964_v36  ;;  %v4497_v27 = vld [vmem:[%s6685_s9 + $0x10] sm:$0xff] }
0x44b1   :  { %v4893_v28 = vpop.f32.mrf.mxu0 }
0x44b2   :  { %5329 = vtanh.f32 %v3809_v44  ;;  %v4837_v61 = vmul.f32 -1.442695, %v3809_v44  ;;  %v4059_v44 = vrot.slane %v4040_v41, 3  ;;  %v4051_v46 = vrot.slane %v4040_v41, 6  ;;  %v4496_v28 = vld [vmem:[%s6685_s9 + $0x8] sm:$0xff] }
0x44b3   :  { %5331 = vpow2.f32 %v4836_v49  ;;  %v4580_v41 = vld [vmem:[%s6686_s13 + $0x8] sm:$0xff] }
0x44bf   :  { %v5330_v45 = vpop.eup %5329 }
0x44c0   :  { %3828 = vrot.lane.b32.xlu0 %v5330_v45, %s5412_s3  ;;  %v5332_v53 = vpop.eup %5331 }
0x44c1   :  { %v3816_v54 = vadd.f32 1.0, %v5332_v53 }
0x44c3   :  { %5333 = vrcp.f32 %v3816_v54 }
0x44d0   :  { %v5334_v55 = vpop.eup %5333 }
0x44d1   :  { %v3826_v57 = vmul.f32 %v5334_v55, %v3824_v56 }
0x4532   :  { %v3829_v1 = vpop.permute.xlu0 %3828 }
0x4533   :  { %v3831_v37 = vmul.f32 %v5334_v55, %v3829_v1 }
0x4535   :  { %3833 = vrot.lane.b32.xlu1 %v3831_v37, %s5412_s3 }
0x45a7   :  { %v3834_v34 = vpop.permute.xlu1 %3833 }
0x45a8   :  { %v3836_v58 = vadd.f32 %v3834_v34, %v3826_v57  ;;  %v4162_v57 = vld [vmem:[%s6682_s11 + $0x18] sm:$0xff]  ;;  %v4161_v34 = vld [vmem:[%s6682_s11 + $0x10] sm:$0xff] }
0x45aa   :  { %5335 = vtanh.f32 %v3836_v58  ;;  %v3942_v25 = vrot.slane %v3836_v58, 6  ;;  %v4160_v58 = vld [vmem:[%s6682_s11 + $0x8] sm:$0xff] }
0x45ab   :  { %5337 = vpow2.f32 %v4837_v61  ;;  %v4843_v61 = vld [vmem:[%s6683_s8] ss:$0 sm:$0xff] }
0x45b7   :  { %v5336_v59 = vpop.eup %5335 }
0x45b8   :  { %3839 = vrot.lane.b32.xlu0 %v5336_v59, %s5412_s3  ;;  %v5338_v60 = vpop.eup %5337  ;;  %v4159_v59 = vld [vmem:[%s6682_s11] sm:$0xff] }
0x45b9   :  { %v3817_v62 = vadd.f32 1.0, %v5338_v60 }
0x45bb   :  { %5339 = vrcp.f32 %v3817_v62 }
0x45c8   :  { %v5340_v63 = vpop.eup %5339 }
0x462a   :  { %v3840_v20 = vpop.permute.xlu0 %3839 }
0x462b   :  { %v3842_v21 = vmul.f32 %v5340_v63, %v3840_v20 }
0x462d   :  { %v3846_v7 = vrot.slane %v3842_v21, 4 }
0x462f   :  { %4838 = vmatmul.mubr.msk.f32.vlgmr.msra.gmra.mxu1 %vm246_vm1, %v3846_v7 }
0x4630   :  { %4924 = vmatprep.mubr.msk.f32.mxu1 %vm5413_vm3, %v5411_v3  ;;  %4917 = vmatpush3.msra.mxu1 %v4162_v57 }
0x4631   :  { %4918 = vmatprep.subr.mxu1 %v5411_v3 }
0x4632   :  { %4919 = vmatpush3.msra.mxu1 %v4161_v34 }
0x4633   :  { %4920 = vmatprep.subr.mxu1 %v5411_v3 }
0x4634   :  { %4921 = vmatpush3.msra.mxu1 %v4160_v58 }
0x4635   :  { %4922 = vmatprep.subr.mxu1 %v5411_v3 }
0x4636   :  { %4923 = vmatpush3.msra.mxu1 %v4159_v59 }
0x4637   :  { %4932 = vmatprep.subr.mxu1 %v5411_v3 }
0x46ef   :  { %v3915_v9 = vpop.f32.mrf.mxu1 }
0x46f0   :  { %v3922_v11 = vrot.slane %v3915_v9, 2 }
0x46f1   :  { %v3917_v22 = vpop.f32.mrf.mxu1 }
0x46f2   :  { %v3923_v24 = vrot.slane %v3917_v22, 2  ;;  %v3926_v13 = vadd.f32 %v3922_v11, %v3843_v12 }
0x46f4   :  { %v3927_v2 = vadd.f32 %v3923_v24, %v3844_v0  ;;  %v4839_v14 = vmul.f32 -1.442695, %v3926_v13 }
0x46f6   :  { %5341 = vtanh.f32 %v3927_v2  ;;  %v4840_v32 = vmul.f32 -1.442695, %v3927_v2 }
0x46f7   :  { %5343 = vpow2.f32 %v4839_v14 }
0x4703   :  { %v5342_v10 = vpop.eup %5341 }
0x4704   :  { %3946 = vrot.lane.b32.xlu1 %v5342_v10, %s5412_s3  ;;  %v5344_v15 = vpop.eup %5343 }
0x4705   :  { %v3934_v16 = vadd.f32 1.0, %v5344_v15 }
0x4707   :  { %5345 = vrcp.f32 %v3934_v16 }
0x4714   :  { %v5346_v17 = vpop.eup %5345 }
0x4715   :  { %v3944_v26 = vmul.f32 %v5346_v17, %v3942_v25 }
0x4776   :  { %v3947_v18 = vpop.permute.xlu1 %3946 }
0x4777   :  { %v3949_v19 = vmul.f32 %v5346_v17, %v3947_v18 }
0x4779   :  { %3951 = vrot.lane.b32.xlu0 %v3949_v19, %s5412_s3 }
0x47eb   :  { %v3952_v4 = vpop.permute.xlu0 %3951 }
0x47ec   :  { %v3954_v29 = vadd.f32 %v3952_v4, %v3944_v26 }
0x47ee   :  { %5347 = vtanh.f32 %v3954_v29  ;;  %v4498_v29 = vld [vmem:[%s6685_s9 + $0x18] sm:$0xff] }
0x47ef   :  { %5349 = vpow2.f32 %v4840_v32  ;;  %v4581_v32 = vld [vmem:[%s6686_s13 + $0x10] sm:$0xff] }
0x47fb   :  { %v5348_v31 = vpop.eup %5347 }
0x47fc   :  { %3957 = vrot.lane.b32.xlu1 %v5348_v31, %s5412_s3  ;;  %v5350_v33 = vpop.eup %5349  ;;  %v4582_v31 = vld [vmem:[%s6686_s13 + $0x18] sm:$0xff] }
0x47fd   :  { %v3935_v50 = vadd.f32 1.0, %v5350_v33 }
0x47ff   :  { %5351 = vrcp.f32 %v3935_v50 }
0x480c   :  { %v5352_v38 = vpop.eup %5351 }
0x486e   :  { %v3958_v39 = vpop.permute.xlu1 %3957 }
0x486f   :  { %v3960_v40 = vmul.f32 %v5352_v38, %v3958_v39 }
0x4871   :  { %v4055_v42 = vrot.slane %v3960_v40, 3  ;;  %v4046_v43 = vrot.slane %v3960_v40, 5  ;;  %v4044_v45 = vrot.slane %v3960_v40, 6  ;;  %v4053_v48 = vrot.slane %v3960_v40, 4 }
0x4873   :  { %4056 = vrot.lane.b32.xlu1 %v4055_v42, %s5414_s19  ;;  %4047 = vrot.lane.b32.xlu0 %v4046_v43, %s5414_s19  ;;  %v4579_v42 = vld [vmem:[%s6686_s13] sm:$0xff]  ;;  %s5417_s13 = smov 122  }
0x4874   :  { %v4851_v43 = vld [vmem:[%s6687_s10] ss:$0 sm:$0xff]  ;;  %s5416_s10 = smov 116  }
0x4877   :  { %4060 = vrot.lane.b32.xlu0 %v4059_v44, %s5414_s19 }
0x48e5   :  { %v4048_v47 = vpop.permute.xlu0 %4047  ;;  %v4057_v54 = vpop.permute.xlu1 %4056 }
0x48e6   :  { %v4064_v49 = vsel %vm4063_vm5, %v4044_v45, %v4048_v47  ;;  %v5415_v47 = vmov 1966171168  }
0x48e7   :  { %v4066_v53 = vsel %vm4065_vm6, %v4064_v49, %v4051_v46 }
0x48e8   :  { %v4068_v55 = vsel %vm4067_vm7, %v4066_v53, %v4053_v48  ;;  %v4660_v48 = vunpack.c.l.s4 %v5415_v47 }
0x48e9   :  { %v4061_v1 = vpop.permute.xlu0 %4060  ;;  %v4070_v37 = vsel %vm4069_vm8, %v4068_v55, %v4057_v54 }
0x48ea   :  { %v4072_v56 = vsel %vm4071_vm9, %v4070_v37, %v4061_v1  ;;  %v4661_v49 = vunpack.c.0.s8 %v4660_v48 }
0x48eb   :  { %4903 = vmatmul.mubr.msk.f32.vlgmr.msra.gmra.mxu0 %vm4084_vm10, %v4072_v56 }
0x48ec   :  { %4913 = vmatprep.mubr.msk.f32.mxu0 %vm5413_vm3, %v5411_v3  ;;  %4906 = vmatpush3.msra.mxu0 %v4162_v57  ;;  %v4664_v53 = vsub.s32 %v4661_v49, %v5652_v23 }
0x48ed   :  { %4907 = vmatprep.subr.mxu0 %v5411_v3 }
0x48ee   :  { %4908 = vmatpush3.msra.mxu0 %v4161_v34 }
0x48ef   :  { %4909 = vmatprep.subr.mxu0 %v5411_v3 }
0x48f0   :  { %4910 = vmatpush3.msra.mxu0 %v4160_v58 }
0x48f1   :  { %4911 = vmatprep.subr.mxu0 %v5411_v3 }
0x48f2   :  { %4912 = vmatpush3.msra.mxu0 %v4159_v59 }
0x48f3   :  { %4927 = vmatprep.subr.mxu0 %v5411_v3 }
0x49ab   :  { %v4154_v60 = vpop.f32.mrf.mxu0 }
0x49ac   :  { %v4155_v62 = vadd.f32 %v4843_v61, %v4154_v60 }
0x49ad   :  { %v4904_v63 = vpop.f32.mrf.mxu0 }
0x49ae   :  { %4165 = vrot.lane.b32.xlu1 %v4155_v62, %s5414_s19  ;;  %v4242_v20 = vrot.slane %v4155_v62, 3  ;;  %v4244_v21 = vrot.slane %v4155_v62, 5  ;;  %v4158_v9 = vmul.f32 0.35355338, %v4155_v62 }
0x49b0   :  { %v4246_v7 = vsel %vm4067_vm7, %v4242_v20, %v4244_v21 }
0x49b1   :  { %4248 = vrot.lane.b32.xlu0 %v4246_v7, %s5414_s19 }
0x49b2   :  { %4412 = vrot.lane.b32.xlu1 %v4155_v62, %s5412_s3  ;;  %v4656_v62 = vld [vmem:[%s6688_s14] sm:$0x1] }
0x49b5   :  { %4490 = vrot.lane.b32.xlu0 %v4246_v7, %s5412_s3 }
0x4a20   :  { %v4166_v22 = vpop.permute.xlu1 %4165 }
0x4a21   :  { %v4168_v24 = vmul.f32 %v4166_v22, %v4158_v9 }
0x4a23   :  { %v4249_v0 = vpop.permute.xlu0 %4248  ;;  %4914 = vmatmul.mubr.msk.f32.vlgmr.msra.gmra.mxu0 %vm4084_vm10, %v4168_v24 }
0x4a24   :  { %v4251_v2 = vmul.f32 %v4249_v0, %v4158_v9  ;;  %4929 = vmatprep.mubr.msk.f32.mxu0 %vm5413_vm3, %v5411_v3  ;;  %4928 = vmatpush3.msk.msra.mxu0 %vm4069_vm8, %v4163_v5  ;;  %v4413_v33 = vpop.permute.xlu1 %4412 }
0x4a25   :  { %4937 = vmatprep.subr.mxu0 %v5411_v3 }
0x4a26   :  { %4925 = vmatmul.mubr.msk.f32.vlgmr.msra.gmra.mxu1 %vm4084_vm10, %v4251_v2 }
0x4a27   :  { %4934 = vmatprep.mubr.msk.f32.mxu1 %vm5413_vm3, %v5411_v3  ;;  %4933 = vmatpush3.msk.msra.mxu1 %vm4069_vm8, %v4163_v5  ;;  %v4491_v50 = vpop.permute.xlu0 %4490 }
0x4a28   :  { %4948 = vmatprep.subr.mxu1 %v5411_v3 }
0x4ae3   :  { %v4238_v6 = vpop.f32.mrf.mxu0 }
0x4ae5   :  { %v4915_v8 = vpop.f32.mrf.mxu0 }
0x4ae6   :  { %v4321_v10 = vpop.f32.mrf.mxu1 }
0x4ae7   :  { %v4325_v11 = vmax.f32 %v4238_v6, %v4321_v10 }
0x4ae8   :  { %v4926_v12 = vpop.f32.mrf.mxu1 }
0x4ae9   :  { %v4326_v13 = vsub.f32 %v4238_v6, %v4325_v11  ;;  %v4329_v14 = vsub.f32 %v4321_v10, %v4325_v11 }
0x4aeb   :  { %v4327_v15 = vmul.f32 1.442695, %v4326_v13  ;;  %v4330_v16 = vmul.f32 1.442695, %v4329_v14 }
0x4aed   :  { %5353 = vpow2.f32 %v4327_v15 }
0x4aee   :  { %5355 = vpow2.f32 %v4330_v16 }
0x4afa   :  { %v5354_v17 = vpop.eup %5353 }
0x4afb   :  { %v5356_v18 = vpop.eup %5355 }
0x4afc   :  { %v4332_v19 = vadd.f32 %v5356_v18, %v5354_v17 }
0x4afe   :  { %5357 = vrcp.f32 %v4332_v19 }
0x4b0b   :  { %v5358_v25 = vpop.eup %5357 }
0x4b0c   :  { %v4334_v26 = vmul.f32 %v5358_v25, %v5354_v17  ;;  %v4416_v4 = vmul.f32 %v5358_v25, %v5356_v18 }
0x4b0e   :  { %4930 = vmatmul.mubr.msk.f32.vlgmr.msra.gmra.mxu0 %vm4335_vm11, %v4334_v26  ;;  %4935 = vmatmul.mubr.msk.f32.vlgmr.msra.gmra.mxu1 %vm4335_vm11, %v4416_v4 }
0x4b0f   :  { %4938 = vmatpush3.msra.mxu0 %v4498_v29  ;;  %4945 = vmatprep.mubr.msk.f32.mxu0 %vm5413_vm3, %v5411_v3 }
0x4b10   :  { %4939 = vmatprep.subr.mxu0 %v5411_v3  ;;  %4956 = vmatprep.mubr.msk.f32.mxu1 %vm5413_vm3, %v5411_v3 }
0x4b11   :  { %4940 = vmatpush3.msra.mxu0 %v4497_v27  ;;  %4949 = vmatpush3.msra.mxu1 %v4582_v31 }
0x4b12   :  { %4941 = vmatprep.subr.mxu0 %v5411_v3  ;;  %4950 = vmatprep.subr.mxu1 %v5411_v3 }
0x4b13   :  { %4942 = vmatpush3.msra.mxu0 %v4496_v28  ;;  %4951 = vmatpush3.msra.mxu1 %v4581_v32 }
0x4b14   :  { %4943 = vmatprep.subr.mxu0 %v5411_v3  ;;  %4952 = vmatprep.subr.mxu1 %v5411_v3 }
0x4b15   :  { %4944 = vmatpush3.msra.mxu0 %v4495_v30  ;;  %4953 = vmatpush3.msra.mxu1 %v4580_v41 }
0x4b16   :  { %4954 = vmatprep.subr.mxu1 %v5411_v3 }
0x4b17   :  { %4955 = vmatpush3.msra.mxu1 %v4579_v42 }
0x4bce   :  { %v4408_v51 = vpop.f32.mrf.mxu0  ;;  %v4486_v52 = vpop.f32.mrf.mxu1 }
0x4bcf   :  { %v4415_v35 = vmul.f32 %v4413_v33, %v4408_v51  ;;  %v4493_v36 = vmul.f32 %v4491_v50, %v4486_v52 }
0x4bd0   :  { %v4931_v38 = vpop.f32.mrf.mxu0  ;;  %v4936_v39 = vpop.f32.mrf.mxu1 }
0x4bd1   :  { %v4494_v40 = vadd.f32 %v4493_v36, %v4415_v35 }
0x4bd3   :  { %4946 = vmatmul.mubr.msk.f32.vlgmr.msra.gmra.mxu0 %vm4084_vm10, %v4494_v40 }
0x4c93   :  { %v4575_v44 = vpop.f32.mrf.mxu0 }
0x4c94   :  { %v4576_v45 = vadd.f32 %v4851_v43, %v4575_v44 }
0x4c95   :  { %v4947_v46 = vpop.f32.mrf.mxu0 }
0x4c96   :  { %4957 = vmatmul.mubr.msk.f32.vlgmr.msra.gmra.mxu1 %vm4084_vm10, %v4576_v45 }
0x4d56   :  { %v4652_v3 = vpop.f32.mrf.mxu1 }
0x4d57   :  { %v4665_v54 = vrot.slane %v4652_v3, %v4664_v53  ;;  %v4695_v55 = vcombine.high %v4652_v3, %v4652_v3  ;;  %v4657_v63 = vadd.f32 %v4656_v62, %v4652_v3 }
0x4d58   :  { %v4958_v1 = vpop.f32.mrf.mxu1 }
0x4d59   :  { %v4666_v37 = vcombine.high %v4665_v54, %v4665_v54  ;;  %v4673_v56 = vrot.slane %v4665_v54, %v4664_v53  ;;  %v4702_v34 = vrot.slane %v4695_v55, %v4664_v53 }
0x4d5b   :  { %v4685_v57 = vcombine.high %v4673_v56, %v4673_v56  ;;  %v4680_v58 = vrot.slane %v4666_v37, %v4664_v53  ;;  %v4714_v59 = vcombine.high %v4702_v34, %v4702_v34  ;;  %v4709_v61 = vrot.slane %v4702_v34, %v4664_v53 }
0x4d5d   :  { %4686 = vrot.lane.b32.xlu0 %v4685_v57, %s5416_s10  ;;  %4681 = vrot.lane.b32.xlu1 %v4680_v58, %s5417_s13  ;;  %v4690_v60 = vcombine.high %v4680_v58, %v4680_v58  ;;  %v4721_v23 = vrot.slane %v4714_v59, %v4664_v53 }
0x4d61   :  { %4710 = vrot.lane.b32.xlu0 %v4709_v61, %s5418_s21  ;;  %4691 = vrot.lane.b32.xlu1 %v4690_v60, %s5419_s22 }
0x4d65   :  { %4722 = vrot.lane.b32.xlu1 %v4721_v23, %s5420_s2 }
0x4dcf   :  { %v4687_v20 = vpop.permute.xlu0 %4686  ;;  %v4682_v21 = vpop.permute.xlu1 %4681 }
0x4dd0   :  { %v4684_v7 = vadd.f32 %v4682_v21, %v4657_v63 }
0x4dd2   :  { %v4689_v9 = vadd.f32 %v4687_v20, %v4684_v7 }
0x4dd3   :  { %v4692_v22 = vpop.permute.xlu1 %4691  ;;  %v4711_v0 = vpop.permute.xlu0 %4710 }
0x4dd4   :  { %v4694_v24 = vadd.f32 %v4692_v22, %v4689_v9 }
0x4dd6   :  { %v4713_v2 = vadd.f32 %v4711_v0, %v4694_v24 }
0x4dd7   :  { %v4723_v5 = vpop.permute.xlu1 %4722 }
0x4dd8   :  { %v4725_v6 = vadd.f32 %v4723_v5, %v4713_v2 }
0x4dda   :  { %v4854_v8 = vmul.f32 -1.442695, %v4725_v6 }
0x4ddc   :  { %5359 = vpow2.f32 %v4854_v8 }
0x4de9   :  { %v5360_v10 = vpop.eup %5359 }
0x4dea   :  { %v4729_v11 = vadd.f32 1.0, %v5360_v10 }
0x4dec   :  { %5361 = vrcp.f32 %v4729_v11 }
0x4df9   :  { %v5362_v12 = vpop.eup %5361 }
0x4dfa   :  { %4733 = vst.msk [vmem:[%s6689_s15] sm:$0x1] %vm4732_vm12, %v5362_v12 }

</bundles_post_ra>
